<compile_context>
chip_gen: v7x
topology: tpu7x:2x2x1
jax: 0.10.0
libtpu: 0.0.40
codegen_flags: <defaults>
</compile_context>

<pallas_src>
import functools

import jax
import jax.numpy as jnp
from jax import lax
from jax.experimental import pallas as pl
from jax.experimental.pallas import tpu as pltpu


# --------------------------- in-kernel GRU layer -----------------------------
def _gru_layer(seq, wi, wh, bb):
    """One GRU layer over the node sequence for a single batch element.

    seq : (S, D_in) f32   S = n_nodes (the "time" axis of this model)
    wi  : (3, D_in, H) bf16  per-gate input weights  (r, z, n), pre-transposed
    wh  : (3, H, H)    bf16  per-gate hidden weights (r, z, n), pre-transposed
    bb  : (4, H)       f32   rows = [b_ir+b_hr, b_iz+b_hz, b_in, b_hn]
    returns (S, H) f32 hidden state at every step.
    """
    S = seq.shape[0]
    H = wh.shape[-1]

    b_r, b_z, b_in, b_hn = bb[0:1, :], bb[1:2, :], bb[2:3, :], bb[3:4, :]

    # Hoisted input projections: one MXU matmul per gate over the whole
    # sequence (removed from the serial recurrence).
    s16 = seq.astype(jnp.bfloat16)
    gr = jnp.dot(s16, wi[0], preferred_element_type=jnp.float32) + b_r
    gz = jnp.dot(s16, wi[1], preferred_element_type=jnp.float32) + b_z
    gn = jnp.dot(s16, wi[2], preferred_element_type=jnp.float32) + b_in

    wh_r, wh_z, wh_n = wh[0], wh[1], wh[2]

    h = jnp.zeros((1, H), jnp.float32)
    rows = []
    # Fully unrolled recurrence (S is small and static): only the tiny
    # (1,H)@(H,H) hidden matmuls + f32 gate math remain per step.
    for t in range(S):
        hb = h.astype(jnp.bfloat16)
        ar = jnp.dot(hb, wh_r, preferred_element_type=jnp.float32)
        az = jnp.dot(hb, wh_z, preferred_element_type=jnp.float32)
        an = jnp.dot(hb, wh_n, preferred_element_type=jnp.float32) + b_hn
        r = jax.nn.sigmoid(gr[t:t + 1, :] + ar)
        z = jax.nn.sigmoid(gz[t:t + 1, :] + az)
        n = jnp.tanh(gn[t:t + 1, :] + r * an)
        h = (1.0 - z) * n + z * h
        rows.append(h)
    return jnp.concatenate(rows, axis=0)            # (S, H)


# --------------------------- fused forward kernel ----------------------------
def _fused_kernel(*refs, n_layer):
    xT_ref = refs[0]          # (N, T)  f32   node-major input, one batch elem
    xtail_ref = refs[1]       # (rw, N) f32   last rw history rows (time-major)
    adjt_ref = refs[2]        # (N, N)  bf16  (adj * mask_mat)^T
    w_head_ref = refs[3 + 3 * n_layer]      # (H + rw, Ppad) bf16
    b_head_ref = refs[4 + 3 * n_layer]      # (1, Ppad)      f32
    out_ref = refs[5 + 3 * n_layer]         # (N, Ppad)      f32

    N, T = xT_ref.shape
    rw = xtail_ref.shape[0]
    adjt = adjt_ref[...]

    # 1) graph mixing, already in node-major orientation:
    #    xp[n, t] = sum_m x[t, m] * (adj*mask)[m, n]
    xp = jnp.dot(adjt, xT_ref[...].astype(jnp.bfloat16),
                 preferred_element_type=jnp.float32)          # (N, T)

    # 2) GRU stack: sequence axis = nodes, features = history window.
    seq = xp
    for l in range(n_layer):
        wi = refs[3 + 3 * l][...]
        wh = refs[4 + 3 * l][...]
        bb = refs[5 + 3 * l][...]
        seq = _gru_layer(seq, wi, wh, bb)                     # (N, H)
    # TODO(synk): nn.Dropout / GRU inter-layer dropout are eval-mode identity.

    # 3) residual branch.  zp[r, n] = (x[-rw:] @ (adj*mask))[r, n]
    zp = jnp.einsum("rm,nm->rn", xtail_ref[...].astype(jnp.bfloat16), adjt,
                    preferred_element_type=jnp.float32)       # (rw, N)
    # PyTorch: z = x[:, :, -rw:].permute(0,2,1).contiguous().view(-1, rw);
    # per batch element that is the row-major reflow of zp into (N, rw).
    # Build it from static lane slices (no in-kernel reshape/transpose).
    pieces = []
    for i in range(N):
        f0 = i * rw
        r0, c0 = f0 // N, f0 % N
        if c0 + rw <= N:
            pieces.append(zp[r0:r0 + 1, c0:c0 + rw])
        else:                                   # row straddle (rw does not divide N)
            k = N - c0
            pieces.append(jnp.concatenate(
                [zp[r0:r0 + 1, c0:], zp[r0 + 1:r0 + 2, :rw - k]], axis=1))
    z_feat = jnp.concatenate(pieces, axis=0)                  # (N, rw)

    # 4) head: single MXU matmul on [rnn_out | residual]; ratio already folded
    #    into the weights/bias; 128-lane padded output -> lane-dense store.
    feat = jnp.concatenate([seq, z_feat], axis=1).astype(jnp.bfloat16)
    out = jnp.dot(feat, w_head_ref[...],
                  preferred_element_type=jnp.float32) + b_head_ref[...]
    out_ref[...] = out.astype(out_ref.dtype)


# --------------------------- one-time parameter prep -------------------------
def prepare_params(params, *, n_layer, residual_window, ratio=1.0, lane_pad=128):
    """Pure layout/precision plumbing, run once outside the hot path:
    per-gate split + transpose, bias folding, ratio folding, bf16 cast,
    pre-multiplied & transposed adjacency, 128-lane padded head."""
    hidden = params["w_hh_0"].shape[1]
    prep = {}
    prep["adjm_t"] = jnp.transpose(
        (params["adj"] * params["mask_mat"]).astype(jnp.bfloat16))
    layers = []
    for l in range(n_layer):
        w_ih, w_hh = params[f"w_ih_{l}"], params[f"w_hh_{l}"]
        b_ih, b_hh = params[f"b_ih_{l}"], params[f"b_hh_{l}"]
        H = hidden
        wi = jnp.stack([w_ih[0:H].T, w_ih[H:2 * H].T, w_ih[2 * H:].T], axis=0)
        wh = jnp.stack([w_hh[0:H].T, w_hh[H:2 * H].T, w_hh[2 * H:].T], axis=0)
        bb = jnp.stack([b_ih[0:H] + b_hh[0:H],
                        b_ih[H:2 * H] + b_hh[H:2 * H],
                        b_ih[2 * H:],
                        b_hh[2 * H:]], axis=0).astype(jnp.float32)
        layers.append((wi.astype(jnp.bfloat16), wh.astype(jnp.bfloat16), bb))
    prep["layers"] = layers

    P = params["w1"].shape[0]
    p_pad = max(lane_pad, ((P + lane_pad - 1) // lane_pad) * lane_pad)
    w_head = jnp.concatenate([params["w1"].T * ratio, params["wr"].T], axis=0)
    w_head = jnp.pad(w_head, ((0, 0), (0, p_pad - P)))
    b_head = jnp.pad(params["b1"] * ratio + params["br"], (0, p_pad - P))
    prep["w_head"] = w_head.astype(jnp.bfloat16)
    prep["b_head"] = b_head.astype(jnp.float32)[None, :]
    return prep


# --------------------------- forward (wrapper = layout glue only) ------------
def cnnrnn_res_forward(x, prep, *, n_layer, residual_window, pred_window):
    """x: (B, hist_window, n_nodes) f32; prep: output of prepare_params."""
    B, T, N = x.shape
    rw = residual_window
    ppad = prep["w_head"].shape[1]

    # layout plumbing only: node-major orientation for the GRU / adjacency
    # matmul, and the raw last-rw history rows for the residual branch.
    xT = jnp.transpose(x, (0, 2, 1))            # (B, N, T)
    x_tail = x[:, T - rw:, :]                   # (B, rw, N)

    layer_args = [a for trip in prep["layers"] for a in trip]

    in_specs = [
        pl.BlockSpec((None, N, T), lambda b: (b, 0, 0)),     # xT, one batch elem
        pl.BlockSpec((None, rw, N), lambda b: (b, 0, 0)),    # x tail rows
        pl.BlockSpec((N, N), lambda b: (0, 0)),              # (adj*mask)^T bf16
    ]
    for wi, wh, bb in prep["layers"]:
        in_specs += [pl.BlockSpec(wi.shape, lambda b: (0, 0, 0)),
                     pl.BlockSpec(wh.shape, lambda b: (0, 0, 0)),
                     pl.BlockSpec(bb.shape, lambda b: (0, 0))]
    in_specs += [pl.BlockSpec(prep["w_head"].shape, lambda b: (0, 0)),
                 pl.BlockSpec(prep["b_head"].shape, lambda b: (0, 0))]

    out = pl.pallas_call(
        functools.partial(_fused_kernel, n_layer=n_layer),
        out_shape=jax.ShapeDtypeStruct((B, N, ppad), jnp.float32),
        grid_spec=pltpu.PrefetchScalarGridSpec(
            num_scalar_prefetch=0,
            grid=(B,),                                   # parallel over batch
            in_specs=in_specs,
            out_specs=pl.BlockSpec((None, N, ppad), lambda b: (b, 0, 0)),
        ),
        compiler_params=pltpu.CompilerParams(
            dimension_semantics=("parallel",)),
    )(xT, x_tail, prep["adjm_t"], *layer_args, prep["w_head"], prep["b_head"])

    return out[..., :pred_window]                  # un-pad the 128-lane slab


# --------------------------- pure-JAX reference (PyTorch semantics) ----------
def reference_forward(x, params, *, n_layer, residual_window, ratio=1.0):
    B, T, N = x.shape
    masked = (params["adj"] * params["mask_mat"]).astype(jnp.bfloat16)
    xm = jnp.einsum("btn,nm->btm", x.astype(jnp.bfloat16), masked,
                    preferred_element_type=jnp.float32)
    xp = jnp.transpose(xm, (0, 2, 1))                # (B, N, T)

    def run_layer(inp, l):
        w_ih = params[f"w_ih_{l}"].astype(jnp.bfloat16)
        w_hh = params[f"w_hh_{l}"].astype(jnp.bfloat16)
        b_ih, b_hh = params[f"b_ih_{l}"], params[f"b_hh_{l}"]
        H = w_hh.shape[1]

        def step(h, x_t):
            gi = jnp.dot(x_t.astype(jnp.bfloat16), w_ih.T,
                         preferred_element_type=jnp.float32) + b_ih
            gh = jnp.dot(h.astype(jnp.bfloat16), w_hh.T,
                         preferred_element_type=jnp.float32) + b_hh
            i_r, i_z, i_n = jnp.split(gi, 3, axis=-1)
            h_r, h_z, h_n = jnp.split(gh, 3, axis=-1)
            r = jax.nn.sigmoid(i_r + h_r)
            z = jax.nn.sigmoid(i_z + h_z)
            n = jnp.tanh(i_n + r * h_n)
            h_new = (1.0 - z) * n + z * h
            return h_new, h_new

        xs = jnp.transpose(inp, (1, 0, 2))           # (N, B, D)
        _, hs = lax.scan(step, jnp.zeros((B, H), jnp.float32), xs)
        return jnp.transpose(hs, (1, 0, 2))          # (B, N, H)

    h = xp
    for l in range(n_layer):
        h = run_layer(h, l)
    w1 = params["w1"].astype(jnp.bfloat16)
    res = jnp.einsum("bnh,ph->bnp", h.astype(jnp.bfloat16), w1,
                     preferred_element_type=jnp.float32) + params["b1"]
    rw = residual_window
    z3 = xp[:, :, -rw:]
    z_rows = jnp.transpose(z3, (0, 2, 1)).reshape(B * N, rw)
    wr = params["wr"].astype(jnp.bfloat16)
    zz = (jnp.dot(z_rows.astype(jnp.bfloat16), wr.T,
                  preferred_element_type=jnp.float32)
          + params["br"]).reshape(B, N, -1)
    return res * ratio + zz


# --------------------------- deterministic parameter init --------------------
def init_params(key, *, hist_window, pred_window, n_nodes, n_hidden, n_layer):
    params = {}
    keys = jax.random.split(key, 6 + 4 * n_layer)
    adj_raw = jax.random.uniform(keys[0], (n_nodes, n_nodes), dtype=jnp.float32)
    params["adj"] = adj_raw / jnp.sum(adj_raw, axis=1, keepdims=True)
    std = (2.0 / (n_nodes + n_nodes)) ** 0.5
    params["mask_mat"] = std * jax.random.normal(keys[1], (n_nodes, n_nodes),
                                                 dtype=jnp.float32)
    k = 2
    bound = 1.0 / (n_hidden ** 0.5)
    for l in range(n_layer):
        d_in = hist_window if l == 0 else n_hidden
        params[f"w_ih_{l}"] = jax.random.uniform(
            keys[k], (3 * n_hidden, d_in), minval=-bound, maxval=bound); k += 1
        params[f"w_hh_{l}"] = jax.random.uniform(
            keys[k], (3 * n_hidden, n_hidden), minval=-bound, maxval=bound); k += 1
        params[f"b_ih_{l}"] = jax.random.uniform(
            keys[k], (3 * n_hidden,), minval=-bound, maxval=bound); k += 1
        params[f"b_hh_{l}"] = jax.random.uniform(
            keys[k], (3 * n_hidden,), minval=-bound, maxval=bound); k += 1
    params["w1"] = jax.random.uniform(
        keys[k], (pred_window, n_hidden), minval=-bound, maxval=bound); k += 1
    params["b1"] = jax.random.uniform(
        keys[k], (pred_window,), minval=-bound, maxval=bound); k += 1
    rw = min(4, hist_window)
    boundr = 1.0 / (rw ** 0.5)
    params["wr"] = jax.random.uniform(
        keys[k], (pred_window, rw), minval=-boundr, maxval=boundr); k += 1
    params["br"] = jax.random.uniform(
        keys[k], (pred_window,), minval=-boundr, maxval=boundr); k += 1
    return params


if __name__ == "__main__":
    # batch, hist_window, n_nodes, hidden, pred_window, layers
    B, T, N, H, P, L = 2, 8, 16, 32, 8, 2
    rw = min(4, T)                      # residual_window
    key = jax.random.PRNGKey(0)
    kx, kp = jax.random.split(key)
    x = jax.random.normal(kx, (B, T, N), dtype=jnp.float32)
    params = init_params(kp, hist_window=T, pred_window=P, n_nodes=N,
                         n_hidden=H, n_layer=L)
    prep = prepare_params(params, n_layer=L, residual_window=rw, ratio=1.0)

    fwd = jax.jit(functools.partial(cnnrnn_res_forward, n_layer=L,
                                    residual_window=rw, pred_window=P))
    out = fwd(x, prep)
    jax.block_until_ready(out)

    ref = reference_forward(x, params, n_layer=L, residual_window=rw, ratio=1.0)
    assert out.shape == (B, N, P), out.shape
    max_err = float(jnp.max(jnp.abs(out - ref)))
    assert max_err < 1e-3, f"max abs err {max_err}"
    print("KERNEL_OK")
</pallas_src>

<mosaic_0001>
module attributes {stable_mosaic.version = 11 : i64} {
  func.func @_fused_kernel(%arg0: i32, %arg1: memref<1x16x8xf32, #tpu.memory_space<vmem>>, %arg2: memref<1x4x16xf32, #tpu.memory_space<vmem>>, %arg3: memref<16x16xbf16, #tpu.memory_space<vmem>>, %arg4: memref<3x8x32xbf16, #tpu.memory_space<vmem>>, %arg5: memref<3x32x32xbf16, #tpu.memory_space<vmem>>, %arg6: memref<4x32xf32, #tpu.memory_space<vmem>>, %arg7: memref<3x32x32xbf16, #tpu.memory_space<vmem>>, %arg8: memref<3x32x32xbf16, #tpu.memory_space<vmem>>, %arg9: memref<4x32xf32, #tpu.memory_space<vmem>>, %arg10: memref<36x128xbf16, #tpu.memory_space<vmem>>, %arg11: memref<1x128xf32, #tpu.memory_space<vmem>>, %arg12: memref<1x16x128xf32, #tpu.memory_space<vmem>>) attributes {dimension_semantics = [#tpu.dimension_semantics<parallel>], iteration_bounds = array<i64: 2>, scalar_prefetch = 0 : i64, scratch_operands = 0 : i64, tpu.core_type = #tpu.core_type<tc>, window_params = [{transform_indices = @transform_0, window_bounds = array<i64: 1, 16, 8>}, {transform_indices = @transform_1, window_bounds = array<i64: 1, 4, 16>}, {pipeline_mode = #tpu.pipeline_mode<synchronous>, transform_indices = @transform_2, window_bounds = array<i64: 16, 16>}, {pipeline_mode = #tpu.pipeline_mode<synchronous>, transform_indices = @transform_3, window_bounds = array<i64: 3, 8, 32>}, {pipeline_mode = #tpu.pipeline_mode<synchronous>, transform_indices = @transform_4, window_bounds = array<i64: 3, 32, 32>}, {pipeline_mode = #tpu.pipeline_mode<synchronous>, transform_indices = @transform_5, window_bounds = array<i64: 4, 32>}, {pipeline_mode = #tpu.pipeline_mode<synchronous>, transform_indices = @transform_6, window_bounds = array<i64: 3, 32, 32>}, {pipeline_mode = #tpu.pipeline_mode<synchronous>, transform_indices = @transform_7, window_bounds = array<i64: 3, 32, 32>}, {pipeline_mode = #tpu.pipeline_mode<synchronous>, transform_indices = @transform_8, window_bounds = array<i64: 4, 32>}, {pipeline_mode = #tpu.pipeline_mode<synchronous>, transform_indices = @transform_9, window_bounds = array<i64: 36, 128>}, {pipeline_mode = #tpu.pipeline_mode<synchronous>, transform_indices = @transform_10, window_bounds = array<i64: 1, 128>}, {transform_indices = @transform_11, window_bounds = array<i64: 1, 16, 128>}]} {
    %c0 = arith.constant 0 : index
    %c0_0 = arith.constant 0 : index
    %0 = vector.load %arg3[%c0, %c0_0] : memref<16x16xbf16, #tpu.memory_space<vmem>>, vector<16x16xbf16>
    %c0_1 = arith.constant 0 : index
    %c0_2 = arith.constant 0 : index
    %c0_3 = arith.constant 0 : index
    %1 = vector.load %arg1[%c0_1, %c0_2, %c0_3] : memref<1x16x8xf32, #tpu.memory_space<vmem>>, vector<1x16x8xf32>
    %2 = vector.shape_cast %1 : vector<1x16x8xf32> to vector<16x8xf32>
    %3 = arith.truncf %2 : vector<16x8xf32> to vector<16x8xbf16>
    %cst = arith.constant dense<0.000000e+00> : vector<16x8xf32>
    %4 = tpu.matmul %0, %3, %cst {dimension_numbers = #tpu.dot_dimension_numbers<[1], [0], [0], [1], [0, 0, 1, 1], [], []>} : vector<16x16xbf16>, vector<16x8xbf16>, vector<16x8xf32> -> vector<16x8xf32>
    %c0_4 = arith.constant 0 : index
    %c0_5 = arith.constant 0 : index
    %c0_6 = arith.constant 0 : index
    %5 = vector.load %arg4[%c0_4, %c0_5, %c0_6] : memref<3x8x32xbf16, #tpu.memory_space<vmem>>, vector<3x8x32xbf16>
    %c0_7 = arith.constant 0 : index
    %c0_8 = arith.constant 0 : index
    %c0_9 = arith.constant 0 : index
    %6 = vector.load %arg5[%c0_7, %c0_8, %c0_9] : memref<3x32x32xbf16, #tpu.memory_space<vmem>>, vector<3x32x32xbf16>
    %c0_10 = arith.constant 0 : index
    %c0_11 = arith.constant 0 : index
    %7 = vector.load %arg6[%c0_10, %c0_11] : memref<4x32xf32, #tpu.memory_space<vmem>>, vector<4x32xf32>
    %8 = vector.extract_strided_slice %7 {offsets = [0, 0], sizes = [1, 32], strides = [1, 1]} : vector<4x32xf32> to vector<1x32xf32>
    %9 = vector.extract_strided_slice %7 {offsets = [1, 0], sizes = [1, 32], strides = [1, 1]} : vector<4x32xf32> to vector<1x32xf32>
    %10 = vector.extract_strided_slice %7 {offsets = [2, 0], sizes = [1, 32], strides = [1, 1]} : vector<4x32xf32> to vector<1x32xf32>
    %11 = vector.extract_strided_slice %7 {offsets = [3, 0], sizes = [1, 32], strides = [1, 1]} : vector<4x32xf32> to vector<1x32xf32>
    %12 = arith.truncf %4 : vector<16x8xf32> to vector<16x8xbf16>
    %13 = vector.extract_strided_slice %5 {offsets = [0, 0, 0], sizes = [1, 8, 32], strides = [1, 1, 1]} : vector<3x8x32xbf16> to vector<1x8x32xbf16>
    %14 = vector.shape_cast %13 : vector<1x8x32xbf16> to vector<8x32xbf16>
    %cst_12 = arith.constant dense<0.000000e+00> : vector<16x32xf32>
    %15 = tpu.matmul %12, %14, %cst_12 {dimension_numbers = #tpu.dot_dimension_numbers<[1], [0], [0], [1], [0, 0, 1, 1], [], []>} : vector<16x8xbf16>, vector<8x32xbf16>, vector<16x32xf32> -> vector<16x32xf32>
    %16 = vector.broadcast %8 : vector<1x32xf32> to vector<16x32xf32>
    %17 = arith.addf %15, %16 : vector<16x32xf32>
    %18 = vector.extract_strided_slice %5 {offsets = [1, 0, 0], sizes = [1, 8, 32], strides = [1, 1, 1]} : vector<3x8x32xbf16> to vector<1x8x32xbf16>
    %19 = vector.shape_cast %18 : vector<1x8x32xbf16> to vector<8x32xbf16>
    %cst_13 = arith.constant dense<0.000000e+00> : vector<16x32xf32>
    %20 = tpu.matmul %12, %19, %cst_13 {dimension_numbers = #tpu.dot_dimension_numbers<[1], [0], [0], [1], [0, 0, 1, 1], [], []>} : vector<16x8xbf16>, vector<8x32xbf16>, vector<16x32xf32> -> vector<16x32xf32>
    %21 = vector.broadcast %9 : vector<1x32xf32> to vector<16x32xf32>
    %22 = arith.addf %20, %21 : vector<16x32xf32>
    %23 = vector.extract_strided_slice %5 {offsets = [2, 0, 0], sizes = [1, 8, 32], strides = [1, 1, 1]} : vector<3x8x32xbf16> to vector<1x8x32xbf16>
    %24 = vector.shape_cast %23 : vector<1x8x32xbf16> to vector<8x32xbf16>
    %cst_14 = arith.constant dense<0.000000e+00> : vector<16x32xf32>
    %25 = tpu.matmul %12, %24, %cst_14 {dimension_numbers = #tpu.dot_dimension_numbers<[1], [0], [0], [1], [0, 0, 1, 1], [], []>} : vector<16x8xbf16>, vector<8x32xbf16>, vector<16x32xf32> -> vector<16x32xf32>
    %26 = vector.broadcast %10 : vector<1x32xf32> to vector<16x32xf32>
    %27 = arith.addf %25, %26 : vector<16x32xf32>
    %28 = vector.extract_strided_slice %6 {offsets = [0, 0, 0], sizes = [1, 32, 32], strides = [1, 1, 1]} : vector<3x32x32xbf16> to vector<1x32x32xbf16>
    %29 = vector.shape_cast %28 : vector<1x32x32xbf16> to vector<32x32xbf16>
    %30 = vector.extract_strided_slice %6 {offsets = [1, 0, 0], sizes = [1, 32, 32], strides = [1, 1, 1]} : vector<3x32x32xbf16> to vector<1x32x32xbf16>
    %31 = vector.shape_cast %30 : vector<1x32x32xbf16> to vector<32x32xbf16>
    %32 = vector.extract_strided_slice %6 {offsets = [2, 0, 0], sizes = [1, 32, 32], strides = [1, 1, 1]} : vector<3x32x32xbf16> to vector<1x32x32xbf16>
    %33 = vector.shape_cast %32 : vector<1x32x32xbf16> to vector<32x32xbf16>
    %cst_15 = arith.constant 0.000000e+00 : f32
    %34 = vector.broadcast %cst_15 : f32 to vector<1x32xf32>
    %35 = arith.truncf %34 : vector<1x32xf32> to vector<1x32xbf16>
    %cst_16 = arith.constant dense<0.000000e+00> : vector<1x32xf32>
    %36 = tpu.matmul %35, %29, %cst_16 {dimension_numbers = #tpu.dot_dimension_numbers<[1], [0], [0], [1], [0, 0, 1, 1], [], []>} : vector<1x32xbf16>, vector<32x32xbf16>, vector<1x32xf32> -> vector<1x32xf32>
    %cst_17 = arith.constant dense<0.000000e+00> : vector<1x32xf32>
    %37 = tpu.matmul %35, %31, %cst_17 {dimension_numbers = #tpu.dot_dimension_numbers<[1], [0], [0], [1], [0, 0, 1, 1], [], []>} : vector<1x32xbf16>, vector<32x32xbf16>, vector<1x32xf32> -> vector<1x32xf32>
    %cst_18 = arith.constant dense<0.000000e+00> : vector<1x32xf32>
    %38 = tpu.matmul %35, %33, %cst_18 {dimension_numbers = #tpu.dot_dimension_numbers<[1], [0], [0], [1], [0, 0, 1, 1], [], []>} : vector<1x32xbf16>, vector<32x32xbf16>, vector<1x32xf32> -> vector<1x32xf32>
    %39 = arith.addf %38, %11 : vector<1x32xf32>
    %40 = vector.extract_strided_slice %17 {offsets = [0, 0], sizes = [1, 32], strides = [1, 1]} : vector<16x32xf32> to vector<1x32xf32>
    %41 = arith.addf %40, %36 : vector<1x32xf32>
    %42 = arith.negf %41 : vector<1x32xf32>
    %43 = math.exp %42 : vector<1x32xf32>
    %cst_19 = arith.constant 1.000000e+00 : f32
    %44 = vector.broadcast %cst_19 : f32 to vector<1x32xf32>
    %45 = arith.addf %44, %43 : vector<1x32xf32>
    %46 = arith.divf %44, %45 : vector<1x32xf32>
    %47 = vector.extract_strided_slice %22 {offsets = [0, 0], sizes = [1, 32], strides = [1, 1]} : vector<16x32xf32> to vector<1x32xf32>
    %48 = arith.addf %47, %37 : vector<1x32xf32>
    %49 = arith.negf %48 : vector<1x32xf32>
    %50 = math.exp %49 : vector<1x32xf32>
    %cst_20 = arith.constant 1.000000e+00 : f32
    %51 = vector.broadcast %cst_20 : f32 to vector<1x32xf32>
    %52 = arith.addf %51, %50 : vector<1x32xf32>
    %53 = arith.divf %51, %52 : vector<1x32xf32>
    %54 = vector.extract_strided_slice %27 {offsets = [0, 0], sizes = [1, 32], strides = [1, 1]} : vector<16x32xf32> to vector<1x32xf32>
    %55 = arith.mulf %46, %39 : vector<1x32xf32>
    %56 = arith.addf %54, %55 : vector<1x32xf32>
    %57 = math.tanh %56 : vector<1x32xf32>
    %cst_21 = arith.constant 1.000000e+00 : f32
    %58 = vector.broadcast %cst_21 : f32 to vector<1x32xf32>
    %59 = arith.subf %58, %53 : vector<1x32xf32>
    %60 = arith.mulf %59, %57 : vector<1x32xf32>
    %61 = arith.mulf %53, %34 : vector<1x32xf32>
    %62 = arith.addf %60, %61 : vector<1x32xf32>
    %63 = arith.truncf %62 : vector<1x32xf32> to vector<1x32xbf16>
    %cst_22 = arith.constant dense<0.000000e+00> : vector<1x32xf32>
    %64 = tpu.matmul %63, %29, %cst_22 {dimension_numbers = #tpu.dot_dimension_numbers<[1], [0], [0], [1], [0, 0, 1, 1], [], []>} : vector<1x32xbf16>, vector<32x32xbf16>, vector<1x32xf32> -> vector<1x32xf32>
    %cst_23 = arith.constant dense<0.000000e+00> : vector<1x32xf32>
    %65 = tpu.matmul %63, %31, %cst_23 {dimension_numbers = #tpu.dot_dimension_numbers<[1], [0], [0], [1], [0, 0, 1, 1], [], []>} : vector<1x32xbf16>, vector<32x32xbf16>, vector<1x32xf32> -> vector<1x32xf32>
    %cst_24 = arith.constant dense<0.000000e+00> : vector<1x32xf32>
    %66 = tpu.matmul %63, %33, %cst_24 {dimension_numbers = #tpu.dot_dimension_numbers<[1], [0], [0], [1], [0, 0, 1, 1], [], []>} : vector<1x32xbf16>, vector<32x32xbf16>, vector<1x32xf32> -> vector<1x32xf32>
    %67 = arith.addf %66, %11 : vector<1x32xf32>
    %68 = vector.extract_strided_slice %17 {offsets = [1, 0], sizes = [1, 32], strides = [1, 1]} : vector<16x32xf32> to vector<1x32xf32>
    %69 = arith.addf %68, %64 : vector<1x32xf32>
    %70 = arith.negf %69 : vector<1x32xf32>
    %71 = math.exp %70 : vector<1x32xf32>
    %cst_25 = arith.constant 1.000000e+00 : f32
    %72 = vector.broadcast %cst_25 : f32 to vector<1x32xf32>
    %73 = arith.addf %72, %71 : vector<1x32xf32>
    %74 = arith.divf %72, %73 : vector<1x32xf32>
    %75 = vector.extract_strided_slice %22 {offsets = [1, 0], sizes = [1, 32], strides = [1, 1]} : vector<16x32xf32> to vector<1x32xf32>
    %76 = arith.addf %75, %65 : vector<1x32xf32>
    %77 = arith.negf %76 : vector<1x32xf32>
    %78 = math.exp %77 : vector<1x32xf32>
    %cst_26 = arith.constant 1.000000e+00 : f32
    %79 = vector.broadcast %cst_26 : f32 to vector<1x32xf32>
    %80 = arith.addf %79, %78 : vector<1x32xf32>
    %81 = arith.divf %79, %80 : vector<1x32xf32>
    %82 = vector.extract_strided_slice %27 {offsets = [1, 0], sizes = [1, 32], strides = [1, 1]} : vector<16x32xf32> to vector<1x32xf32>
    %83 = arith.mulf %74, %67 : vector<1x32xf32>
    %84 = arith.addf %82, %83 : vector<1x32xf32>
    %85 = math.tanh %84 : vector<1x32xf32>
    %cst_27 = arith.constant 1.000000e+00 : f32
    %86 = vector.broadcast %cst_27 : f32 to vector<1x32xf32>
    %87 = arith.subf %86, %81 : vector<1x32xf32>
    %88 = arith.mulf %87, %85 : vector<1x32xf32>
    %89 = arith.mulf %81, %62 : vector<1x32xf32>
    %90 = arith.addf %88, %89 : vector<1x32xf32>
    %91 = arith.truncf %90 : vector<1x32xf32> to vector<1x32xbf16>
    %cst_28 = arith.constant dense<0.000000e+00> : vector<1x32xf32>
    %92 = tpu.matmul %91, %29, %cst_28 {dimension_numbers = #tpu.dot_dimension_numbers<[1], [0], [0], [1], [0, 0, 1, 1], [], []>} : vector<1x32xbf16>, vector<32x32xbf16>, vector<1x32xf32> -> vector<1x32xf32>
    %cst_29 = arith.constant dense<0.000000e+00> : vector<1x32xf32>
    %93 = tpu.matmul %91, %31, %cst_29 {dimension_numbers = #tpu.dot_dimension_numbers<[1], [0], [0], [1], [0, 0, 1, 1], [], []>} : vector<1x32xbf16>, vector<32x32xbf16>, vector<1x32xf32> -> vector<1x32xf32>
    %cst_30 = arith.constant dense<0.000000e+00> : vector<1x32xf32>
    %94 = tpu.matmul %91, %33, %cst_30 {dimension_numbers = #tpu.dot_dimension_numbers<[1], [0], [0], [1], [0, 0, 1, 1], [], []>} : vector<1x32xbf16>, vector<32x32xbf16>, vector<1x32xf32> -> vector<1x32xf32>
    %95 = arith.addf %94, %11 : vector<1x32xf32>
    %96 = vector.extract_strided_slice %17 {offsets = [2, 0], sizes = [1, 32], strides = [1, 1]} : vector<16x32xf32> to vector<1x32xf32>
    %97 = arith.addf %96, %92 : vector<1x32xf32>
    %98 = arith.negf %97 : vector<1x32xf32>
    %99 = math.exp %98 : vector<1x32xf32>
    %cst_31 = arith.constant 1.000000e+00 : f32
    %100 = vector.broadcast %cst_31 : f32 to vector<1x32xf32>
    %101 = arith.addf %100, %99 : vector<1x32xf32>
    %102 = arith.divf %100, %101 : vector<1x32xf32>
    %103 = vector.extract_strided_slice %22 {offsets = [2, 0], sizes = [1, 32], strides = [1, 1]} : vector<16x32xf32> to vector<1x32xf32>
    %104 = arith.addf %103, %93 : vector<1x32xf32>
    %105 = arith.negf %104 : vector<1x32xf32>
    %106 = math.exp %105 : vector<1x32xf32>
    %cst_32 = arith.constant 1.000000e+00 : f32
    %107 = vector.broadcast %cst_32 : f32 to vector<1x32xf32>
    %108 = arith.addf %107, %106 : vector<1x32xf32>
    %109 = arith.divf %107, %108 : vector<1x32xf32>
    %110 = vector.extract_strided_slice %27 {offsets = [2, 0], sizes = [1, 32], strides = [1, 1]} : vector<16x32xf32> to vector<1x32xf32>
    %111 = arith.mulf %102, %95 : vector<1x32xf32>
    %112 = arith.addf %110, %111 : vector<1x32xf32>
    %113 = math.tanh %112 : vector<1x32xf32>
    %cst_33 = arith.constant 1.000000e+00 : f32
    %114 = vector.broadcast %cst_33 : f32 to vector<1x32xf32>
    %115 = arith.subf %114, %109 : vector<1x32xf32>
    %116 = arith.mulf %115, %113 : vector<1x32xf32>
    %117 = arith.mulf %109, %90 : vector<1x32xf32>
    %118 = arith.addf %116, %117 : vector<1x32xf32>
    %119 = arith.truncf %118 : vector<1x32xf32> to vector<1x32xbf16>
    %cst_34 = arith.constant dense<0.000000e+00> : vector<1x32xf32>
    %120 = tpu.matmul %119, %29, %cst_34 {dimension_numbers = #tpu.dot_dimension_numbers<[1], [0], [0], [1], [0, 0, 1, 1], [], []>} : vector<1x32xbf16>, vector<32x32xbf16>, vector<1x32xf32> -> vector<1x32xf32>
    %cst_35 = arith.constant dense<0.000000e+00> : vector<1x32xf32>
    %121 = tpu.matmul %119, %31, %cst_35 {dimension_numbers = #tpu.dot_dimension_numbers<[1], [0], [0], [1], [0, 0, 1, 1], [], []>} : vector<1x32xbf16>, vector<32x32xbf16>, vector<1x32xf32> -> vector<1x32xf32>
    %cst_36 = arith.constant dense<0.000000e+00> : vector<1x32xf32>
    %122 = tpu.matmul %119, %33, %cst_36 {dimension_numbers = #tpu.dot_dimension_numbers<[1], [0], [0], [1], [0, 0, 1, 1], [], []>} : vector<1x32xbf16>, vector<32x32xbf16>, vector<1x32xf32> -> vector<1x32xf32>
    %123 = arith.addf %122, %11 : vector<1x32xf32>
    %124 = vector.extract_strided_slice %17 {offsets = [3, 0], sizes = [1, 32], strides = [1, 1]} : vector<16x32xf32> to vector<1x32xf32>
    %125 = arith.addf %124, %120 : vector<1x32xf32>
    %126 = arith.negf %125 : vector<1x32xf32>
    %127 = math.exp %126 : vector<1x32xf32>
    %cst_37 = arith.constant 1.000000e+00 : f32
    %128 = vector.broadcast %cst_37 : f32 to vector<1x32xf32>
    %129 = arith.addf %128, %127 : vector<1x32xf32>
    %130 = arith.divf %128, %129 : vector<1x32xf32>
    %131 = vector.extract_strided_slice %22 {offsets = [3, 0], sizes = [1, 32], strides = [1, 1]} : vector<16x32xf32> to vector<1x32xf32>
    %132 = arith.addf %131, %121 : vector<1x32xf32>
    %133 = arith.negf %132 : vector<1x32xf32>
    %134 = math.exp %133 : vector<1x32xf32>
    %cst_38 = arith.constant 1.000000e+00 : f32
    %135 = vector.broadcast %cst_38 : f32 to vector<1x32xf32>
    %136 = arith.addf %135, %134 : vector<1x32xf32>
    %137 = arith.divf %135, %136 : vector<1x32xf32>
    %138 = vector.extract_strided_slice %27 {offsets = [3, 0], sizes = [1, 32], strides = [1, 1]} : vector<16x32xf32> to vector<1x32xf32>
    %139 = arith.mulf %130, %123 : vector<1x32xf32>
    %140 = arith.addf %138, %139 : vector<1x32xf32>
    %141 = math.tanh %140 : vector<1x32xf32>
    %cst_39 = arith.constant 1.000000e+00 : f32
    %142 = vector.broadcast %cst_39 : f32 to vector<1x32xf32>
    %143 = arith.subf %142, %137 : vector<1x32xf32>
    %144 = arith.mulf %143, %141 : vector<1x32xf32>
    %145 = arith.mulf %137, %118 : vector<1x32xf32>
    %146 = arith.addf %144, %145 : vector<1x32xf32>
    %147 = arith.truncf %146 : vector<1x32xf32> to vector<1x32xbf16>
    %cst_40 = arith.constant dense<0.000000e+00> : vector<1x32xf32>
    %148 = tpu.matmul %147, %29, %cst_40 {dimension_numbers = #tpu.dot_dimension_numbers<[1], [0], [0], [1], [0, 0, 1, 1], [], []>} : vector<1x32xbf16>, vector<32x32xbf16>, vector<1x32xf32> -> vector<1x32xf32>
    %cst_41 = arith.constant dense<0.000000e+00> : vector<1x32xf32>
    %149 = tpu.matmul %147, %31, %cst_41 {dimension_numbers = #tpu.dot_dimension_numbers<[1], [0], [0], [1], [0, 0, 1, 1], [], []>} : vector<1x32xbf16>, vector<32x32xbf16>, vector<1x32xf32> -> vector<1x32xf32>
    %cst_42 = arith.constant dense<0.000000e+00> : vector<1x32xf32>
    %150 = tpu.matmul %147, %33, %cst_42 {dimension_numbers = #tpu.dot_dimension_numbers<[1], [0], [0], [1], [0, 0, 1, 1], [], []>} : vector<1x32xbf16>, vector<32x32xbf16>, vector<1x32xf32> -> vector<1x32xf32>
    %151 = arith.addf %150, %11 : vector<1x32xf32>
    %152 = vector.extract_strided_slice %17 {offsets = [4, 0], sizes = [1, 32], strides = [1, 1]} : vector<16x32xf32> to vector<1x32xf32>
    %153 = arith.addf %152, %148 : vector<1x32xf32>
    %154 = arith.negf %153 : vector<1x32xf32>
    %155 = math.exp %154 : vector<1x32xf32>
    %cst_43 = arith.constant 1.000000e+00 : f32
    %156 = vector.broadcast %cst_43 : f32 to vector<1x32xf32>
    %157 = arith.addf %156, %155 : vector<1x32xf32>
    %158 = arith.divf %156, %157 : vector<1x32xf32>
    %159 = vector.extract_strided_slice %22 {offsets = [4, 0], sizes = [1, 32], strides = [1, 1]} : vector<16x32xf32> to vector<1x32xf32>
    %160 = arith.addf %159, %149 : vector<1x32xf32>
    %161 = arith.negf %160 : vector<1x32xf32>
    %162 = math.exp %161 : vector<1x32xf32>
    %cst_44 = arith.constant 1.000000e+00 : f32
    %163 = vector.broadcast %cst_44 : f32 to vector<1x32xf32>
    %164 = arith.addf %163, %162 : vector<1x32xf32>
    %165 = arith.divf %163, %164 : vector<1x32xf32>
    %166 = vector.extract_strided_slice %27 {offsets = [4, 0], sizes = [1, 32], strides = [1, 1]} : vector<16x32xf32> to vector<1x32xf32>
    %167 = arith.mulf %158, %151 : vector<1x32xf32>
    %168 = arith.addf %166, %167 : vector<1x32xf32>
    %169 = math.tanh %168 : vector<1x32xf32>
    %cst_45 = arith.constant 1.000000e+00 : f32
    %170 = vector.broadcast %cst_45 : f32 to vector<1x32xf32>
    %171 = arith.subf %170, %165 : vector<1x32xf32>
    %172 = arith.mulf %171, %169 : vector<1x32xf32>
    %173 = arith.mulf %165, %146 : vector<1x32xf32>
    %174 = arith.addf %172, %173 : vector<1x32xf32>
    %175 = arith.truncf %174 : vector<1x32xf32> to vector<1x32xbf16>
    %cst_46 = arith.constant dense<0.000000e+00> : vector<1x32xf32>
    %176 = tpu.matmul %175, %29, %cst_46 {dimension_numbers = #tpu.dot_dimension_numbers<[1], [0], [0], [1], [0, 0, 1, 1], [], []>} : vector<1x32xbf16>, vector<32x32xbf16>, vector<1x32xf32> -> vector<1x32xf32>
    %cst_47 = arith.constant dense<0.000000e+00> : vector<1x32xf32>
    %177 = tpu.matmul %175, %31, %cst_47 {dimension_numbers = #tpu.dot_dimension_numbers<[1], [0], [0], [1], [0, 0, 1, 1], [], []>} : vector<1x32xbf16>, vector<32x32xbf16>, vector<1x32xf32> -> vector<1x32xf32>
    %cst_48 = arith.constant dense<0.000000e+00> : vector<1x32xf32>
    %178 = tpu.matmul %175, %33, %cst_48 {dimension_numbers = #tpu.dot_dimension_numbers<[1], [0], [0], [1], [0, 0, 1, 1], [], []>} : vector<1x32xbf16>, vector<32x32xbf16>, vector<1x32xf32> -> vector<1x32xf32>
    %179 = arith.addf %178, %11 : vector<1x32xf32>
    %180 = vector.extract_strided_slice %17 {offsets = [5, 0], sizes = [1, 32], strides = [1, 1]} : vector<16x32xf32> to vector<1x32xf32>
    %181 = arith.addf %180, %176 : vector<1x32xf32>
    %182 = arith.negf %181 : vector<1x32xf32>
    %183 = math.exp %182 : vector<1x32xf32>
    %cst_49 = arith.constant 1.000000e+00 : f32
    %184 = vector.broadcast %cst_49 : f32 to vector<1x32xf32>
    %185 = arith.addf %184, %183 : vector<1x32xf32>
    %186 = arith.divf %184, %185 : vector<1x32xf32>
    %187 = vector.extract_strided_slice %22 {offsets = [5, 0], sizes = [1, 32], strides = [1, 1]} : vector<16x32xf32> to vector<1x32xf32>
    %188 = arith.addf %187, %177 : vector<1x32xf32>
    %189 = arith.negf %188 : vector<1x32xf32>
    %190 = math.exp %189 : vector<1x32xf32>
    %cst_50 = arith.constant 1.000000e+00 : f32
    %191 = vector.broadcast %cst_50 : f32 to vector<1x32xf32>
    %192 = arith.addf %191, %190 : vector<1x32xf32>
    %193 = arith.divf %191, %192 : vector<1x32xf32>
    %194 = vector.extract_strided_slice %27 {offsets = [5, 0], sizes = [1, 32], strides = [1, 1]} : vector<16x32xf32> to vector<1x32xf32>
    %195 = arith.mulf %186, %179 : vector<1x32xf32>
    %196 = arith.addf %194, %195 : vector<1x32xf32>
    %197 = math.tanh %196 : vector<1x32xf32>
    %cst_51 = arith.constant 1.000000e+00 : f32
    %198 = vector.broadcast %cst_51 : f32 to vector<1x32xf32>
    %199 = arith.subf %198, %193 : vector<1x32xf32>
    %200 = arith.mulf %199, %197 : vector<1x32xf32>
    %201 = arith.mulf %193, %174 : vector<1x32xf32>
    %202 = arith.addf %200, %201 : vector<1x32xf32>
    %203 = arith.truncf %202 : vector<1x32xf32> to vector<1x32xbf16>
    %cst_52 = arith.constant dense<0.000000e+00> : vector<1x32xf32>
    %204 = tpu.matmul %203, %29, %cst_52 {dimension_numbers = #tpu.dot_dimension_numbers<[1], [0], [0], [1], [0, 0, 1, 1], [], []>} : vector<1x32xbf16>, vector<32x32xbf16>, vector<1x32xf32> -> vector<1x32xf32>
    %cst_53 = arith.constant dense<0.000000e+00> : vector<1x32xf32>
    %205 = tpu.matmul %203, %31, %cst_53 {dimension_numbers = #tpu.dot_dimension_numbers<[1], [0], [0], [1], [0, 0, 1, 1], [], []>} : vector<1x32xbf16>, vector<32x32xbf16>, vector<1x32xf32> -> vector<1x32xf32>
    %cst_54 = arith.constant dense<0.000000e+00> : vector<1x32xf32>
    %206 = tpu.matmul %203, %33, %cst_54 {dimension_numbers = #tpu.dot_dimension_numbers<[1], [0], [0], [1], [0, 0, 1, 1], [], []>} : vector<1x32xbf16>, vector<32x32xbf16>, vector<1x32xf32> -> vector<1x32xf32>
    %207 = arith.addf %206, %11 : vector<1x32xf32>
    %208 = vector.extract_strided_slice %17 {offsets = [6, 0], sizes = [1, 32], strides = [1, 1]} : vector<16x32xf32> to vector<1x32xf32>
    %209 = arith.addf %208, %204 : vector<1x32xf32>
    %210 = arith.negf %209 : vector<1x32xf32>
    %211 = math.exp %210 : vector<1x32xf32>
    %cst_55 = arith.constant 1.000000e+00 : f32
    %212 = vector.broadcast %cst_55 : f32 to vector<1x32xf32>
    %213 = arith.addf %212, %211 : vector<1x32xf32>
    %214 = arith.divf %212, %213 : vector<1x32xf32>
    %215 = vector.extract_strided_slice %22 {offsets = [6, 0], sizes = [1, 32], strides = [1, 1]} : vector<16x32xf32> to vector<1x32xf32>
    %216 = arith.addf %215, %205 : vector<1x32xf32>
    %217 = arith.negf %216 : vector<1x32xf32>
    %218 = math.exp %217 : vector<1x32xf32>
    %cst_56 = arith.constant 1.000000e+00 : f32
    %219 = vector.broadcast %cst_56 : f32 to vector<1x32xf32>
    %220 = arith.addf %219, %218 : vector<1x32xf32>
    %221 = arith.divf %219, %220 : vector<1x32xf32>
    %222 = vector.extract_strided_slice %27 {offsets = [6, 0], sizes = [1, 32], strides = [1, 1]} : vector<16x32xf32> to vector<1x32xf32>
    %223 = arith.mulf %214, %207 : vector<1x32xf32>
    %224 = arith.addf %222, %223 : vector<1x32xf32>
    %225 = math.tanh %224 : vector<1x32xf32>
    %cst_57 = arith.constant 1.000000e+00 : f32
    %226 = vector.broadcast %cst_57 : f32 to vector<1x32xf32>
    %227 = arith.subf %226, %221 : vector<1x32xf32>
    %228 = arith.mulf %227, %225 : vector<1x32xf32>
    %229 = arith.mulf %221, %202 : vector<1x32xf32>
    %230 = arith.addf %228, %229 : vector<1x32xf32>
    %231 = arith.truncf %230 : vector<1x32xf32> to vector<1x32xbf16>
    %cst_58 = arith.constant dense<0.000000e+00> : vector<1x32xf32>
    %232 = tpu.matmul %231, %29, %cst_58 {dimension_numbers = #tpu.dot_dimension_numbers<[1], [0], [0], [1], [0, 0, 1, 1], [], []>} : vector<1x32xbf16>, vector<32x32xbf16>, vector<1x32xf32> -> vector<1x32xf32>
    %cst_59 = arith.constant dense<0.000000e+00> : vector<1x32xf32>
    %233 = tpu.matmul %231, %31, %cst_59 {dimension_numbers = #tpu.dot_dimension_numbers<[1], [0], [0], [1], [0, 0, 1, 1], [], []>} : vector<1x32xbf16>, vector<32x32xbf16>, vector<1x32xf32> -> vector<1x32xf32>
    %cst_60 = arith.constant dense<0.000000e+00> : vector<1x32xf32>
    %234 = tpu.matmul %231, %33, %cst_60 {dimension_numbers = #tpu.dot_dimension_numbers<[1], [0], [0], [1], [0, 0, 1, 1], [], []>} : vector<1x32xbf16>, vector<32x32xbf16>, vector<1x32xf32> -> vector<1x32xf32>
    %235 = arith.addf %234, %11 : vector<1x32xf32>
    %236 = vector.extract_strided_slice %17 {offsets = [7, 0], sizes = [1, 32], strides = [1, 1]} : vector<16x32xf32> to vector<1x32xf32>
    %237 = arith.addf %236, %232 : vector<1x32xf32>
    %238 = arith.negf %237 : vector<1x32xf32>
    %239 = math.exp %238 : vector<1x32xf32>
    %cst_61 = arith.constant 1.000000e+00 : f32
    %240 = vector.broadcast %cst_61 : f32 to vector<1x32xf32>
    %241 = arith.addf %240, %239 : vector<1x32xf32>
    %242 = arith.divf %240, %241 : vector<1x32xf32>
    %243 = vector.extract_strided_slice %22 {offsets = [7, 0], sizes = [1, 32], strides = [1, 1]} : vector<16x32xf32> to vector<1x32xf32>
    %244 = arith.addf %243, %233 : vector<1x32xf32>
    %245 = arith.negf %244 : vector<1x32xf32>
    %246 = math.exp %245 : vector<1x32xf32>
    %cst_62 = arith.constant 1.000000e+00 : f32
    %247 = vector.broadcast %cst_62 : f32 to vector<1x32xf32>
    %248 = arith.addf %247, %246 : vector<1x32xf32>
    %249 = arith.divf %247, %248 : vector<1x32xf32>
    %250 = vector.extract_strided_slice %27 {offsets = [7, 0], sizes = [1, 32], strides = [1, 1]} : vector<16x32xf32> to vector<1x32xf32>
    %251 = arith.mulf %242, %235 : vector<1x32xf32>
    %252 = arith.addf %250, %251 : vector<1x32xf32>
    %253 = math.tanh %252 : vector<1x32xf32>
    %cst_63 = arith.constant 1.000000e+00 : f32
    %254 = vector.broadcast %cst_63 : f32 to vector<1x32xf32>
    %255 = arith.subf %254, %249 : vector<1x32xf32>
    %256 = arith.mulf %255, %253 : vector<1x32xf32>
    %257 = arith.mulf %249, %230 : vector<1x32xf32>
    %258 = arith.addf %256, %257 : vector<1x32xf32>
    %259 = arith.truncf %258 : vector<1x32xf32> to vector<1x32xbf16>
    %cst_64 = arith.constant dense<0.000000e+00> : vector<1x32xf32>
    %260 = tpu.matmul %259, %29, %cst_64 {dimension_numbers = #tpu.dot_dimension_numbers<[1], [0], [0], [1], [0, 0, 1, 1], [], []>} : vector<1x32xbf16>, vector<32x32xbf16>, vector<1x32xf32> -> vector<1x32xf32>
    %cst_65 = arith.constant dense<0.000000e+00> : vector<1x32xf32>
    %261 = tpu.matmul %259, %31, %cst_65 {dimension_numbers = #tpu.dot_dimension_numbers<[1], [0], [0], [1], [0, 0, 1, 1], [], []>} : vector<1x32xbf16>, vector<32x32xbf16>, vector<1x32xf32> -> vector<1x32xf32>
    %cst_66 = arith.constant dense<0.000000e+00> : vector<1x32xf32>
    %262 = tpu.matmul %259, %33, %cst_66 {dimension_numbers = #tpu.dot_dimension_numbers<[1], [0], [0], [1], [0, 0, 1, 1], [], []>} : vector<1x32xbf16>, vector<32x32xbf16>, vector<1x32xf32> -> vector<1x32xf32>
    %263 = arith.addf %262, %11 : vector<1x32xf32>
    %264 = vector.extract_strided_slice %17 {offsets = [8, 0], sizes = [1, 32], strides = [1, 1]} : vector<16x32xf32> to vector<1x32xf32>
    %265 = arith.addf %264, %260 : vector<1x32xf32>
    %266 = arith.negf %265 : vector<1x32xf32>
    %267 = math.exp %266 : vector<1x32xf32>
    %cst_67 = arith.constant 1.000000e+00 : f32
    %268 = vector.broadcast %cst_67 : f32 to vector<1x32xf32>
    %269 = arith.addf %268, %267 : vector<1x32xf32>
    %270 = arith.divf %268, %269 : vector<1x32xf32>
    %271 = vector.extract_strided_slice %22 {offsets = [8, 0], sizes = [1, 32], strides = [1, 1]} : vector<16x32xf32> to vector<1x32xf32>
    %272 = arith.addf %271, %261 : vector<1x32xf32>
    %273 = arith.negf %272 : vector<1x32xf32>
    %274 = math.exp %273 : vector<1x32xf32>
    %cst_68 = arith.constant 1.000000e+00 : f32
    %275 = vector.broadcast %cst_68 : f32 to vector<1x32xf32>
    %276 = arith.addf %275, %274 : vector<1x32xf32>
    %277 = arith.divf %275, %276 : vector<1x32xf32>
    %278 = vector.extract_strided_slice %27 {offsets = [8, 0], sizes = [1, 32], strides = [1, 1]} : vector<16x32xf32> to vector<1x32xf32>
    %279 = arith.mulf %270, %263 : vector<1x32xf32>
    %280 = arith.addf %278, %279 : vector<1x32xf32>
    %281 = math.tanh %280 : vector<1x32xf32>
    %cst_69 = arith.constant 1.000000e+00 : f32
    %282 = vector.broadcast %cst_69 : f32 to vector<1x32xf32>
    %283 = arith.subf %282, %277 : vector<1x32xf32>
    %284 = arith.mulf %283, %281 : vector<1x32xf32>
    %285 = arith.mulf %277, %258 : vector<1x32xf32>
    %286 = arith.addf %284, %285 : vector<1x32xf32>
    %287 = arith.truncf %286 : vector<1x32xf32> to vector<1x32xbf16>
    %cst_70 = arith.constant dense<0.000000e+00> : vector<1x32xf32>
    %288 = tpu.matmul %287, %29, %cst_70 {dimension_numbers = #tpu.dot_dimension_numbers<[1], [0], [0], [1], [0, 0, 1, 1], [], []>} : vector<1x32xbf16>, vector<32x32xbf16>, vector<1x32xf32> -> vector<1x32xf32>
    %cst_71 = arith.constant dense<0.000000e+00> : vector<1x32xf32>
    %289 = tpu.matmul %287, %31, %cst_71 {dimension_numbers = #tpu.dot_dimension_numbers<[1], [0], [0], [1], [0, 0, 1, 1], [], []>} : vector<1x32xbf16>, vector<32x32xbf16>, vector<1x32xf32> -> vector<1x32xf32>
    %cst_72 = arith.constant dense<0.000000e+00> : vector<1x32xf32>
    %290 = tpu.matmul %287, %33, %cst_72 {dimension_numbers = #tpu.dot_dimension_numbers<[1], [0], [0], [1], [0, 0, 1, 1], [], []>} : vector<1x32xbf16>, vector<32x32xbf16>, vector<1x32xf32> -> vector<1x32xf32>
    %291 = arith.addf %290, %11 : vector<1x32xf32>
    %292 = vector.extract_strided_slice %17 {offsets = [9, 0], sizes = [1, 32], strides = [1, 1]} : vector<16x32xf32> to vector<1x32xf32>
    %293 = arith.addf %292, %288 : vector<1x32xf32>
    %294 = arith.negf %293 : vector<1x32xf32>
    %295 = math.exp %294 : vector<1x32xf32>
    %cst_73 = arith.constant 1.000000e+00 : f32
    %296 = vector.broadcast %cst_73 : f32 to vector<1x32xf32>
    %297 = arith.addf %296, %295 : vector<1x32xf32>
    %298 = arith.divf %296, %297 : vector<1x32xf32>
    %299 = vector.extract_strided_slice %22 {offsets = [9, 0], sizes = [1, 32], strides = [1, 1]} : vector<16x32xf32> to vector<1x32xf32>
    %300 = arith.addf %299, %289 : vector<1x32xf32>
    %301 = arith.negf %300 : vector<1x32xf32>
    %302 = math.exp %301 : vector<1x32xf32>
    %cst_74 = arith.constant 1.000000e+00 : f32
    %303 = vector.broadcast %cst_74 : f32 to vector<1x32xf32>
    %304 = arith.addf %303, %302 : vector<1x32xf32>
    %305 = arith.divf %303, %304 : vector<1x32xf32>
    %306 = vector.extract_strided_slice %27 {offsets = [9, 0], sizes = [1, 32], strides = [1, 1]} : vector<16x32xf32> to vector<1x32xf32>
    %307 = arith.mulf %298, %291 : vector<1x32xf32>
    %308 = arith.addf %306, %307 : vector<1x32xf32>
    %309 = math.tanh %308 : vector<1x32xf32>
    %cst_75 = arith.constant 1.000000e+00 : f32
    %310 = vector.broadcast %cst_75 : f32 to vector<1x32xf32>
    %311 = arith.subf %310, %305 : vector<1x32xf32>
    %312 = arith.mulf %311, %309 : vector<1x32xf32>
    %313 = arith.mulf %305, %286 : vector<1x32xf32>
    %314 = arith.addf %312, %313 : vector<1x32xf32>
    %315 = arith.truncf %314 : vector<1x32xf32> to vector<1x32xbf16>
    %cst_76 = arith.constant dense<0.000000e+00> : vector<1x32xf32>
    %316 = tpu.matmul %315, %29, %cst_76 {dimension_numbers = #tpu.dot_dimension_numbers<[1], [0], [0], [1], [0, 0, 1, 1], [], []>} : vector<1x32xbf16>, vector<32x32xbf16>, vector<1x32xf32> -> vector<1x32xf32>
    %cst_77 = arith.constant dense<0.000000e+00> : vector<1x32xf32>
    %317 = tpu.matmul %315, %31, %cst_77 {dimension_numbers = #tpu.dot_dimension_numbers<[1], [0], [0], [1], [0, 0, 1, 1], [], []>} : vector<1x32xbf16>, vector<32x32xbf16>, vector<1x32xf32> -> vector<1x32xf32>
    %cst_78 = arith.constant dense<0.000000e+00> : vector<1x32xf32>
    %318 = tpu.matmul %315, %33, %cst_78 {dimension_numbers = #tpu.dot_dimension_numbers<[1], [0], [0], [1], [0, 0, 1, 1], [], []>} : vector<1x32xbf16>, vector<32x32xbf16>, vector<1x32xf32> -> vector<1x32xf32>
    %319 = arith.addf %318, %11 : vector<1x32xf32>
    %320 = vector.extract_strided_slice %17 {offsets = [10, 0], sizes = [1, 32], strides = [1, 1]} : vector<16x32xf32> to vector<1x32xf32>
    %321 = arith.addf %320, %316 : vector<1x32xf32>
    %322 = arith.negf %321 : vector<1x32xf32>
    %323 = math.exp %322 : vector<1x32xf32>
    %cst_79 = arith.constant 1.000000e+00 : f32
    %324 = vector.broadcast %cst_79 : f32 to vector<1x32xf32>
    %325 = arith.addf %324, %323 : vector<1x32xf32>
    %326 = arith.divf %324, %325 : vector<1x32xf32>
    %327 = vector.extract_strided_slice %22 {offsets = [10, 0], sizes = [1, 32], strides = [1, 1]} : vector<16x32xf32> to vector<1x32xf32>
    %328 = arith.addf %327, %317 : vector<1x32xf32>
    %329 = arith.negf %328 : vector<1x32xf32>
    %330 = math.exp %329 : vector<1x32xf32>
    %cst_80 = arith.constant 1.000000e+00 : f32
    %331 = vector.broadcast %cst_80 : f32 to vector<1x32xf32>
    %332 = arith.addf %331, %330 : vector<1x32xf32>
    %333 = arith.divf %331, %332 : vector<1x32xf32>
    %334 = vector.extract_strided_slice %27 {offsets = [10, 0], sizes = [1, 32], strides = [1, 1]} : vector<16x32xf32> to vector<1x32xf32>
    %335 = arith.mulf %326, %319 : vector<1x32xf32>
    %336 = arith.addf %334, %335 : vector<1x32xf32>
    %337 = math.tanh %336 : vector<1x32xf32>
    %cst_81 = arith.constant 1.000000e+00 : f32
    %338 = vector.broadcast %cst_81 : f32 to vector<1x32xf32>
    %339 = arith.subf %338, %333 : vector<1x32xf32>
    %340 = arith.mulf %339, %337 : vector<1x32xf32>
    %341 = arith.mulf %333, %314 : vector<1x32xf32>
    %342 = arith.addf %340, %341 : vector<1x32xf32>
    %343 = arith.truncf %342 : vector<1x32xf32> to vector<1x32xbf16>
    %cst_82 = arith.constant dense<0.000000e+00> : vector<1x32xf32>
    %344 = tpu.matmul %343, %29, %cst_82 {dimension_numbers = #tpu.dot_dimension_numbers<[1], [0], [0], [1], [0, 0, 1, 1], [], []>} : vector<1x32xbf16>, vector<32x32xbf16>, vector<1x32xf32> -> vector<1x32xf32>
    %cst_83 = arith.constant dense<0.000000e+00> : vector<1x32xf32>
    %345 = tpu.matmul %343, %31, %cst_83 {dimension_numbers = #tpu.dot_dimension_numbers<[1], [0], [0], [1], [0, 0, 1, 1], [], []>} : vector<1x32xbf16>, vector<32x32xbf16>, vector<1x32xf32> -> vector<1x32xf32>
    %cst_84 = arith.constant dense<0.000000e+00> : vector<1x32xf32>
    %346 = tpu.matmul %343, %33, %cst_84 {dimension_numbers = #tpu.dot_dimension_numbers<[1], [0], [0], [1], [0, 0, 1, 1], [], []>} : vector<1x32xbf16>, vector<32x32xbf16>, vector<1x32xf32> -> vector<1x32xf32>
    %347 = arith.addf %346, %11 : vector<1x32xf32>
    %348 = vector.extract_strided_slice %17 {offsets = [11, 0], sizes = [1, 32], strides = [1, 1]} : vector<16x32xf32> to vector<1x32xf32>
    %349 = arith.addf %348, %344 : vector<1x32xf32>
    %350 = arith.negf %349 : vector<1x32xf32>
    %351 = math.exp %350 : vector<1x32xf32>
    %cst_85 = arith.constant 1.000000e+00 : f32
    %352 = vector.broadcast %cst_85 : f32 to vector<1x32xf32>
    %353 = arith.addf %352, %351 : vector<1x32xf32>
    %354 = arith.divf %352, %353 : vector<1x32xf32>
    %355 = vector.extract_strided_slice %22 {offsets = [11, 0], sizes = [1, 32], strides = [1, 1]} : vector<16x32xf32> to vector<1x32xf32>
    %356 = arith.addf %355, %345 : vector<1x32xf32>
    %357 = arith.negf %356 : vector<1x32xf32>
    %358 = math.exp %357 : vector<1x32xf32>
    %cst_86 = arith.constant 1.000000e+00 : f32
    %359 = vector.broadcast %cst_86 : f32 to vector<1x32xf32>
    %360 = arith.addf %359, %358 : vector<1x32xf32>
    %361 = arith.divf %359, %360 : vector<1x32xf32>
    %362 = vector.extract_strided_slice %27 {offsets = [11, 0], sizes = [1, 32], strides = [1, 1]} : vector<16x32xf32> to vector<1x32xf32>
    %363 = arith.mulf %354, %347 : vector<1x32xf32>
    %364 = arith.addf %362, %363 : vector<1x32xf32>
    %365 = math.tanh %364 : vector<1x32xf32>
    %cst_87 = arith.constant 1.000000e+00 : f32
    %366 = vector.broadcast %cst_87 : f32 to vector<1x32xf32>
    %367 = arith.subf %366, %361 : vector<1x32xf32>
    %368 = arith.mulf %367, %365 : vector<1x32xf32>
    %369 = arith.mulf %361, %342 : vector<1x32xf32>
    %370 = arith.addf %368, %369 : vector<1x32xf32>
    %371 = arith.truncf %370 : vector<1x32xf32> to vector<1x32xbf16>
    %cst_88 = arith.constant dense<0.000000e+00> : vector<1x32xf32>
    %372 = tpu.matmul %371, %29, %cst_88 {dimension_numbers = #tpu.dot_dimension_numbers<[1], [0], [0], [1], [0, 0, 1, 1], [], []>} : vector<1x32xbf16>, vector<32x32xbf16>, vector<1x32xf32> -> vector<1x32xf32>
    %cst_89 = arith.constant dense<0.000000e+00> : vector<1x32xf32>
    %373 = tpu.matmul %371, %31, %cst_89 {dimension_numbers = #tpu.dot_dimension_numbers<[1], [0], [0], [1], [0, 0, 1, 1], [], []>} : vector<1x32xbf16>, vector<32x32xbf16>, vector<1x32xf32> -> vector<1x32xf32>
    %cst_90 = arith.constant dense<0.000000e+00> : vector<1x32xf32>
    %374 = tpu.matmul %371, %33, %cst_90 {dimension_numbers = #tpu.dot_dimension_numbers<[1], [0], [0], [1], [0, 0, 1, 1], [], []>} : vector<1x32xbf16>, vector<32x32xbf16>, vector<1x32xf32> -> vector<1x32xf32>
    %375 = arith.addf %374, %11 : vector<1x32xf32>
    %376 = vector.extract_strided_slice %17 {offsets = [12, 0], sizes = [1, 32], strides = [1, 1]} : vector<16x32xf32> to vector<1x32xf32>
    %377 = arith.addf %376, %372 : vector<1x32xf32>
    %378 = arith.negf %377 : vector<1x32xf32>
    %379 = math.exp %378 : vector<1x32xf32>
    %cst_91 = arith.constant 1.000000e+00 : f32
    %380 = vector.broadcast %cst_91 : f32 to vector<1x32xf32>
    %381 = arith.addf %380, %379 : vector<1x32xf32>
    %382 = arith.divf %380, %381 : vector<1x32xf32>
    %383 = vector.extract_strided_slice %22 {offsets = [12, 0], sizes = [1, 32], strides = [1, 1]} : vector<16x32xf32> to vector<1x32xf32>
    %384 = arith.addf %383, %373 : vector<1x32xf32>
    %385 = arith.negf %384 : vector<1x32xf32>
    %386 = math.exp %385 : vector<1x32xf32>
    %cst_92 = arith.constant 1.000000e+00 : f32
    %387 = vector.broadcast %cst_92 : f32 to vector<1x32xf32>
    %388 = arith.addf %387, %386 : vector<1x32xf32>
    %389 = arith.divf %387, %388 : vector<1x32xf32>
    %390 = vector.extract_strided_slice %27 {offsets = [12, 0], sizes = [1, 32], strides = [1, 1]} : vector<16x32xf32> to vector<1x32xf32>
    %391 = arith.mulf %382, %375 : vector<1x32xf32>
    %392 = arith.addf %390, %391 : vector<1x32xf32>
    %393 = math.tanh %392 : vector<1x32xf32>
    %cst_93 = arith.constant 1.000000e+00 : f32
    %394 = vector.broadcast %cst_93 : f32 to vector<1x32xf32>
    %395 = arith.subf %394, %389 : vector<1x32xf32>
    %396 = arith.mulf %395, %393 : vector<1x32xf32>
    %397 = arith.mulf %389, %370 : vector<1x32xf32>
    %398 = arith.addf %396, %397 : vector<1x32xf32>
    %399 = arith.truncf %398 : vector<1x32xf32> to vector<1x32xbf16>
    %cst_94 = arith.constant dense<0.000000e+00> : vector<1x32xf32>
    %400 = tpu.matmul %399, %29, %cst_94 {dimension_numbers = #tpu.dot_dimension_numbers<[1], [0], [0], [1], [0, 0, 1, 1], [], []>} : vector<1x32xbf16>, vector<32x32xbf16>, vector<1x32xf32> -> vector<1x32xf32>
    %cst_95 = arith.constant dense<0.000000e+00> : vector<1x32xf32>
    %401 = tpu.matmul %399, %31, %cst_95 {dimension_numbers = #tpu.dot_dimension_numbers<[1], [0], [0], [1], [0, 0, 1, 1], [], []>} : vector<1x32xbf16>, vector<32x32xbf16>, vector<1x32xf32> -> vector<1x32xf32>
    %cst_96 = arith.constant dense<0.000000e+00> : vector<1x32xf32>
    %402 = tpu.matmul %399, %33, %cst_96 {dimension_numbers = #tpu.dot_dimension_numbers<[1], [0], [0], [1], [0, 0, 1, 1], [], []>} : vector<1x32xbf16>, vector<32x32xbf16>, vector<1x32xf32> -> vector<1x32xf32>
    %403 = arith.addf %402, %11 : vector<1x32xf32>
    %404 = vector.extract_strided_slice %17 {offsets = [13, 0], sizes = [1, 32], strides = [1, 1]} : vector<16x32xf32> to vector<1x32xf32>
    %405 = arith.addf %404, %400 : vector<1x32xf32>
    %406 = arith.negf %405 : vector<1x32xf32>
    %407 = math.exp %406 : vector<1x32xf32>
    %cst_97 = arith.constant 1.000000e+00 : f32
    %408 = vector.broadcast %cst_97 : f32 to vector<1x32xf32>
    %409 = arith.addf %408, %407 : vector<1x32xf32>
    %410 = arith.divf %408, %409 : vector<1x32xf32>
    %411 = vector.extract_strided_slice %22 {offsets = [13, 0], sizes = [1, 32], strides = [1, 1]} : vector<16x32xf32> to vector<1x32xf32>
    %412 = arith.addf %411, %401 : vector<1x32xf32>
    %413 = arith.negf %412 : vector<1x32xf32>
    %414 = math.exp %413 : vector<1x32xf32>
    %cst_98 = arith.constant 1.000000e+00 : f32
    %415 = vector.broadcast %cst_98 : f32 to vector<1x32xf32>
    %416 = arith.addf %415, %414 : vector<1x32xf32>
    %417 = arith.divf %415, %416 : vector<1x32xf32>
    %418 = vector.extract_strided_slice %27 {offsets = [13, 0], sizes = [1, 32], strides = [1, 1]} : vector<16x32xf32> to vector<1x32xf32>
    %419 = arith.mulf %410, %403 : vector<1x32xf32>
    %420 = arith.addf %418, %419 : vector<1x32xf32>
    %421 = math.tanh %420 : vector<1x32xf32>
    %cst_99 = arith.constant 1.000000e+00 : f32
    %422 = vector.broadcast %cst_99 : f32 to vector<1x32xf32>
    %423 = arith.subf %422, %417 : vector<1x32xf32>
    %424 = arith.mulf %423, %421 : vector<1x32xf32>
    %425 = arith.mulf %417, %398 : vector<1x32xf32>
    %426 = arith.addf %424, %425 : vector<1x32xf32>
    %427 = arith.truncf %426 : vector<1x32xf32> to vector<1x32xbf16>
    %cst_100 = arith.constant dense<0.000000e+00> : vector<1x32xf32>
    %428 = tpu.matmul %427, %29, %cst_100 {dimension_numbers = #tpu.dot_dimension_numbers<[1], [0], [0], [1], [0, 0, 1, 1], [], []>} : vector<1x32xbf16>, vector<32x32xbf16>, vector<1x32xf32> -> vector<1x32xf32>
    %cst_101 = arith.constant dense<0.000000e+00> : vector<1x32xf32>
    %429 = tpu.matmul %427, %31, %cst_101 {dimension_numbers = #tpu.dot_dimension_numbers<[1], [0], [0], [1], [0, 0, 1, 1], [], []>} : vector<1x32xbf16>, vector<32x32xbf16>, vector<1x32xf32> -> vector<1x32xf32>
    %cst_102 = arith.constant dense<0.000000e+00> : vector<1x32xf32>
    %430 = tpu.matmul %427, %33, %cst_102 {dimension_numbers = #tpu.dot_dimension_numbers<[1], [0], [0], [1], [0, 0, 1, 1], [], []>} : vector<1x32xbf16>, vector<32x32xbf16>, vector<1x32xf32> -> vector<1x32xf32>
    %431 = arith.addf %430, %11 : vector<1x32xf32>
    %432 = vector.extract_strided_slice %17 {offsets = [14, 0], sizes = [1, 32], strides = [1, 1]} : vector<16x32xf32> to vector<1x32xf32>
    %433 = arith.addf %432, %428 : vector<1x32xf32>
    %434 = arith.negf %433 : vector<1x32xf32>
    %435 = math.exp %434 : vector<1x32xf32>
    %cst_103 = arith.constant 1.000000e+00 : f32
    %436 = vector.broadcast %cst_103 : f32 to vector<1x32xf32>
    %437 = arith.addf %436, %435 : vector<1x32xf32>
    %438 = arith.divf %436, %437 : vector<1x32xf32>
    %439 = vector.extract_strided_slice %22 {offsets = [14, 0], sizes = [1, 32], strides = [1, 1]} : vector<16x32xf32> to vector<1x32xf32>
    %440 = arith.addf %439, %429 : vector<1x32xf32>
    %441 = arith.negf %440 : vector<1x32xf32>
    %442 = math.exp %441 : vector<1x32xf32>
    %cst_104 = arith.constant 1.000000e+00 : f32
    %443 = vector.broadcast %cst_104 : f32 to vector<1x32xf32>
    %444 = arith.addf %443, %442 : vector<1x32xf32>
    %445 = arith.divf %443, %444 : vector<1x32xf32>
    %446 = vector.extract_strided_slice %27 {offsets = [14, 0], sizes = [1, 32], strides = [1, 1]} : vector<16x32xf32> to vector<1x32xf32>
    %447 = arith.mulf %438, %431 : vector<1x32xf32>
    %448 = arith.addf %446, %447 : vector<1x32xf32>
    %449 = math.tanh %448 : vector<1x32xf32>
    %cst_105 = arith.constant 1.000000e+00 : f32
    %450 = vector.broadcast %cst_105 : f32 to vector<1x32xf32>
    %451 = arith.subf %450, %445 : vector<1x32xf32>
    %452 = arith.mulf %451, %449 : vector<1x32xf32>
    %453 = arith.mulf %445, %426 : vector<1x32xf32>
    %454 = arith.addf %452, %453 : vector<1x32xf32>
    %455 = arith.truncf %454 : vector<1x32xf32> to vector<1x32xbf16>
    %cst_106 = arith.constant dense<0.000000e+00> : vector<1x32xf32>
    %456 = tpu.matmul %455, %29, %cst_106 {dimension_numbers = #tpu.dot_dimension_numbers<[1], [0], [0], [1], [0, 0, 1, 1], [], []>} : vector<1x32xbf16>, vector<32x32xbf16>, vector<1x32xf32> -> vector<1x32xf32>
    %cst_107 = arith.constant dense<0.000000e+00> : vector<1x32xf32>
    %457 = tpu.matmul %455, %31, %cst_107 {dimension_numbers = #tpu.dot_dimension_numbers<[1], [0], [0], [1], [0, 0, 1, 1], [], []>} : vector<1x32xbf16>, vector<32x32xbf16>, vector<1x32xf32> -> vector<1x32xf32>
    %cst_108 = arith.constant dense<0.000000e+00> : vector<1x32xf32>
    %458 = tpu.matmul %455, %33, %cst_108 {dimension_numbers = #tpu.dot_dimension_numbers<[1], [0], [0], [1], [0, 0, 1, 1], [], []>} : vector<1x32xbf16>, vector<32x32xbf16>, vector<1x32xf32> -> vector<1x32xf32>
    %459 = arith.addf %458, %11 : vector<1x32xf32>
    %460 = vector.extract_strided_slice %17 {offsets = [15, 0], sizes = [1, 32], strides = [1, 1]} : vector<16x32xf32> to vector<1x32xf32>
    %461 = arith.addf %460, %456 : vector<1x32xf32>
    %462 = arith.negf %461 : vector<1x32xf32>
    %463 = math.exp %462 : vector<1x32xf32>
    %cst_109 = arith.constant 1.000000e+00 : f32
    %464 = vector.broadcast %cst_109 : f32 to vector<1x32xf32>
    %465 = arith.addf %464, %463 : vector<1x32xf32>
    %466 = arith.divf %464, %465 : vector<1x32xf32>
    %467 = vector.extract_strided_slice %22 {offsets = [15, 0], sizes = [1, 32], strides = [1, 1]} : vector<16x32xf32> to vector<1x32xf32>
    %468 = arith.addf %467, %457 : vector<1x32xf32>
    %469 = arith.negf %468 : vector<1x32xf32>
    %470 = math.exp %469 : vector<1x32xf32>
    %cst_110 = arith.constant 1.000000e+00 : f32
    %471 = vector.broadcast %cst_110 : f32 to vector<1x32xf32>
    %472 = arith.addf %471, %470 : vector<1x32xf32>
    %473 = arith.divf %471, %472 : vector<1x32xf32>
    %474 = vector.extract_strided_slice %27 {offsets = [15, 0], sizes = [1, 32], strides = [1, 1]} : vector<16x32xf32> to vector<1x32xf32>
    %475 = arith.mulf %466, %459 : vector<1x32xf32>
    %476 = arith.addf %474, %475 : vector<1x32xf32>
    %477 = math.tanh %476 : vector<1x32xf32>
    %cst_111 = arith.constant 1.000000e+00 : f32
    %478 = vector.broadcast %cst_111 : f32 to vector<1x32xf32>
    %479 = arith.subf %478, %473 : vector<1x32xf32>
    %480 = arith.mulf %479, %477 : vector<1x32xf32>
    %481 = arith.mulf %473, %454 : vector<1x32xf32>
    %482 = arith.addf %480, %481 : vector<1x32xf32>
    %483 = tpu.concatenate %62, %90, %118, %146, %174, %202, %230, %258, %286, %314, %342, %370, %398, %426, %454, %482 in 0 : vector<1x32xf32>, vector<1x32xf32>, vector<1x32xf32>, vector<1x32xf32>, vector<1x32xf32>, vector<1x32xf32>, vector<1x32xf32>, vector<1x32xf32>, vector<1x32xf32>, vector<1x32xf32>, vector<1x32xf32>, vector<1x32xf32>, vector<1x32xf32>, vector<1x32xf32>, vector<1x32xf32>, vector<1x32xf32> -> vector<16x32xf32>
    %c0_112 = arith.constant 0 : index
    %c0_113 = arith.constant 0 : index
    %c0_114 = arith.constant 0 : index
    %484 = vector.load %arg7[%c0_112, %c0_113, %c0_114] : memref<3x32x32xbf16, #tpu.memory_space<vmem>>, vector<3x32x32xbf16>
    %c0_115 = arith.constant 0 : index
    %c0_116 = arith.constant 0 : index
    %c0_117 = arith.constant 0 : index
    %485 = vector.load %arg8[%c0_115, %c0_116, %c0_117] : memref<3x32x32xbf16, #tpu.memory_space<vmem>>, vector<3x32x32xbf16>
    %c0_118 = arith.constant 0 : index
    %c0_119 = arith.constant 0 : index
    %486 = vector.load %arg9[%c0_118, %c0_119] : memref<4x32xf32, #tpu.memory_space<vmem>>, vector<4x32xf32>
    %487 = vector.extract_strided_slice %486 {offsets = [0, 0], sizes = [1, 32], strides = [1, 1]} : vector<4x32xf32> to vector<1x32xf32>
    %488 = vector.extract_strided_slice %486 {offsets = [1, 0], sizes = [1, 32], strides = [1, 1]} : vector<4x32xf32> to vector<1x32xf32>
    %489 = vector.extract_strided_slice %486 {offsets = [2, 0], sizes = [1, 32], strides = [1, 1]} : vector<4x32xf32> to vector<1x32xf32>
    %490 = vector.extract_strided_slice %486 {offsets = [3, 0], sizes = [1, 32], strides = [1, 1]} : vector<4x32xf32> to vector<1x32xf32>
    %491 = arith.truncf %483 : vector<16x32xf32> to vector<16x32xbf16>
    %492 = vector.extract_strided_slice %484 {offsets = [0, 0, 0], sizes = [1, 32, 32], strides = [1, 1, 1]} : vector<3x32x32xbf16> to vector<1x32x32xbf16>
    %493 = vector.shape_cast %492 : vector<1x32x32xbf16> to vector<32x32xbf16>
    %cst_120 = arith.constant dense<0.000000e+00> : vector<16x32xf32>
    %494 = tpu.matmul %491, %493, %cst_120 {dimension_numbers = #tpu.dot_dimension_numbers<[1], [0], [0], [1], [0, 0, 1, 1], [], []>} : vector<16x32xbf16>, vector<32x32xbf16>, vector<16x32xf32> -> vector<16x32xf32>
    %495 = vector.broadcast %487 : vector<1x32xf32> to vector<16x32xf32>
    %496 = arith.addf %494, %495 : vector<16x32xf32>
    %497 = vector.extract_strided_slice %484 {offsets = [1, 0, 0], sizes = [1, 32, 32], strides = [1, 1, 1]} : vector<3x32x32xbf16> to vector<1x32x32xbf16>
    %498 = vector.shape_cast %497 : vector<1x32x32xbf16> to vector<32x32xbf16>
    %cst_121 = arith.constant dense<0.000000e+00> : vector<16x32xf32>
    %499 = tpu.matmul %491, %498, %cst_121 {dimension_numbers = #tpu.dot_dimension_numbers<[1], [0], [0], [1], [0, 0, 1, 1], [], []>} : vector<16x32xbf16>, vector<32x32xbf16>, vector<16x32xf32> -> vector<16x32xf32>
    %500 = vector.broadcast %488 : vector<1x32xf32> to vector<16x32xf32>
    %501 = arith.addf %499, %500 : vector<16x32xf32>
    %502 = vector.extract_strided_slice %484 {offsets = [2, 0, 0], sizes = [1, 32, 32], strides = [1, 1, 1]} : vector<3x32x32xbf16> to vector<1x32x32xbf16>
    %503 = vector.shape_cast %502 : vector<1x32x32xbf16> to vector<32x32xbf16>
    %cst_122 = arith.constant dense<0.000000e+00> : vector<16x32xf32>
    %504 = tpu.matmul %491, %503, %cst_122 {dimension_numbers = #tpu.dot_dimension_numbers<[1], [0], [0], [1], [0, 0, 1, 1], [], []>} : vector<16x32xbf16>, vector<32x32xbf16>, vector<16x32xf32> -> vector<16x32xf32>
    %505 = vector.broadcast %489 : vector<1x32xf32> to vector<16x32xf32>
    %506 = arith.addf %504, %505 : vector<16x32xf32>
    %507 = vector.extract_strided_slice %485 {offsets = [0, 0, 0], sizes = [1, 32, 32], strides = [1, 1, 1]} : vector<3x32x32xbf16> to vector<1x32x32xbf16>
    %508 = vector.shape_cast %507 : vector<1x32x32xbf16> to vector<32x32xbf16>
    %509 = vector.extract_strided_slice %485 {offsets = [1, 0, 0], sizes = [1, 32, 32], strides = [1, 1, 1]} : vector<3x32x32xbf16> to vector<1x32x32xbf16>
    %510 = vector.shape_cast %509 : vector<1x32x32xbf16> to vector<32x32xbf16>
    %511 = vector.extract_strided_slice %485 {offsets = [2, 0, 0], sizes = [1, 32, 32], strides = [1, 1, 1]} : vector<3x32x32xbf16> to vector<1x32x32xbf16>
    %512 = vector.shape_cast %511 : vector<1x32x32xbf16> to vector<32x32xbf16>
    %cst_123 = arith.constant 0.000000e+00 : f32
    %513 = vector.broadcast %cst_123 : f32 to vector<1x32xf32>
    %514 = arith.truncf %513 : vector<1x32xf32> to vector<1x32xbf16>
    %cst_124 = arith.constant dense<0.000000e+00> : vector<1x32xf32>
    %515 = tpu.matmul %514, %508, %cst_124 {dimension_numbers = #tpu.dot_dimension_numbers<[1], [0], [0], [1], [0, 0, 1, 1], [], []>} : vector<1x32xbf16>, vector<32x32xbf16>, vector<1x32xf32> -> vector<1x32xf32>
    %cst_125 = arith.constant dense<0.000000e+00> : vector<1x32xf32>
    %516 = tpu.matmul %514, %510, %cst_125 {dimension_numbers = #tpu.dot_dimension_numbers<[1], [0], [0], [1], [0, 0, 1, 1], [], []>} : vector<1x32xbf16>, vector<32x32xbf16>, vector<1x32xf32> -> vector<1x32xf32>
    %cst_126 = arith.constant dense<0.000000e+00> : vector<1x32xf32>
    %517 = tpu.matmul %514, %512, %cst_126 {dimension_numbers = #tpu.dot_dimension_numbers<[1], [0], [0], [1], [0, 0, 1, 1], [], []>} : vector<1x32xbf16>, vector<32x32xbf16>, vector<1x32xf32> -> vector<1x32xf32>
    %518 = arith.addf %517, %490 : vector<1x32xf32>
    %519 = vector.extract_strided_slice %496 {offsets = [0, 0], sizes = [1, 32], strides = [1, 1]} : vector<16x32xf32> to vector<1x32xf32>
    %520 = arith.addf %519, %515 : vector<1x32xf32>
    %521 = arith.negf %520 : vector<1x32xf32>
    %522 = math.exp %521 : vector<1x32xf32>
    %cst_127 = arith.constant 1.000000e+00 : f32
    %523 = vector.broadcast %cst_127 : f32 to vector<1x32xf32>
    %524 = arith.addf %523, %522 : vector<1x32xf32>
    %525 = arith.divf %523, %524 : vector<1x32xf32>
    %526 = vector.extract_strided_slice %501 {offsets = [0, 0], sizes = [1, 32], strides = [1, 1]} : vector<16x32xf32> to vector<1x32xf32>
    %527 = arith.addf %526, %516 : vector<1x32xf32>
    %528 = arith.negf %527 : vector<1x32xf32>
    %529 = math.exp %528 : vector<1x32xf32>
    %cst_128 = arith.constant 1.000000e+00 : f32
    %530 = vector.broadcast %cst_128 : f32 to vector<1x32xf32>
    %531 = arith.addf %530, %529 : vector<1x32xf32>
    %532 = arith.divf %530, %531 : vector<1x32xf32>
    %533 = vector.extract_strided_slice %506 {offsets = [0, 0], sizes = [1, 32], strides = [1, 1]} : vector<16x32xf32> to vector<1x32xf32>
    %534 = arith.mulf %525, %518 : vector<1x32xf32>
    %535 = arith.addf %533, %534 : vector<1x32xf32>
    %536 = math.tanh %535 : vector<1x32xf32>
    %cst_129 = arith.constant 1.000000e+00 : f32
    %537 = vector.broadcast %cst_129 : f32 to vector<1x32xf32>
    %538 = arith.subf %537, %532 : vector<1x32xf32>
    %539 = arith.mulf %538, %536 : vector<1x32xf32>
    %540 = arith.mulf %532, %513 : vector<1x32xf32>
    %541 = arith.addf %539, %540 : vector<1x32xf32>
    %542 = arith.truncf %541 : vector<1x32xf32> to vector<1x32xbf16>
    %cst_130 = arith.constant dense<0.000000e+00> : vector<1x32xf32>
    %543 = tpu.matmul %542, %508, %cst_130 {dimension_numbers = #tpu.dot_dimension_numbers<[1], [0], [0], [1], [0, 0, 1, 1], [], []>} : vector<1x32xbf16>, vector<32x32xbf16>, vector<1x32xf32> -> vector<1x32xf32>
    %cst_131 = arith.constant dense<0.000000e+00> : vector<1x32xf32>
    %544 = tpu.matmul %542, %510, %cst_131 {dimension_numbers = #tpu.dot_dimension_numbers<[1], [0], [0], [1], [0, 0, 1, 1], [], []>} : vector<1x32xbf16>, vector<32x32xbf16>, vector<1x32xf32> -> vector<1x32xf32>
    %cst_132 = arith.constant dense<0.000000e+00> : vector<1x32xf32>
    %545 = tpu.matmul %542, %512, %cst_132 {dimension_numbers = #tpu.dot_dimension_numbers<[1], [0], [0], [1], [0, 0, 1, 1], [], []>} : vector<1x32xbf16>, vector<32x32xbf16>, vector<1x32xf32> -> vector<1x32xf32>
    %546 = arith.addf %545, %490 : vector<1x32xf32>
    %547 = vector.extract_strided_slice %496 {offsets = [1, 0], sizes = [1, 32], strides = [1, 1]} : vector<16x32xf32> to vector<1x32xf32>
    %548 = arith.addf %547, %543 : vector<1x32xf32>
    %549 = arith.negf %548 : vector<1x32xf32>
    %550 = math.exp %549 : vector<1x32xf32>
    %cst_133 = arith.constant 1.000000e+00 : f32
    %551 = vector.broadcast %cst_133 : f32 to vector<1x32xf32>
    %552 = arith.addf %551, %550 : vector<1x32xf32>
    %553 = arith.divf %551, %552 : vector<1x32xf32>
    %554 = vector.extract_strided_slice %501 {offsets = [1, 0], sizes = [1, 32], strides = [1, 1]} : vector<16x32xf32> to vector<1x32xf32>
    %555 = arith.addf %554, %544 : vector<1x32xf32>
    %556 = arith.negf %555 : vector<1x32xf32>
    %557 = math.exp %556 : vector<1x32xf32>
    %cst_134 = arith.constant 1.000000e+00 : f32
    %558 = vector.broadcast %cst_134 : f32 to vector<1x32xf32>
    %559 = arith.addf %558, %557 : vector<1x32xf32>
    %560 = arith.divf %558, %559 : vector<1x32xf32>
    %561 = vector.extract_strided_slice %506 {offsets = [1, 0], sizes = [1, 32], strides = [1, 1]} : vector<16x32xf32> to vector<1x32xf32>
    %562 = arith.mulf %553, %546 : vector<1x32xf32>
    %563 = arith.addf %561, %562 : vector<1x32xf32>
    %564 = math.tanh %563 : vector<1x32xf32>
    %cst_135 = arith.constant 1.000000e+00 : f32
    %565 = vector.broadcast %cst_135 : f32 to vector<1x32xf32>
    %566 = arith.subf %565, %560 : vector<1x32xf32>
    %567 = arith.mulf %566, %564 : vector<1x32xf32>
    %568 = arith.mulf %560, %541 : vector<1x32xf32>
    %569 = arith.addf %567, %568 : vector<1x32xf32>
    %570 = arith.truncf %569 : vector<1x32xf32> to vector<1x32xbf16>
    %cst_136 = arith.constant dense<0.000000e+00> : vector<1x32xf32>
    %571 = tpu.matmul %570, %508, %cst_136 {dimension_numbers = #tpu.dot_dimension_numbers<[1], [0], [0], [1], [0, 0, 1, 1], [], []>} : vector<1x32xbf16>, vector<32x32xbf16>, vector<1x32xf32> -> vector<1x32xf32>
    %cst_137 = arith.constant dense<0.000000e+00> : vector<1x32xf32>
    %572 = tpu.matmul %570, %510, %cst_137 {dimension_numbers = #tpu.dot_dimension_numbers<[1], [0], [0], [1], [0, 0, 1, 1], [], []>} : vector<1x32xbf16>, vector<32x32xbf16>, vector<1x32xf32> -> vector<1x32xf32>
    %cst_138 = arith.constant dense<0.000000e+00> : vector<1x32xf32>
    %573 = tpu.matmul %570, %512, %cst_138 {dimension_numbers = #tpu.dot_dimension_numbers<[1], [0], [0], [1], [0, 0, 1, 1], [], []>} : vector<1x32xbf16>, vector<32x32xbf16>, vector<1x32xf32> -> vector<1x32xf32>
    %574 = arith.addf %573, %490 : vector<1x32xf32>
    %575 = vector.extract_strided_slice %496 {offsets = [2, 0], sizes = [1, 32], strides = [1, 1]} : vector<16x32xf32> to vector<1x32xf32>
    %576 = arith.addf %575, %571 : vector<1x32xf32>
    %577 = arith.negf %576 : vector<1x32xf32>
    %578 = math.exp %577 : vector<1x32xf32>
    %cst_139 = arith.constant 1.000000e+00 : f32
    %579 = vector.broadcast %cst_139 : f32 to vector<1x32xf32>
    %580 = arith.addf %579, %578 : vector<1x32xf32>
    %581 = arith.divf %579, %580 : vector<1x32xf32>
    %582 = vector.extract_strided_slice %501 {offsets = [2, 0], sizes = [1, 32], strides = [1, 1]} : vector<16x32xf32> to vector<1x32xf32>
    %583 = arith.addf %582, %572 : vector<1x32xf32>
    %584 = arith.negf %583 : vector<1x32xf32>
    %585 = math.exp %584 : vector<1x32xf32>
    %cst_140 = arith.constant 1.000000e+00 : f32
    %586 = vector.broadcast %cst_140 : f32 to vector<1x32xf32>
    %587 = arith.addf %586, %585 : vector<1x32xf32>
    %588 = arith.divf %586, %587 : vector<1x32xf32>
    %589 = vector.extract_strided_slice %506 {offsets = [2, 0], sizes = [1, 32], strides = [1, 1]} : vector<16x32xf32> to vector<1x32xf32>
    %590 = arith.mulf %581, %574 : vector<1x32xf32>
    %591 = arith.addf %589, %590 : vector<1x32xf32>
    %592 = math.tanh %591 : vector<1x32xf32>
    %cst_141 = arith.constant 1.000000e+00 : f32
    %593 = vector.broadcast %cst_141 : f32 to vector<1x32xf32>
    %594 = arith.subf %593, %588 : vector<1x32xf32>
    %595 = arith.mulf %594, %592 : vector<1x32xf32>
    %596 = arith.mulf %588, %569 : vector<1x32xf32>
    %597 = arith.addf %595, %596 : vector<1x32xf32>
    %598 = arith.truncf %597 : vector<1x32xf32> to vector<1x32xbf16>
    %cst_142 = arith.constant dense<0.000000e+00> : vector<1x32xf32>
    %599 = tpu.matmul %598, %508, %cst_142 {dimension_numbers = #tpu.dot_dimension_numbers<[1], [0], [0], [1], [0, 0, 1, 1], [], []>} : vector<1x32xbf16>, vector<32x32xbf16>, vector<1x32xf32> -> vector<1x32xf32>
    %cst_143 = arith.constant dense<0.000000e+00> : vector<1x32xf32>
    %600 = tpu.matmul %598, %510, %cst_143 {dimension_numbers = #tpu.dot_dimension_numbers<[1], [0], [0], [1], [0, 0, 1, 1], [], []>} : vector<1x32xbf16>, vector<32x32xbf16>, vector<1x32xf32> -> vector<1x32xf32>
    %cst_144 = arith.constant dense<0.000000e+00> : vector<1x32xf32>
    %601 = tpu.matmul %598, %512, %cst_144 {dimension_numbers = #tpu.dot_dimension_numbers<[1], [0], [0], [1], [0, 0, 1, 1], [], []>} : vector<1x32xbf16>, vector<32x32xbf16>, vector<1x32xf32> -> vector<1x32xf32>
    %602 = arith.addf %601, %490 : vector<1x32xf32>
    %603 = vector.extract_strided_slice %496 {offsets = [3, 0], sizes = [1, 32], strides = [1, 1]} : vector<16x32xf32> to vector<1x32xf32>
    %604 = arith.addf %603, %599 : vector<1x32xf32>
    %605 = arith.negf %604 : vector<1x32xf32>
    %606 = math.exp %605 : vector<1x32xf32>
    %cst_145 = arith.constant 1.000000e+00 : f32
    %607 = vector.broadcast %cst_145 : f32 to vector<1x32xf32>
    %608 = arith.addf %607, %606 : vector<1x32xf32>
    %609 = arith.divf %607, %608 : vector<1x32xf32>
    %610 = vector.extract_strided_slice %501 {offsets = [3, 0], sizes = [1, 32], strides = [1, 1]} : vector<16x32xf32> to vector<1x32xf32>
    %611 = arith.addf %610, %600 : vector<1x32xf32>
    %612 = arith.negf %611 : vector<1x32xf32>
    %613 = math.exp %612 : vector<1x32xf32>
    %cst_146 = arith.constant 1.000000e+00 : f32
    %614 = vector.broadcast %cst_146 : f32 to vector<1x32xf32>
    %615 = arith.addf %614, %613 : vector<1x32xf32>
    %616 = arith.divf %614, %615 : vector<1x32xf32>
    %617 = vector.extract_strided_slice %506 {offsets = [3, 0], sizes = [1, 32], strides = [1, 1]} : vector<16x32xf32> to vector<1x32xf32>
    %618 = arith.mulf %609, %602 : vector<1x32xf32>
    %619 = arith.addf %617, %618 : vector<1x32xf32>
    %620 = math.tanh %619 : vector<1x32xf32>
    %cst_147 = arith.constant 1.000000e+00 : f32
    %621 = vector.broadcast %cst_147 : f32 to vector<1x32xf32>
    %622 = arith.subf %621, %616 : vector<1x32xf32>
    %623 = arith.mulf %622, %620 : vector<1x32xf32>
    %624 = arith.mulf %616, %597 : vector<1x32xf32>
    %625 = arith.addf %623, %624 : vector<1x32xf32>
    %626 = arith.truncf %625 : vector<1x32xf32> to vector<1x32xbf16>
    %cst_148 = arith.constant dense<0.000000e+00> : vector<1x32xf32>
    %627 = tpu.matmul %626, %508, %cst_148 {dimension_numbers = #tpu.dot_dimension_numbers<[1], [0], [0], [1], [0, 0, 1, 1], [], []>} : vector<1x32xbf16>, vector<32x32xbf16>, vector<1x32xf32> -> vector<1x32xf32>
    %cst_149 = arith.constant dense<0.000000e+00> : vector<1x32xf32>
    %628 = tpu.matmul %626, %510, %cst_149 {dimension_numbers = #tpu.dot_dimension_numbers<[1], [0], [0], [1], [0, 0, 1, 1], [], []>} : vector<1x32xbf16>, vector<32x32xbf16>, vector<1x32xf32> -> vector<1x32xf32>
    %cst_150 = arith.constant dense<0.000000e+00> : vector<1x32xf32>
    %629 = tpu.matmul %626, %512, %cst_150 {dimension_numbers = #tpu.dot_dimension_numbers<[1], [0], [0], [1], [0, 0, 1, 1], [], []>} : vector<1x32xbf16>, vector<32x32xbf16>, vector<1x32xf32> -> vector<1x32xf32>
    %630 = arith.addf %629, %490 : vector<1x32xf32>
    %631 = vector.extract_strided_slice %496 {offsets = [4, 0], sizes = [1, 32], strides = [1, 1]} : vector<16x32xf32> to vector<1x32xf32>
    %632 = arith.addf %631, %627 : vector<1x32xf32>
    %633 = arith.negf %632 : vector<1x32xf32>
    %634 = math.exp %633 : vector<1x32xf32>
    %cst_151 = arith.constant 1.000000e+00 : f32
    %635 = vector.broadcast %cst_151 : f32 to vector<1x32xf32>
    %636 = arith.addf %635, %634 : vector<1x32xf32>
    %637 = arith.divf %635, %636 : vector<1x32xf32>
    %638 = vector.extract_strided_slice %501 {offsets = [4, 0], sizes = [1, 32], strides = [1, 1]} : vector<16x32xf32> to vector<1x32xf32>
    %639 = arith.addf %638, %628 : vector<1x32xf32>
    %640 = arith.negf %639 : vector<1x32xf32>
    %641 = math.exp %640 : vector<1x32xf32>
    %cst_152 = arith.constant 1.000000e+00 : f32
    %642 = vector.broadcast %cst_152 : f32 to vector<1x32xf32>
    %643 = arith.addf %642, %641 : vector<1x32xf32>
    %644 = arith.divf %642, %643 : vector<1x32xf32>
    %645 = vector.extract_strided_slice %506 {offsets = [4, 0], sizes = [1, 32], strides = [1, 1]} : vector<16x32xf32> to vector<1x32xf32>
    %646 = arith.mulf %637, %630 : vector<1x32xf32>
    %647 = arith.addf %645, %646 : vector<1x32xf32>
    %648 = math.tanh %647 : vector<1x32xf32>
    %cst_153 = arith.constant 1.000000e+00 : f32
    %649 = vector.broadcast %cst_153 : f32 to vector<1x32xf32>
    %650 = arith.subf %649, %644 : vector<1x32xf32>
    %651 = arith.mulf %650, %648 : vector<1x32xf32>
    %652 = arith.mulf %644, %625 : vector<1x32xf32>
    %653 = arith.addf %651, %652 : vector<1x32xf32>
    %654 = arith.truncf %653 : vector<1x32xf32> to vector<1x32xbf16>
    %cst_154 = arith.constant dense<0.000000e+00> : vector<1x32xf32>
    %655 = tpu.matmul %654, %508, %cst_154 {dimension_numbers = #tpu.dot_dimension_numbers<[1], [0], [0], [1], [0, 0, 1, 1], [], []>} : vector<1x32xbf16>, vector<32x32xbf16>, vector<1x32xf32> -> vector<1x32xf32>
    %cst_155 = arith.constant dense<0.000000e+00> : vector<1x32xf32>
    %656 = tpu.matmul %654, %510, %cst_155 {dimension_numbers = #tpu.dot_dimension_numbers<[1], [0], [0], [1], [0, 0, 1, 1], [], []>} : vector<1x32xbf16>, vector<32x32xbf16>, vector<1x32xf32> -> vector<1x32xf32>
    %cst_156 = arith.constant dense<0.000000e+00> : vector<1x32xf32>
    %657 = tpu.matmul %654, %512, %cst_156 {dimension_numbers = #tpu.dot_dimension_numbers<[1], [0], [0], [1], [0, 0, 1, 1], [], []>} : vector<1x32xbf16>, vector<32x32xbf16>, vector<1x32xf32> -> vector<1x32xf32>
    %658 = arith.addf %657, %490 : vector<1x32xf32>
    %659 = vector.extract_strided_slice %496 {offsets = [5, 0], sizes = [1, 32], strides = [1, 1]} : vector<16x32xf32> to vector<1x32xf32>
    %660 = arith.addf %659, %655 : vector<1x32xf32>
    %661 = arith.negf %660 : vector<1x32xf32>
    %662 = math.exp %661 : vector<1x32xf32>
    %cst_157 = arith.constant 1.000000e+00 : f32
    %663 = vector.broadcast %cst_157 : f32 to vector<1x32xf32>
    %664 = arith.addf %663, %662 : vector<1x32xf32>
    %665 = arith.divf %663, %664 : vector<1x32xf32>
    %666 = vector.extract_strided_slice %501 {offsets = [5, 0], sizes = [1, 32], strides = [1, 1]} : vector<16x32xf32> to vector<1x32xf32>
    %667 = arith.addf %666, %656 : vector<1x32xf32>
    %668 = arith.negf %667 : vector<1x32xf32>
    %669 = math.exp %668 : vector<1x32xf32>
    %cst_158 = arith.constant 1.000000e+00 : f32
    %670 = vector.broadcast %cst_158 : f32 to vector<1x32xf32>
    %671 = arith.addf %670, %669 : vector<1x32xf32>
    %672 = arith.divf %670, %671 : vector<1x32xf32>
    %673 = vector.extract_strided_slice %506 {offsets = [5, 0], sizes = [1, 32], strides = [1, 1]} : vector<16x32xf32> to vector<1x32xf32>
    %674 = arith.mulf %665, %658 : vector<1x32xf32>
    %675 = arith.addf %673, %674 : vector<1x32xf32>
    %676 = math.tanh %675 : vector<1x32xf32>
    %cst_159 = arith.constant 1.000000e+00 : f32
    %677 = vector.broadcast %cst_159 : f32 to vector<1x32xf32>
    %678 = arith.subf %677, %672 : vector<1x32xf32>
    %679 = arith.mulf %678, %676 : vector<1x32xf32>
    %680 = arith.mulf %672, %653 : vector<1x32xf32>
    %681 = arith.addf %679, %680 : vector<1x32xf32>
    %682 = arith.truncf %681 : vector<1x32xf32> to vector<1x32xbf16>
    %cst_160 = arith.constant dense<0.000000e+00> : vector<1x32xf32>
    %683 = tpu.matmul %682, %508, %cst_160 {dimension_numbers = #tpu.dot_dimension_numbers<[1], [0], [0], [1], [0, 0, 1, 1], [], []>} : vector<1x32xbf16>, vector<32x32xbf16>, vector<1x32xf32> -> vector<1x32xf32>
    %cst_161 = arith.constant dense<0.000000e+00> : vector<1x32xf32>
    %684 = tpu.matmul %682, %510, %cst_161 {dimension_numbers = #tpu.dot_dimension_numbers<[1], [0], [0], [1], [0, 0, 1, 1], [], []>} : vector<1x32xbf16>, vector<32x32xbf16>, vector<1x32xf32> -> vector<1x32xf32>
    %cst_162 = arith.constant dense<0.000000e+00> : vector<1x32xf32>
    %685 = tpu.matmul %682, %512, %cst_162 {dimension_numbers = #tpu.dot_dimension_numbers<[1], [0], [0], [1], [0, 0, 1, 1], [], []>} : vector<1x32xbf16>, vector<32x32xbf16>, vector<1x32xf32> -> vector<1x32xf32>
    %686 = arith.addf %685, %490 : vector<1x32xf32>
    %687 = vector.extract_strided_slice %496 {offsets = [6, 0], sizes = [1, 32], strides = [1, 1]} : vector<16x32xf32> to vector<1x32xf32>
    %688 = arith.addf %687, %683 : vector<1x32xf32>
    %689 = arith.negf %688 : vector<1x32xf32>
    %690 = math.exp %689 : vector<1x32xf32>
    %cst_163 = arith.constant 1.000000e+00 : f32
    %691 = vector.broadcast %cst_163 : f32 to vector<1x32xf32>
    %692 = arith.addf %691, %690 : vector<1x32xf32>
    %693 = arith.divf %691, %692 : vector<1x32xf32>
    %694 = vector.extract_strided_slice %501 {offsets = [6, 0], sizes = [1, 32], strides = [1, 1]} : vector<16x32xf32> to vector<1x32xf32>
    %695 = arith.addf %694, %684 : vector<1x32xf32>
    %696 = arith.negf %695 : vector<1x32xf32>
    %697 = math.exp %696 : vector<1x32xf32>
    %cst_164 = arith.constant 1.000000e+00 : f32
    %698 = vector.broadcast %cst_164 : f32 to vector<1x32xf32>
    %699 = arith.addf %698, %697 : vector<1x32xf32>
    %700 = arith.divf %698, %699 : vector<1x32xf32>
    %701 = vector.extract_strided_slice %506 {offsets = [6, 0], sizes = [1, 32], strides = [1, 1]} : vector<16x32xf32> to vector<1x32xf32>
    %702 = arith.mulf %693, %686 : vector<1x32xf32>
    %703 = arith.addf %701, %702 : vector<1x32xf32>
    %704 = math.tanh %703 : vector<1x32xf32>
    %cst_165 = arith.constant 1.000000e+00 : f32
    %705 = vector.broadcast %cst_165 : f32 to vector<1x32xf32>
    %706 = arith.subf %705, %700 : vector<1x32xf32>
    %707 = arith.mulf %706, %704 : vector<1x32xf32>
    %708 = arith.mulf %700, %681 : vector<1x32xf32>
    %709 = arith.addf %707, %708 : vector<1x32xf32>
    %710 = arith.truncf %709 : vector<1x32xf32> to vector<1x32xbf16>
    %cst_166 = arith.constant dense<0.000000e+00> : vector<1x32xf32>
    %711 = tpu.matmul %710, %508, %cst_166 {dimension_numbers = #tpu.dot_dimension_numbers<[1], [0], [0], [1], [0, 0, 1, 1], [], []>} : vector<1x32xbf16>, vector<32x32xbf16>, vector<1x32xf32> -> vector<1x32xf32>
    %cst_167 = arith.constant dense<0.000000e+00> : vector<1x32xf32>
    %712 = tpu.matmul %710, %510, %cst_167 {dimension_numbers = #tpu.dot_dimension_numbers<[1], [0], [0], [1], [0, 0, 1, 1], [], []>} : vector<1x32xbf16>, vector<32x32xbf16>, vector<1x32xf32> -> vector<1x32xf32>
    %cst_168 = arith.constant dense<0.000000e+00> : vector<1x32xf32>
    %713 = tpu.matmul %710, %512, %cst_168 {dimension_numbers = #tpu.dot_dimension_numbers<[1], [0], [0], [1], [0, 0, 1, 1], [], []>} : vector<1x32xbf16>, vector<32x32xbf16>, vector<1x32xf32> -> vector<1x32xf32>
    %714 = arith.addf %713, %490 : vector<1x32xf32>
    %715 = vector.extract_strided_slice %496 {offsets = [7, 0], sizes = [1, 32], strides = [1, 1]} : vector<16x32xf32> to vector<1x32xf32>
    %716 = arith.addf %715, %711 : vector<1x32xf32>
    %717 = arith.negf %716 : vector<1x32xf32>
    %718 = math.exp %717 : vector<1x32xf32>
    %cst_169 = arith.constant 1.000000e+00 : f32
    %719 = vector.broadcast %cst_169 : f32 to vector<1x32xf32>
    %720 = arith.addf %719, %718 : vector<1x32xf32>
    %721 = arith.divf %719, %720 : vector<1x32xf32>
    %722 = vector.extract_strided_slice %501 {offsets = [7, 0], sizes = [1, 32], strides = [1, 1]} : vector<16x32xf32> to vector<1x32xf32>
    %723 = arith.addf %722, %712 : vector<1x32xf32>
    %724 = arith.negf %723 : vector<1x32xf32>
    %725 = math.exp %724 : vector<1x32xf32>
    %cst_170 = arith.constant 1.000000e+00 : f32
    %726 = vector.broadcast %cst_170 : f32 to vector<1x32xf32>
    %727 = arith.addf %726, %725 : vector<1x32xf32>
    %728 = arith.divf %726, %727 : vector<1x32xf32>
    %729 = vector.extract_strided_slice %506 {offsets = [7, 0], sizes = [1, 32], strides = [1, 1]} : vector<16x32xf32> to vector<1x32xf32>
    %730 = arith.mulf %721, %714 : vector<1x32xf32>
    %731 = arith.addf %729, %730 : vector<1x32xf32>
    %732 = math.tanh %731 : vector<1x32xf32>
    %cst_171 = arith.constant 1.000000e+00 : f32
    %733 = vector.broadcast %cst_171 : f32 to vector<1x32xf32>
    %734 = arith.subf %733, %728 : vector<1x32xf32>
    %735 = arith.mulf %734, %732 : vector<1x32xf32>
    %736 = arith.mulf %728, %709 : vector<1x32xf32>
    %737 = arith.addf %735, %736 : vector<1x32xf32>
    %738 = arith.truncf %737 : vector<1x32xf32> to vector<1x32xbf16>
    %cst_172 = arith.constant dense<0.000000e+00> : vector<1x32xf32>
    %739 = tpu.matmul %738, %508, %cst_172 {dimension_numbers = #tpu.dot_dimension_numbers<[1], [0], [0], [1], [0, 0, 1, 1], [], []>} : vector<1x32xbf16>, vector<32x32xbf16>, vector<1x32xf32> -> vector<1x32xf32>
    %cst_173 = arith.constant dense<0.000000e+00> : vector<1x32xf32>
    %740 = tpu.matmul %738, %510, %cst_173 {dimension_numbers = #tpu.dot_dimension_numbers<[1], [0], [0], [1], [0, 0, 1, 1], [], []>} : vector<1x32xbf16>, vector<32x32xbf16>, vector<1x32xf32> -> vector<1x32xf32>
    %cst_174 = arith.constant dense<0.000000e+00> : vector<1x32xf32>
    %741 = tpu.matmul %738, %512, %cst_174 {dimension_numbers = #tpu.dot_dimension_numbers<[1], [0], [0], [1], [0, 0, 1, 1], [], []>} : vector<1x32xbf16>, vector<32x32xbf16>, vector<1x32xf32> -> vector<1x32xf32>
    %742 = arith.addf %741, %490 : vector<1x32xf32>
    %743 = vector.extract_strided_slice %496 {offsets = [8, 0], sizes = [1, 32], strides = [1, 1]} : vector<16x32xf32> to vector<1x32xf32>
    %744 = arith.addf %743, %739 : vector<1x32xf32>
    %745 = arith.negf %744 : vector<1x32xf32>
    %746 = math.exp %745 : vector<1x32xf32>
    %cst_175 = arith.constant 1.000000e+00 : f32
    %747 = vector.broadcast %cst_175 : f32 to vector<1x32xf32>
    %748 = arith.addf %747, %746 : vector<1x32xf32>
    %749 = arith.divf %747, %748 : vector<1x32xf32>
    %750 = vector.extract_strided_slice %501 {offsets = [8, 0], sizes = [1, 32], strides = [1, 1]} : vector<16x32xf32> to vector<1x32xf32>
    %751 = arith.addf %750, %740 : vector<1x32xf32>
    %752 = arith.negf %751 : vector<1x32xf32>
    %753 = math.exp %752 : vector<1x32xf32>
    %cst_176 = arith.constant 1.000000e+00 : f32
    %754 = vector.broadcast %cst_176 : f32 to vector<1x32xf32>
    %755 = arith.addf %754, %753 : vector<1x32xf32>
    %756 = arith.divf %754, %755 : vector<1x32xf32>
    %757 = vector.extract_strided_slice %506 {offsets = [8, 0], sizes = [1, 32], strides = [1, 1]} : vector<16x32xf32> to vector<1x32xf32>
    %758 = arith.mulf %749, %742 : vector<1x32xf32>
    %759 = arith.addf %757, %758 : vector<1x32xf32>
    %760 = math.tanh %759 : vector<1x32xf32>
    %cst_177 = arith.constant 1.000000e+00 : f32
    %761 = vector.broadcast %cst_177 : f32 to vector<1x32xf32>
    %762 = arith.subf %761, %756 : vector<1x32xf32>
    %763 = arith.mulf %762, %760 : vector<1x32xf32>
    %764 = arith.mulf %756, %737 : vector<1x32xf32>
    %765 = arith.addf %763, %764 : vector<1x32xf32>
    %766 = arith.truncf %765 : vector<1x32xf32> to vector<1x32xbf16>
    %cst_178 = arith.constant dense<0.000000e+00> : vector<1x32xf32>
    %767 = tpu.matmul %766, %508, %cst_178 {dimension_numbers = #tpu.dot_dimension_numbers<[1], [0], [0], [1], [0, 0, 1, 1], [], []>} : vector<1x32xbf16>, vector<32x32xbf16>, vector<1x32xf32> -> vector<1x32xf32>
    %cst_179 = arith.constant dense<0.000000e+00> : vector<1x32xf32>
    %768 = tpu.matmul %766, %510, %cst_179 {dimension_numbers = #tpu.dot_dimension_numbers<[1], [0], [0], [1], [0, 0, 1, 1], [], []>} : vector<1x32xbf16>, vector<32x32xbf16>, vector<1x32xf32> -> vector<1x32xf32>
    %cst_180 = arith.constant dense<0.000000e+00> : vector<1x32xf32>
    %769 = tpu.matmul %766, %512, %cst_180 {dimension_numbers = #tpu.dot_dimension_numbers<[1], [0], [0], [1], [0, 0, 1, 1], [], []>} : vector<1x32xbf16>, vector<32x32xbf16>, vector<1x32xf32> -> vector<1x32xf32>
    %770 = arith.addf %769, %490 : vector<1x32xf32>
    %771 = vector.extract_strided_slice %496 {offsets = [9, 0], sizes = [1, 32], strides = [1, 1]} : vector<16x32xf32> to vector<1x32xf32>
    %772 = arith.addf %771, %767 : vector<1x32xf32>
    %773 = arith.negf %772 : vector<1x32xf32>
    %774 = math.exp %773 : vector<1x32xf32>
    %cst_181 = arith.constant 1.000000e+00 : f32
    %775 = vector.broadcast %cst_181 : f32 to vector<1x32xf32>
    %776 = arith.addf %775, %774 : vector<1x32xf32>
    %777 = arith.divf %775, %776 : vector<1x32xf32>
    %778 = vector.extract_strided_slice %501 {offsets = [9, 0], sizes = [1, 32], strides = [1, 1]} : vector<16x32xf32> to vector<1x32xf32>
    %779 = arith.addf %778, %768 : vector<1x32xf32>
    %780 = arith.negf %779 : vector<1x32xf32>
    %781 = math.exp %780 : vector<1x32xf32>
    %cst_182 = arith.constant 1.000000e+00 : f32
    %782 = vector.broadcast %cst_182 : f32 to vector<1x32xf32>
    %783 = arith.addf %782, %781 : vector<1x32xf32>
    %784 = arith.divf %782, %783 : vector<1x32xf32>
    %785 = vector.extract_strided_slice %506 {offsets = [9, 0], sizes = [1, 32], strides = [1, 1]} : vector<16x32xf32> to vector<1x32xf32>
    %786 = arith.mulf %777, %770 : vector<1x32xf32>
    %787 = arith.addf %785, %786 : vector<1x32xf32>
    %788 = math.tanh %787 : vector<1x32xf32>
    %cst_183 = arith.constant 1.000000e+00 : f32
    %789 = vector.broadcast %cst_183 : f32 to vector<1x32xf32>
    %790 = arith.subf %789, %784 : vector<1x32xf32>
    %791 = arith.mulf %790, %788 : vector<1x32xf32>
    %792 = arith.mulf %784, %765 : vector<1x32xf32>
    %793 = arith.addf %791, %792 : vector<1x32xf32>
    %794 = arith.truncf %793 : vector<1x32xf32> to vector<1x32xbf16>
    %cst_184 = arith.constant dense<0.000000e+00> : vector<1x32xf32>
    %795 = tpu.matmul %794, %508, %cst_184 {dimension_numbers = #tpu.dot_dimension_numbers<[1], [0], [0], [1], [0, 0, 1, 1], [], []>} : vector<1x32xbf16>, vector<32x32xbf16>, vector<1x32xf32> -> vector<1x32xf32>
    %cst_185 = arith.constant dense<0.000000e+00> : vector<1x32xf32>
    %796 = tpu.matmul %794, %510, %cst_185 {dimension_numbers = #tpu.dot_dimension_numbers<[1], [0], [0], [1], [0, 0, 1, 1], [], []>} : vector<1x32xbf16>, vector<32x32xbf16>, vector<1x32xf32> -> vector<1x32xf32>
    %cst_186 = arith.constant dense<0.000000e+00> : vector<1x32xf32>
    %797 = tpu.matmul %794, %512, %cst_186 {dimension_numbers = #tpu.dot_dimension_numbers<[1], [0], [0], [1], [0, 0, 1, 1], [], []>} : vector<1x32xbf16>, vector<32x32xbf16>, vector<1x32xf32> -> vector<1x32xf32>
    %798 = arith.addf %797, %490 : vector<1x32xf32>
    %799 = vector.extract_strided_slice %496 {offsets = [10, 0], sizes = [1, 32], strides = [1, 1]} : vector<16x32xf32> to vector<1x32xf32>
    %800 = arith.addf %799, %795 : vector<1x32xf32>
    %801 = arith.negf %800 : vector<1x32xf32>
    %802 = math.exp %801 : vector<1x32xf32>
    %cst_187 = arith.constant 1.000000e+00 : f32
    %803 = vector.broadcast %cst_187 : f32 to vector<1x32xf32>
    %804 = arith.addf %803, %802 : vector<1x32xf32>
    %805 = arith.divf %803, %804 : vector<1x32xf32>
    %806 = vector.extract_strided_slice %501 {offsets = [10, 0], sizes = [1, 32], strides = [1, 1]} : vector<16x32xf32> to vector<1x32xf32>
    %807 = arith.addf %806, %796 : vector<1x32xf32>
    %808 = arith.negf %807 : vector<1x32xf32>
    %809 = math.exp %808 : vector<1x32xf32>
    %cst_188 = arith.constant 1.000000e+00 : f32
    %810 = vector.broadcast %cst_188 : f32 to vector<1x32xf32>
    %811 = arith.addf %810, %809 : vector<1x32xf32>
    %812 = arith.divf %810, %811 : vector<1x32xf32>
    %813 = vector.extract_strided_slice %506 {offsets = [10, 0], sizes = [1, 32], strides = [1, 1]} : vector<16x32xf32> to vector<1x32xf32>
    %814 = arith.mulf %805, %798 : vector<1x32xf32>
    %815 = arith.addf %813, %814 : vector<1x32xf32>
    %816 = math.tanh %815 : vector<1x32xf32>
    %cst_189 = arith.constant 1.000000e+00 : f32
    %817 = vector.broadcast %cst_189 : f32 to vector<1x32xf32>
    %818 = arith.subf %817, %812 : vector<1x32xf32>
    %819 = arith.mulf %818, %816 : vector<1x32xf32>
    %820 = arith.mulf %812, %793 : vector<1x32xf32>
    %821 = arith.addf %819, %820 : vector<1x32xf32>
    %822 = arith.truncf %821 : vector<1x32xf32> to vector<1x32xbf16>
    %cst_190 = arith.constant dense<0.000000e+00> : vector<1x32xf32>
    %823 = tpu.matmul %822, %508, %cst_190 {dimension_numbers = #tpu.dot_dimension_numbers<[1], [0], [0], [1], [0, 0, 1, 1], [], []>} : vector<1x32xbf16>, vector<32x32xbf16>, vector<1x32xf32> -> vector<1x32xf32>
    %cst_191 = arith.constant dense<0.000000e+00> : vector<1x32xf32>
    %824 = tpu.matmul %822, %510, %cst_191 {dimension_numbers = #tpu.dot_dimension_numbers<[1], [0], [0], [1], [0, 0, 1, 1], [], []>} : vector<1x32xbf16>, vector<32x32xbf16>, vector<1x32xf32> -> vector<1x32xf32>
    %cst_192 = arith.constant dense<0.000000e+00> : vector<1x32xf32>
    %825 = tpu.matmul %822, %512, %cst_192 {dimension_numbers = #tpu.dot_dimension_numbers<[1], [0], [0], [1], [0, 0, 1, 1], [], []>} : vector<1x32xbf16>, vector<32x32xbf16>, vector<1x32xf32> -> vector<1x32xf32>
    %826 = arith.addf %825, %490 : vector<1x32xf32>
    %827 = vector.extract_strided_slice %496 {offsets = [11, 0], sizes = [1, 32], strides = [1, 1]} : vector<16x32xf32> to vector<1x32xf32>
    %828 = arith.addf %827, %823 : vector<1x32xf32>
    %829 = arith.negf %828 : vector<1x32xf32>
    %830 = math.exp %829 : vector<1x32xf32>
    %cst_193 = arith.constant 1.000000e+00 : f32
    %831 = vector.broadcast %cst_193 : f32 to vector<1x32xf32>
    %832 = arith.addf %831, %830 : vector<1x32xf32>
    %833 = arith.divf %831, %832 : vector<1x32xf32>
    %834 = vector.extract_strided_slice %501 {offsets = [11, 0], sizes = [1, 32], strides = [1, 1]} : vector<16x32xf32> to vector<1x32xf32>
    %835 = arith.addf %834, %824 : vector<1x32xf32>
    %836 = arith.negf %835 : vector<1x32xf32>
    %837 = math.exp %836 : vector<1x32xf32>
    %cst_194 = arith.constant 1.000000e+00 : f32
    %838 = vector.broadcast %cst_194 : f32 to vector<1x32xf32>
    %839 = arith.addf %838, %837 : vector<1x32xf32>
    %840 = arith.divf %838, %839 : vector<1x32xf32>
    %841 = vector.extract_strided_slice %506 {offsets = [11, 0], sizes = [1, 32], strides = [1, 1]} : vector<16x32xf32> to vector<1x32xf32>
    %842 = arith.mulf %833, %826 : vector<1x32xf32>
    %843 = arith.addf %841, %842 : vector<1x32xf32>
    %844 = math.tanh %843 : vector<1x32xf32>
    %cst_195 = arith.constant 1.000000e+00 : f32
    %845 = vector.broadcast %cst_195 : f32 to vector<1x32xf32>
    %846 = arith.subf %845, %840 : vector<1x32xf32>
    %847 = arith.mulf %846, %844 : vector<1x32xf32>
    %848 = arith.mulf %840, %821 : vector<1x32xf32>
    %849 = arith.addf %847, %848 : vector<1x32xf32>
    %850 = arith.truncf %849 : vector<1x32xf32> to vector<1x32xbf16>
    %cst_196 = arith.constant dense<0.000000e+00> : vector<1x32xf32>
    %851 = tpu.matmul %850, %508, %cst_196 {dimension_numbers = #tpu.dot_dimension_numbers<[1], [0], [0], [1], [0, 0, 1, 1], [], []>} : vector<1x32xbf16>, vector<32x32xbf16>, vector<1x32xf32> -> vector<1x32xf32>
    %cst_197 = arith.constant dense<0.000000e+00> : vector<1x32xf32>
    %852 = tpu.matmul %850, %510, %cst_197 {dimension_numbers = #tpu.dot_dimension_numbers<[1], [0], [0], [1], [0, 0, 1, 1], [], []>} : vector<1x32xbf16>, vector<32x32xbf16>, vector<1x32xf32> -> vector<1x32xf32>
    %cst_198 = arith.constant dense<0.000000e+00> : vector<1x32xf32>
    %853 = tpu.matmul %850, %512, %cst_198 {dimension_numbers = #tpu.dot_dimension_numbers<[1], [0], [0], [1], [0, 0, 1, 1], [], []>} : vector<1x32xbf16>, vector<32x32xbf16>, vector<1x32xf32> -> vector<1x32xf32>
    %854 = arith.addf %853, %490 : vector<1x32xf32>
    %855 = vector.extract_strided_slice %496 {offsets = [12, 0], sizes = [1, 32], strides = [1, 1]} : vector<16x32xf32> to vector<1x32xf32>
    %856 = arith.addf %855, %851 : vector<1x32xf32>
    %857 = arith.negf %856 : vector<1x32xf32>
    %858 = math.exp %857 : vector<1x32xf32>
    %cst_199 = arith.constant 1.000000e+00 : f32
    %859 = vector.broadcast %cst_199 : f32 to vector<1x32xf32>
    %860 = arith.addf %859, %858 : vector<1x32xf32>
    %861 = arith.divf %859, %860 : vector<1x32xf32>
    %862 = vector.extract_strided_slice %501 {offsets = [12, 0], sizes = [1, 32], strides = [1, 1]} : vector<16x32xf32> to vector<1x32xf32>
    %863 = arith.addf %862, %852 : vector<1x32xf32>
    %864 = arith.negf %863 : vector<1x32xf32>
    %865 = math.exp %864 : vector<1x32xf32>
    %cst_200 = arith.constant 1.000000e+00 : f32
    %866 = vector.broadcast %cst_200 : f32 to vector<1x32xf32>
    %867 = arith.addf %866, %865 : vector<1x32xf32>
    %868 = arith.divf %866, %867 : vector<1x32xf32>
    %869 = vector.extract_strided_slice %506 {offsets = [12, 0], sizes = [1, 32], strides = [1, 1]} : vector<16x32xf32> to vector<1x32xf32>
    %870 = arith.mulf %861, %854 : vector<1x32xf32>
    %871 = arith.addf %869, %870 : vector<1x32xf32>
    %872 = math.tanh %871 : vector<1x32xf32>
    %cst_201 = arith.constant 1.000000e+00 : f32
    %873 = vector.broadcast %cst_201 : f32 to vector<1x32xf32>
    %874 = arith.subf %873, %868 : vector<1x32xf32>
    %875 = arith.mulf %874, %872 : vector<1x32xf32>
    %876 = arith.mulf %868, %849 : vector<1x32xf32>
    %877 = arith.addf %875, %876 : vector<1x32xf32>
    %878 = arith.truncf %877 : vector<1x32xf32> to vector<1x32xbf16>
    %cst_202 = arith.constant dense<0.000000e+00> : vector<1x32xf32>
    %879 = tpu.matmul %878, %508, %cst_202 {dimension_numbers = #tpu.dot_dimension_numbers<[1], [0], [0], [1], [0, 0, 1, 1], [], []>} : vector<1x32xbf16>, vector<32x32xbf16>, vector<1x32xf32> -> vector<1x32xf32>
    %cst_203 = arith.constant dense<0.000000e+00> : vector<1x32xf32>
    %880 = tpu.matmul %878, %510, %cst_203 {dimension_numbers = #tpu.dot_dimension_numbers<[1], [0], [0], [1], [0, 0, 1, 1], [], []>} : vector<1x32xbf16>, vector<32x32xbf16>, vector<1x32xf32> -> vector<1x32xf32>
    %cst_204 = arith.constant dense<0.000000e+00> : vector<1x32xf32>
    %881 = tpu.matmul %878, %512, %cst_204 {dimension_numbers = #tpu.dot_dimension_numbers<[1], [0], [0], [1], [0, 0, 1, 1], [], []>} : vector<1x32xbf16>, vector<32x32xbf16>, vector<1x32xf32> -> vector<1x32xf32>
    %882 = arith.addf %881, %490 : vector<1x32xf32>
    %883 = vector.extract_strided_slice %496 {offsets = [13, 0], sizes = [1, 32], strides = [1, 1]} : vector<16x32xf32> to vector<1x32xf32>
    %884 = arith.addf %883, %879 : vector<1x32xf32>
    %885 = arith.negf %884 : vector<1x32xf32>
    %886 = math.exp %885 : vector<1x32xf32>
    %cst_205 = arith.constant 1.000000e+00 : f32
    %887 = vector.broadcast %cst_205 : f32 to vector<1x32xf32>
    %888 = arith.addf %887, %886 : vector<1x32xf32>
    %889 = arith.divf %887, %888 : vector<1x32xf32>
    %890 = vector.extract_strided_slice %501 {offsets = [13, 0], sizes = [1, 32], strides = [1, 1]} : vector<16x32xf32> to vector<1x32xf32>
    %891 = arith.addf %890, %880 : vector<1x32xf32>
    %892 = arith.negf %891 : vector<1x32xf32>
    %893 = math.exp %892 : vector<1x32xf32>
    %cst_206 = arith.constant 1.000000e+00 : f32
    %894 = vector.broadcast %cst_206 : f32 to vector<1x32xf32>
    %895 = arith.addf %894, %893 : vector<1x32xf32>
    %896 = arith.divf %894, %895 : vector<1x32xf32>
    %897 = vector.extract_strided_slice %506 {offsets = [13, 0], sizes = [1, 32], strides = [1, 1]} : vector<16x32xf32> to vector<1x32xf32>
    %898 = arith.mulf %889, %882 : vector<1x32xf32>
    %899 = arith.addf %897, %898 : vector<1x32xf32>
    %900 = math.tanh %899 : vector<1x32xf32>
    %cst_207 = arith.constant 1.000000e+00 : f32
    %901 = vector.broadcast %cst_207 : f32 to vector<1x32xf32>
    %902 = arith.subf %901, %896 : vector<1x32xf32>
    %903 = arith.mulf %902, %900 : vector<1x32xf32>
    %904 = arith.mulf %896, %877 : vector<1x32xf32>
    %905 = arith.addf %903, %904 : vector<1x32xf32>
    %906 = arith.truncf %905 : vector<1x32xf32> to vector<1x32xbf16>
    %cst_208 = arith.constant dense<0.000000e+00> : vector<1x32xf32>
    %907 = tpu.matmul %906, %508, %cst_208 {dimension_numbers = #tpu.dot_dimension_numbers<[1], [0], [0], [1], [0, 0, 1, 1], [], []>} : vector<1x32xbf16>, vector<32x32xbf16>, vector<1x32xf32> -> vector<1x32xf32>
    %cst_209 = arith.constant dense<0.000000e+00> : vector<1x32xf32>
    %908 = tpu.matmul %906, %510, %cst_209 {dimension_numbers = #tpu.dot_dimension_numbers<[1], [0], [0], [1], [0, 0, 1, 1], [], []>} : vector<1x32xbf16>, vector<32x32xbf16>, vector<1x32xf32> -> vector<1x32xf32>
    %cst_210 = arith.constant dense<0.000000e+00> : vector<1x32xf32>
    %909 = tpu.matmul %906, %512, %cst_210 {dimension_numbers = #tpu.dot_dimension_numbers<[1], [0], [0], [1], [0, 0, 1, 1], [], []>} : vector<1x32xbf16>, vector<32x32xbf16>, vector<1x32xf32> -> vector<1x32xf32>
    %910 = arith.addf %909, %490 : vector<1x32xf32>
    %911 = vector.extract_strided_slice %496 {offsets = [14, 0], sizes = [1, 32], strides = [1, 1]} : vector<16x32xf32> to vector<1x32xf32>
    %912 = arith.addf %911, %907 : vector<1x32xf32>
    %913 = arith.negf %912 : vector<1x32xf32>
    %914 = math.exp %913 : vector<1x32xf32>
    %cst_211 = arith.constant 1.000000e+00 : f32
    %915 = vector.broadcast %cst_211 : f32 to vector<1x32xf32>
    %916 = arith.addf %915, %914 : vector<1x32xf32>
    %917 = arith.divf %915, %916 : vector<1x32xf32>
    %918 = vector.extract_strided_slice %501 {offsets = [14, 0], sizes = [1, 32], strides = [1, 1]} : vector<16x32xf32> to vector<1x32xf32>
    %919 = arith.addf %918, %908 : vector<1x32xf32>
    %920 = arith.negf %919 : vector<1x32xf32>
    %921 = math.exp %920 : vector<1x32xf32>
    %cst_212 = arith.constant 1.000000e+00 : f32
    %922 = vector.broadcast %cst_212 : f32 to vector<1x32xf32>
    %923 = arith.addf %922, %921 : vector<1x32xf32>
    %924 = arith.divf %922, %923 : vector<1x32xf32>
    %925 = vector.extract_strided_slice %506 {offsets = [14, 0], sizes = [1, 32], strides = [1, 1]} : vector<16x32xf32> to vector<1x32xf32>
    %926 = arith.mulf %917, %910 : vector<1x32xf32>
    %927 = arith.addf %925, %926 : vector<1x32xf32>
    %928 = math.tanh %927 : vector<1x32xf32>
    %cst_213 = arith.constant 1.000000e+00 : f32
    %929 = vector.broadcast %cst_213 : f32 to vector<1x32xf32>
    %930 = arith.subf %929, %924 : vector<1x32xf32>
    %931 = arith.mulf %930, %928 : vector<1x32xf32>
    %932 = arith.mulf %924, %905 : vector<1x32xf32>
    %933 = arith.addf %931, %932 : vector<1x32xf32>
    %934 = arith.truncf %933 : vector<1x32xf32> to vector<1x32xbf16>
    %cst_214 = arith.constant dense<0.000000e+00> : vector<1x32xf32>
    %935 = tpu.matmul %934, %508, %cst_214 {dimension_numbers = #tpu.dot_dimension_numbers<[1], [0], [0], [1], [0, 0, 1, 1], [], []>} : vector<1x32xbf16>, vector<32x32xbf16>, vector<1x32xf32> -> vector<1x32xf32>
    %cst_215 = arith.constant dense<0.000000e+00> : vector<1x32xf32>
    %936 = tpu.matmul %934, %510, %cst_215 {dimension_numbers = #tpu.dot_dimension_numbers<[1], [0], [0], [1], [0, 0, 1, 1], [], []>} : vector<1x32xbf16>, vector<32x32xbf16>, vector<1x32xf32> -> vector<1x32xf32>
    %cst_216 = arith.constant dense<0.000000e+00> : vector<1x32xf32>
    %937 = tpu.matmul %934, %512, %cst_216 {dimension_numbers = #tpu.dot_dimension_numbers<[1], [0], [0], [1], [0, 0, 1, 1], [], []>} : vector<1x32xbf16>, vector<32x32xbf16>, vector<1x32xf32> -> vector<1x32xf32>
    %938 = arith.addf %937, %490 : vector<1x32xf32>
    %939 = vector.extract_strided_slice %496 {offsets = [15, 0], sizes = [1, 32], strides = [1, 1]} : vector<16x32xf32> to vector<1x32xf32>
    %940 = arith.addf %939, %935 : vector<1x32xf32>
    %941 = arith.negf %940 : vector<1x32xf32>
    %942 = math.exp %941 : vector<1x32xf32>
    %cst_217 = arith.constant 1.000000e+00 : f32
    %943 = vector.broadcast %cst_217 : f32 to vector<1x32xf32>
    %944 = arith.addf %943, %942 : vector<1x32xf32>
    %945 = arith.divf %943, %944 : vector<1x32xf32>
    %946 = vector.extract_strided_slice %501 {offsets = [15, 0], sizes = [1, 32], strides = [1, 1]} : vector<16x32xf32> to vector<1x32xf32>
    %947 = arith.addf %946, %936 : vector<1x32xf32>
    %948 = arith.negf %947 : vector<1x32xf32>
    %949 = math.exp %948 : vector<1x32xf32>
    %cst_218 = arith.constant 1.000000e+00 : f32
    %950 = vector.broadcast %cst_218 : f32 to vector<1x32xf32>
    %951 = arith.addf %950, %949 : vector<1x32xf32>
    %952 = arith.divf %950, %951 : vector<1x32xf32>
    %953 = vector.extract_strided_slice %506 {offsets = [15, 0], sizes = [1, 32], strides = [1, 1]} : vector<16x32xf32> to vector<1x32xf32>
    %954 = arith.mulf %945, %938 : vector<1x32xf32>
    %955 = arith.addf %953, %954 : vector<1x32xf32>
    %956 = math.tanh %955 : vector<1x32xf32>
    %cst_219 = arith.constant 1.000000e+00 : f32
    %957 = vector.broadcast %cst_219 : f32 to vector<1x32xf32>
    %958 = arith.subf %957, %952 : vector<1x32xf32>
    %959 = arith.mulf %958, %956 : vector<1x32xf32>
    %960 = arith.mulf %952, %933 : vector<1x32xf32>
    %961 = arith.addf %959, %960 : vector<1x32xf32>
    %962 = tpu.concatenate %541, %569, %597, %625, %653, %681, %709, %737, %765, %793, %821, %849, %877, %905, %933, %961 in 0 : vector<1x32xf32>, vector<1x32xf32>, vector<1x32xf32>, vector<1x32xf32>, vector<1x32xf32>, vector<1x32xf32>, vector<1x32xf32>, vector<1x32xf32>, vector<1x32xf32>, vector<1x32xf32>, vector<1x32xf32>, vector<1x32xf32>, vector<1x32xf32>, vector<1x32xf32>, vector<1x32xf32>, vector<1x32xf32> -> vector<16x32xf32>
    %c0_220 = arith.constant 0 : index
    %c0_221 = arith.constant 0 : index
    %c0_222 = arith.constant 0 : index
    %963 = vector.load %arg2[%c0_220, %c0_221, %c0_222] : memref<1x4x16xf32, #tpu.memory_space<vmem>>, vector<1x4x16xf32>
    %964 = vector.shape_cast %963 : vector<1x4x16xf32> to vector<4x16xf32>
    %965 = arith.truncf %964 : vector<4x16xf32> to vector<4x16xbf16>
    "tpu.trace_start"() <{level = 10 : i32, message = "rm,nm->rn"}> : () -> ()
    %cst_223 = arith.constant dense<0.000000e+00> : vector<4x16xf32>
    %966 = tpu.matmul %965, %0, %cst_223 {dimension_numbers = #tpu.dot_dimension_numbers<[1], [1], [0], [0], [0, 0, 1, 0], [], []>} : vector<4x16xbf16>, vector<16x16xbf16>, vector<4x16xf32> -> vector<4x16xf32>
    "tpu.trace_stop"() : () -> ()
    %967 = vector.extract_strided_slice %966 {offsets = [0, 0], sizes = [1, 4], strides = [1, 1]} : vector<4x16xf32> to vector<1x4xf32>
    %968 = vector.extract_strided_slice %966 {offsets = [0, 4], sizes = [1, 4], strides = [1, 1]} : vector<4x16xf32> to vector<1x4xf32>
    %969 = vector.extract_strided_slice %966 {offsets = [0, 8], sizes = [1, 4], strides = [1, 1]} : vector<4x16xf32> to vector<1x4xf32>
    %970 = vector.extract_strided_slice %966 {offsets = [0, 12], sizes = [1, 4], strides = [1, 1]} : vector<4x16xf32> to vector<1x4xf32>
    %971 = vector.extract_strided_slice %966 {offsets = [1, 0], sizes = [1, 4], strides = [1, 1]} : vector<4x16xf32> to vector<1x4xf32>
    %972 = vector.extract_strided_slice %966 {offsets = [1, 4], sizes = [1, 4], strides = [1, 1]} : vector<4x16xf32> to vector<1x4xf32>
    %973 = vector.extract_strided_slice %966 {offsets = [1, 8], sizes = [1, 4], strides = [1, 1]} : vector<4x16xf32> to vector<1x4xf32>
    %974 = vector.extract_strided_slice %966 {offsets = [1, 12], sizes = [1, 4], strides = [1, 1]} : vector<4x16xf32> to vector<1x4xf32>
    %975 = vector.extract_strided_slice %966 {offsets = [2, 0], sizes = [1, 4], strides = [1, 1]} : vector<4x16xf32> to vector<1x4xf32>
    %976 = vector.extract_strided_slice %966 {offsets = [2, 4], sizes = [1, 4], strides = [1, 1]} : vector<4x16xf32> to vector<1x4xf32>
    %977 = vector.extract_strided_slice %966 {offsets = [2, 8], sizes = [1, 4], strides = [1, 1]} : vector<4x16xf32> to vector<1x4xf32>
    %978 = vector.extract_strided_slice %966 {offsets = [2, 12], sizes = [1, 4], strides = [1, 1]} : vector<4x16xf32> to vector<1x4xf32>
    %979 = vector.extract_strided_slice %966 {offsets = [3, 0], sizes = [1, 4], strides = [1, 1]} : vector<4x16xf32> to vector<1x4xf32>
    %980 = vector.extract_strided_slice %966 {offsets = [3, 4], sizes = [1, 4], strides = [1, 1]} : vector<4x16xf32> to vector<1x4xf32>
    %981 = vector.extract_strided_slice %966 {offsets = [3, 8], sizes = [1, 4], strides = [1, 1]} : vector<4x16xf32> to vector<1x4xf32>
    %982 = vector.extract_strided_slice %966 {offsets = [3, 12], sizes = [1, 4], strides = [1, 1]} : vector<4x16xf32> to vector<1x4xf32>
    %983 = tpu.concatenate %967, %968, %969, %970, %971, %972, %973, %974, %975, %976, %977, %978, %979, %980, %981, %982 in 0 : vector<1x4xf32>, vector<1x4xf32>, vector<1x4xf32>, vector<1x4xf32>, vector<1x4xf32>, vector<1x4xf32>, vector<1x4xf32>, vector<1x4xf32>, vector<1x4xf32>, vector<1x4xf32>, vector<1x4xf32>, vector<1x4xf32>, vector<1x4xf32>, vector<1x4xf32>, vector<1x4xf32>, vector<1x4xf32> -> vector<16x4xf32>
    %984 = tpu.concatenate %962, %983 in 1 : vector<16x32xf32>, vector<16x4xf32> -> vector<16x36xf32>
    %985 = arith.truncf %984 : vector<16x36xf32> to vector<16x36xbf16>
    %c0_224 = arith.constant 0 : index
    %c0_225 = arith.constant 0 : index
    %986 = vector.load %arg10[%c0_224, %c0_225] : memref<36x128xbf16, #tpu.memory_space<vmem>>, vector<36x128xbf16>
    %cst_226 = arith.constant dense<0.000000e+00> : vector<16x128xf32>
    %987 = tpu.matmul %985, %986, %cst_226 {dimension_numbers = #tpu.dot_dimension_numbers<[1], [0], [0], [1], [0, 0, 1, 1], [], []>} : vector<16x36xbf16>, vector<36x128xbf16>, vector<16x128xf32> -> vector<16x128xf32>
    %c0_227 = arith.constant 0 : index
    %c0_228 = arith.constant 0 : index
    %988 = vector.load %arg11[%c0_227, %c0_228] : memref<1x128xf32, #tpu.memory_space<vmem>>, vector<1x128xf32>
    %989 = vector.broadcast %988 : vector<1x128xf32> to vector<16x128xf32>
    %990 = arith.addf %987, %989 : vector<16x128xf32>
    %c0_229 = arith.constant 0 : index
    %c0_230 = arith.constant 0 : index
    %c0_231 = arith.constant 0 : index
    %991 = vector.load %arg12[%c0_229, %c0_230, %c0_231] : memref<1x16x128xf32, #tpu.memory_space<vmem>>, vector<1x16x128xf32>
    %992 = vector.shape_cast %991 : vector<1x16x128xf32> to vector<16x128xf32>
    %993 = vector.shape_cast %990 : vector<16x128xf32> to vector<1x16x128xf32>
    tpu.vector_store %arg12[%c0_229, %c0_230, %c0_231], %993 {strides = array<i32>} : memref<1x16x128xf32, #tpu.memory_space<vmem>>, vector<1x16x128xf32>,
    return
  }
  func.func @transform_0(%arg0: i32) -> (i32, i32, i32) {
    %c0_i32 = arith.constant 0 : i32
    %c0_i32_0 = arith.constant 0 : i32
    %c0_i32_1 = arith.constant 0 : i32
    return %arg0, %c0_i32, %c0_i32_0 : i32, i32, i32
  }
  func.func @transform_1(%arg0: i32) -> (i32, i32, i32) {
    %c0_i32 = arith.constant 0 : i32
    %c0_i32_0 = arith.constant 0 : i32
    %c0_i32_1 = arith.constant 0 : i32
    return %arg0, %c0_i32, %c0_i32_0 : i32, i32, i32
  }
  func.func @transform_2(%arg0: i32) -> (i32, i32) {
    %c0_i32 = arith.constant 0 : i32
    %c0_i32_0 = arith.constant 0 : i32
    %c0_i32_1 = arith.constant 0 : i32
    return %c0_i32, %c0_i32_0 : i32, i32
  }
  func.func @transform_3(%arg0: i32) -> (i32, i32, i32) {
    %c0_i32 = arith.constant 0 : i32
    %c0_i32_0 = arith.constant 0 : i32
    %c0_i32_1 = arith.constant 0 : i32
    %c0_i32_2 = arith.constant 0 : i32
    return %c0_i32, %c0_i32_0, %c0_i32_1 : i32, i32, i32
  }
  func.func @transform_4(%arg0: i32) -> (i32, i32, i32) {
    %c0_i32 = arith.constant 0 : i32
    %c0_i32_0 = arith.constant 0 : i32
    %c0_i32_1 = arith.constant 0 : i32
    %c0_i32_2 = arith.constant 0 : i32
    return %c0_i32, %c0_i32_0, %c0_i32_1 : i32, i32, i32
  }
  func.func @transform_5(%arg0: i32) -> (i32, i32) {
    %c0_i32 = arith.constant 0 : i32
    %c0_i32_0 = arith.constant 0 : i32
    %c0_i32_1 = arith.constant 0 : i32
    return %c0_i32, %c0_i32_0 : i32, i32
  }
  func.func @transform_6(%arg0: i32) -> (i32, i32, i32) {
    %c0_i32 = arith.constant 0 : i32
    %c0_i32_0 = arith.constant 0 : i32
    %c0_i32_1 = arith.constant 0 : i32
    %c0_i32_2 = arith.constant 0 : i32
    return %c0_i32, %c0_i32_0, %c0_i32_1 : i32, i32, i32
  }
  func.func @transform_7(%arg0: i32) -> (i32, i32, i32) {
    %c0_i32 = arith.constant 0 : i32
    %c0_i32_0 = arith.constant 0 : i32
    %c0_i32_1 = arith.constant 0 : i32
    %c0_i32_2 = arith.constant 0 : i32
    return %c0_i32, %c0_i32_0, %c0_i32_1 : i32, i32, i32
  }
  func.func @transform_8(%arg0: i32) -> (i32, i32) {
    %c0_i32 = arith.constant 0 : i32
    %c0_i32_0 = arith.constant 0 : i32
    %c0_i32_1 = arith.constant 0 : i32
    return %c0_i32, %c0_i32_0 : i32, i32
  }
  func.func @transform_9(%arg0: i32) -> (i32, i32) {
    %c0_i32 = arith.constant 0 : i32
    %c0_i32_0 = arith.constant 0 : i32
    %c0_i32_1 = arith.constant 0 : i32
    return %c0_i32, %c0_i32_0 : i32, i32
  }
  func.func @transform_10(%arg0: i32) -> (i32, i32) {
    %c0_i32 = arith.constant 0 : i32
    %c0_i32_0 = arith.constant 0 : i32
    %c0_i32_1 = arith.constant 0 : i32
    return %c0_i32, %c0_i32_0 : i32, i32
  }
  func.func @transform_11(%arg0: i32) -> (i32, i32, i32) {
    %c0_i32 = arith.constant 0 : i32
    %c0_i32_0 = arith.constant 0 : i32
    %c0_i32_1 = arith.constant 0 : i32
    return %arg0, %c0_i32, %c0_i32_0 : i32, i32, i32
  }
}

</mosaic_0001>

<bundles_post_ra>
// kernel: cnnrnn_res_forward.1
= control target key start
LH: loop header
LB: loop body
LE: loop exit
PB: predicated region body
PF: predicated region fallthrough
CT: control target
= control target key end

     0   :  { %16 = vsyncpa [#allocation3], 0  ;;  %s9639_s0 = inlined_call_operand.vmem [shape: f32[2,16,8], index: 0, kind: input, shape index: {}]   ;;  %s9640_s1 = inlined_call_operand.vmem [shape: f32[2,4,16], index: 1, kind: input, shape index: {}]   ;;  %s9641_s2 = inlined_call_operand.vmem [shape: bf16[16,16], index: 2, kind: input, shape index: {}]   ;;  %s9642_s3 = inlined_call_operand.hbm [shape: bf16[3,8,32], index: 3, kind: input, shape index: {}]   ;;  %s9643_s4 = inlined_call_operand.vmem [shape: bf16[3,32,32], index: 4, kind: input, shape index: {}]   ;;  %s9644_s5 = inlined_call_operand.vmem [shape: f32[4,32], index: 5, kind: input, shape index: {}]   ;;  %s9645_s6 = inlined_call_operand.hbm [shape: bf16[3,32,32], index: 6, kind: input, shape index: {}]   ;;  %s9646_s7 = inlined_call_operand.hbm [shape: bf16[3,32,32], index: 7, kind: input, shape index: {}]   ;;  %s9647_s8 = inlined_call_operand.hbm [shape: f32[4,32], index: 8, kind: input, shape index: {}]   ;;  %s9648_s9 = inlined_call_operand.vmem [shape: bf16[36,128], index: 9, kind: input, shape index: {}]   ;;  %s9649_s10 = inlined_call_operand.vmem [shape: f32[1,128], index: 10, kind: input, shape index: {}]   ;;  %s9650_s11 = inlined_call_operand.vmem [shape: f32[2,16,128], index: 11, kind: output, shape index: {}]  }
   0x1   :  { %17 = vsyncpa [#allocation5], 0 }
   0x2   :  { %18 = vsyncpa [#allocation8], 0  ;;  %s8355_s17 = smov 0  }
   0x3 LB: > { %9654 = sst [smem:[#allocation12_spill]] %s8280_s17  ;;  %s8361_s18 = sadd.s32 4294967295, %s8280_s17   ;;  %s8280_s17 = sphi %s8355_s17, %s24_s17  }
   0x4   : > { %p6353_p0 = scmp.ge.s32.totalorder %s8280_s17, 1  ;;  %p296_p1 = scmp.lt.s32.totalorder %s8280_s17, 3 }
   0x5   : > { %p9652_p2 = scmp.eq.s32.totalorder %s8361_s18, 0  ;;  %s8282_s20 = smov [#allocation4]  }
   0x6   : > { %p8366_p3 = pnand %p6353_p0, %p296_p1  ;;  %s330_s21 = sshll.u32 %s8282_s20, 4  ;;  %s8370_s21 = int_to_ptr.vmem [resolvable:$true] %s330_s21 }
   0x7   : > { %s8283_s22 = smov [#allocation2]   ;;  %s8284_s25 = smov [#allocation6]  }
   0x8   : > { %s9655_s19 = scalar_select %p8366_p3, 1, 0 }
   0x9   : > { %p7718_p4 = pneg %p8366_p3  ;;  %s311_s23 = sshll.u32 %s8283_s22, 4  ;;  %s8374_s23 = int_to_ptr.vmem [resolvable:$true] %s311_s23 }
   0xa   : > { %s343_s26 = sshll.u32 %s8284_s25, 4  ;;  %s8285_s27 = smov [#allocation7]   ;;  %s8382_s26 = int_to_ptr.vmem [resolvable:$true] %s343_s26 }
   0xb   : > { %p8378_p5 = pnand %p9652_p2, %p7718_p4  ;;  %s8384_s28 = sshll.u32 %s8285_s27, 4  ;;  %s358_s28 = int_to_ptr.vmem [resolvable:$true] %s8384_s28 }
   0xc   : > { %s8150_s12 = scalar_lea.hbm %s9645_s6, 768 }
   0xd   : > { %p8151_p6 = scmp.ne.s32.totalorder %s9645_s6, %s8150_s12  ;;  %p8394_p7 = pneg %p8378_p5 }
   0xe   : > { %p8157_p10 = scmp.lt.u32.totalorder %s8150_s12, %s9645_s6 }
   0xf   : > { %p8153_p8 = pnand %p8394_p7, %p8151_p6 }
  0x11   : > { %p8154_p9 = pneg %p8153_p8 }
  0x13   : > { %p8159_p11 = pnand %p8157_p10, %p8154_p9 }
  0x15   : > { %8162 = shalt.err (!%p8159_p11)
}
  0x16   : > { %s8163_s22 = scalar_lea.vmem %s8370_s21, 768  ;;  %p8171_p1 = scmp.lt.s32.totalorder %s8370_s21, %s8370_s21 }
  0x17   : > { %p8164_p12 = scmp.ne.s32.totalorder %s8370_s21, %s8163_s22  ;;  %p8172_p4 = scmp.lt.s32.totalorder %s8163_s22, %s8163_s22 }
  0x19   : > { %p8166_p13 = pnand %p8164_p12, %p8394_p7  ;;  %p8173_p6 = por %p8172_p4, %p8171_p1 }
  0x1b   : > { %p8167_p0 = pneg %p8166_p13 }
  0x1d   : > { %p8174_p8 = pnand %p8173_p6, %p8167_p0 }
  0x1f   : > { %8177 = shalt.err (!%p8174_p8)
}
  0x20   : > { %s8286_s25 = smov 64   ;;  %s8287_s27 = smov 4  }
  0x21   : > { %7724 = dma.hbm_to_vmem [thread:$0]  (!%p8378_p5), %s9645_s6, 768, %s8370_s21, [#allocation5], %s8286_s25, %s8286_s25, %s8287_s27  }
  0x22   : > { %s8178_s14 = scalar_lea.hbm %s9642_s3, 192 }
  0x23   : > { %p8179_p9 = scmp.ne.s32.totalorder %s9642_s3, %s8178_s14  ;;  %p8185_p12 = scmp.lt.u32.totalorder %s8178_s14, %s9642_s3 }
  0x25   : > { %p8181_p10 = pnand %p8179_p9, %p8394_p7 }
  0x27   : > { %p8182_p11 = pneg %p8181_p10 }
  0x29   : > { %p8187_p13 = pnand %p8185_p12, %p8182_p11 }
  0x2b   : > { %8190 = shalt.err (!%p8187_p13)
}
  0x2c   : > { %s8191_s21 = scalar_lea.vmem %s8374_s23, 192  ;;  %p8199_p6 = scmp.lt.s32.totalorder %s8374_s23, %s8374_s23 }
  0x2d   : > { %p8192_p0 = scmp.ne.s32.totalorder %s8374_s23, %s8191_s21  ;;  %p8200_p8 = scmp.lt.s32.totalorder %s8191_s21, %s8191_s21 }
  0x2f   : > { %p8194_p1 = pnand %p8192_p0, %p8394_p7  ;;  %p8201_p9 = por %p8200_p8, %p8199_p6 }
  0x31   : > { %p8195_p4 = pneg %p8194_p1 }
  0x33   : > { %p8202_p10 = pnand %p8201_p9, %p8195_p4 }
  0x35   : > { %8205 = shalt.err (!%p8202_p10)
}
  0x36   : > { %7721 = dma.hbm_to_vmem [thread:$0]  (!%p8378_p5), %s9642_s3, 192, %s8374_s23, [#allocation3], %s8286_s25, %s8286_s25, %s8287_s27  }
  0x37   : > { %s8206_s13 = scalar_lea.hbm %s9646_s7, 768 }
  0x38   : > { %p8207_p11 = scmp.ne.s32.totalorder %s9646_s7, %s8206_s13  ;;  %p8213_p0 = scmp.lt.u32.totalorder %s8206_s13, %s9646_s7 }
  0x3a   : > { %p8209_p12 = pnand %p8207_p11, %p8394_p7 }
  0x3c   : > { %p8210_p13 = pneg %p8209_p12 }
  0x3e   : > { %p8215_p1 = pnand %p8213_p0, %p8210_p13 }
  0x40   : > { %8218 = shalt.err (!%p8215_p1)
}
  0x41   : > { %s8219_s23 = scalar_lea.vmem %s8382_s26, 768  ;;  %p8227_p9 = scmp.lt.s32.totalorder %s8382_s26, %s8382_s26 }
  0x42   : > { %p8220_p4 = scmp.ne.s32.totalorder %s8382_s26, %s8219_s23  ;;  %p8228_p10 = scmp.lt.s32.totalorder %s8219_s23, %s8219_s23 }
  0x44   : > { %p8222_p6 = pnand %p8220_p4, %p8394_p7  ;;  %p8229_p11 = por %p8228_p10, %p8227_p9 }
  0x46   : > { %p8223_p8 = pneg %p8222_p6 }
  0x48   : > { %p8230_p12 = pnand %p8229_p11, %p8223_p8 }
  0x4a   : > { %8233 = shalt.err (!%p8230_p12)
}
  0x4b   : > { %7727 = dma.hbm_to_vmem [thread:$0]  (!%p8378_p5), %s9646_s7, 768, %s8382_s26, [#allocation5], %s8286_s25, %s8286_s25, %s8287_s27  }
  0x4c   : > { %s8234_s12 = scalar_lea.hbm %s9647_s8, 64 }
  0x4d   : > { %p8235_p13 = scmp.ne.s32.totalorder %s9647_s8, %s8234_s12  ;;  %p8241_p4 = scmp.lt.u32.totalorder %s8234_s12, %s9647_s8 }
  0x4f   : > { %p8237_p0 = pnand %p8235_p13, %p8394_p7 }
  0x51   : > { %p8238_p1 = pneg %p8237_p0 }
  0x53   : > { %p8243_p6 = pnand %p8241_p4, %p8238_p1 }
  0x55   : > { %8246 = shalt.err (!%p8243_p6)
}
  0x56   : > { %s8247_s22 = scalar_lea.vmem %s358_s28, 64  ;;  %p8255_p11 = scmp.lt.s32.totalorder %s358_s28, %s358_s28 }
  0x57   : > { %p8248_p8 = scmp.ne.s32.totalorder %s358_s28, %s8247_s22  ;;  %p8256_p12 = scmp.lt.s32.totalorder %s8247_s22, %s8247_s22 }
  0x59   : > { %p8250_p9 = pnand %p8248_p8, %p8394_p7  ;;  %p8257_p2 = por %p8256_p12, %p8255_p11 }
  0x5b   : > { %p8251_p10 = pneg %p8250_p9 }
  0x5d   : > { %p8258_p3 = pnand %p8257_p2, %p8251_p10 }
  0x5f   : > { %8261 = shalt.err (!%p8258_p3)
}
  0x60   : > { %7730 = dma.hbm_to_vmem [thread:$0]  (!%p8378_p5), %s9647_s8, 64, %s358_s28, [#allocation8]  }
  0x61   : > { %p9658_p13 = scmp.ne.s32.totalorder %s9655_s19, 0 }
  0x62   : > { %p9659_p0 = scmp.eq.s32.totalorder (!%p9658_p13), %s8361_s18, 0 }
  0x63   : > { %391 = sbr.rel (%p9658_p13) target bundleno = 9265 (0x2431), region = 64 }
  0x6a   : > { %8267 = dma.done.wait (%p9659_p0), [#allocation3], 192   ;;  %p9660_p7 = pmov %p9659_p0 }
  0x6b   : > { %p9661_p1 = pmov %p9659_p0 }
  0x6c   : > { %8269 = vsyncadd (%p9660_p7), [#allocation3], 4294967104 }
  0x6d   : > { %8271 = dma.done.wait (%p9661_p1), [#allocation5], 1536   ;;  %p9662_p2 = pmov %p9659_p0 }
  0x6e   : > { %p9663_p3 = pmov %p9659_p0 }
  0x6f   : > { %8273 = vsyncadd (%p9662_p2), [#allocation5], 4294965760 }
  0x70   : > { %8275 = dma.done.wait (%p9663_p3), [#allocation8], 64   ;;  %p9664_p5 = pmov %p9659_p0 }
  0x71   : > { %p447_p4 = scmp.lt.s32.totalorder %s8361_s18, 1  ;;  %v8288_v0 = vmov 0.0   ;;  %vm8289_vm0 = vmmov 0   ;;  %v7795_v4 = vld [vmem:[%s9641_s2] sm:$0xff]   ;;  %vm472_vm1 = vcmask 130048   ;;  %vm542_vm2 = vcmask 1043456  }
  0x72   : > { %8277 = vsyncadd (%p9664_p5), [#allocation8], 4294967232  ;;  %6870 = vmatprep.subr.bf16.mxu1 %v8288_v0  ;;  %6872 = vmatprep.mubr.msk.bf16.mxu1 %vm8289_vm0, %v8288_v0  ;;  %v518_v5 = vld [vmem:[#allocation2 + $0x4] sm:$0xf]  ;;  %v517_v6 = vld [vmem:[#allocation2] sm:$0xf]  ;;  %v534_v23 = vlaneseq }
  0x73   : > { %s9667_s18 = smov (!%p447_p4, %s8361_s18), 1  ;;  %6882 = vmatprep.subr.bf16.mxu0 %v8288_v0  ;;  %6884 = vmatprep.mubr.msk.bf16.mxu0 %vm8289_vm0, %v8288_v0  ;;  %v592_v7 = vsel %vm542_vm2, %v518_v5, 0  ;;  %v544_v8 = vsel %vm542_vm2, %v517_v6, 0  ;;  %v519_v10 = vld [vmem:[#allocation2 + $0x8] sm:$0xf]  ;;  %vm538_vm3 = vcmask 64512  }
  0x74   : > { %s6557_s19 = sshll.u32 %s9667_s18, 4  ;;  %6883 = vmatpush3.bf16.msra.mxu0 %v592_v7  ;;  %v8533_v13 = vld [vmem:[%s9643_s4] sm:$0xff]   ;;  %v640_v16 = vsel %vm542_vm2, %v519_v10, 0  ;;  %v8542_v17 = vld [vmem:[%s9643_s4 + $0x8] sm:$0xff]   ;;  %v8554_v18 = vld [vmem:[%s9643_s4 + $0x10] sm:$0xff]   ;;  %v8290_v20 = vmov 0  }
  0x75   : > { %s451_s15 = scalar_lea.vmem %s9639_s0, %s6557_s19  ;;  %6894 = vmatprep.subr.bf16.mxu0 %v8288_v0  ;;  %v8560_v19 = vld [vmem:[%s9643_s4 + $0x20] sm:$0xff]   ;;  %v8568_v21 = vld [vmem:[%s9643_s4 + $0x18] sm:$0xff]   ;;  %v8577_v22 = vld [vmem:[%s9643_s4 + $0x28] sm:$0xff]   ;;  %v8600_v24 = vshrl.u32 %v534_v23, 7  ;;  %vm695_vm4 = vcmask 261120   ;;  %vm3251_vm5 = vcmask 1040384  }
  0x76   : > { %v464_v1 = vld [vmem:[%s451_s15] sm:$0xff]  ;;  %v465_v2 = vld [vmem:[%s451_s15 + $0x8] sm:$0xff]  ;;  %vm3253_vm6 = vcmask 1041408   ;;  %vm3255_vm7 = vcmask 1042432   ;;  %vm3258_vm8 = vcmask 1044480   ;;  %vm3260_vm9 = vcmask 1045504  }
  0x77   : > { %v466_v3 = vpack.c.bf16 %v465_v2, %v464_v1  ;;  %v536_v25 = vsub.s32 0, %v8600_v24  ;;  %v589_v26 = vsub.s32 1, %v8600_v24  ;;  %v532_v27 = vld [vmem:[%s9644_s5] sm:$0xf]  ;;  %v637_v40 = vsub.s32 2, %v8600_v24  ;;  %s6366_s22 = sshll.u32 %s9667_s18, 2 }
  0x78   : > { %vm3262_vm10 = vcmask 1046528   ;;  %s455_s24 = scalar_lea.vmem %s9640_s1, %s6366_s22  ;;  %s8291_s27 = smov 116   ;;  %vm6193_vm11 = vcmask 293888  }
  0x79   : > { %6871 = vmatpush3.bf16.msra.mxu1 %v466_v3  ;;  %v537_v30 = vrot.slane %v532_v27, %v536_v25  ;;  %v590_v31 = vrot.slane %v532_v27, %v589_v26  ;;  %v638_v44 = vrot.slane %v532_v27, %v637_v40  ;;  %s8292_s23 = smov 124   ;;  %s8293_s29 = smov 120  }
  0x7a   : > { %6876 = vmatprep.subr.bf16.mxu1 %v8288_v0  ;;  %s8294_s16 = smov 32  }
  0x7c   : > { %6873 = vmatmul.mubr.msk.bf16.vlgmr.msra.gmra.mrb[0].mxu1 %vm472_vm1, %v7795_v4  ;;  %v8626_v4 = vrot.slane %v532_v27, 3 }
  0x7d   : > { %6878 = vmatprep.mubr.msk.bf16.mxu1 %vm8289_vm0, %v8288_v0  ;;  %6877 = vmatpush3.bf16.msra.mxu1 %v544_v8 }
  0x7e   : > { %6888 = vmatprep.subr.bf16.mxu1 %v8288_v0 }
 0x14f   : > { %v510_v9 = vpop.f32.mrb[0].mxu1 }
 0x150   : > { %v6874_v11 = vpop.f32.mrb[1].mxu1 }
 0x151   : > { %v513_v12 = vpop.f32.mrb[2].mxu1 }
 0x152   : > { %v533_v14 = vpack.c.bf16 %v513_v12, %v510_v9  ;;  %v6875_v15 = vpop.f32.mrb[3].mxu1 }
 0x154   : > { %6879 = vmatmul.mubr.msk.bf16.vlgmr.msra.gmra.mrb[4].mxu1 %vm538_vm3, %v533_v14  ;;  %6885 = vmatmul.mubr.msk.bf16.vlgmr.msra.gmra.mrb[0].mxu0 %vm538_vm3, %v533_v14 }
 0x155   : > { %6895 = vmatpush3.bf16.msra.mxu0 %v8533_v13  ;;  %6889 = vmatpush3.bf16.msra.mxu1 %v640_v16 }
 0x156   : > { %6896 = vmatprep.subr.bf16.mxu0 %v8288_v0  ;;  %6890 = vmatprep.mubr.msk.bf16.mxu1 %vm8289_vm0, %v8288_v0 }
 0x157   : > { %6898 = vmatprep.mubr.msk.bf16.mxu0 %vm8289_vm0, %v8288_v0  ;;  %6902 = vmatprep.subr.bf16.mxu1 %v8288_v0 }
 0x159   : > { %6897 = vmatpush3.bf16.msra.mxu0 %v8542_v17 }
 0x15a   : > { %6910 = vmatprep.subr.bf16.mxu0 %v8288_v0 }
 0x15c   : > { %6891 = vmatmul.mubr.msk.bf16.vlgmr.msra.gmra.mrb[8].mxu1 %vm538_vm3, %v533_v14  ;;  %6899 = vmatmul.mubr.bf16.vlgmr.msra.gmra.mrb[4].mxu0 %v8290_v20 }
 0x15d   : > { %6903 = vmatpush3.bf16.msra.mxu1 %v8554_v18  ;;  %6906 = vmatprep.mubr.msk.bf16.mxu1 %vm8289_vm0, %v8288_v0 }
 0x15e   : > { %6904 = vmatprep.subr.bf16.mxu1 %v8288_v0  ;;  %6911 = vmatpush3.bf16.msra.mxu0 %v8560_v19 }
 0x15f   : > { %6912 = vmatprep.subr.bf16.mxu0 %v8288_v0  ;;  %6914 = vmatprep.mubr.msk.bf16.mxu0 %vm8289_vm0, %v8288_v0 }
 0x161   : > { %6905 = vmatpush3.bf16.msra.mxu1 %v8568_v21 }
 0x162   : > { %6913 = vmatpush3.bf16.msra.mxu0 %v8577_v22  ;;  %6918 = vmatprep.subr.bf16.mxu1 %v8288_v0 }
 0x163   : > { %6926 = vmatprep.subr.bf16.mxu0 %v8288_v0 }
 0x164   : > { %6907 = vmatmul.mubr.bf16.vlgmr.msra.gmra.mrb[12].mxu1 %v8290_v20 }
 0x165   : > { %6915 = vmatmul.mubr.bf16.vlgmr.msra.gmra.mrb[8].mxu0 %v8290_v20  ;;  %6919 = vmatpush3.bf16.msra.mxu1 %v8533_v13 }
 0x166   : > { %6927 = vmatpush3.bf16.msra.mxu0 %v8554_v18  ;;  %6920 = vmatprep.subr.bf16.mxu1 %v8288_v0 }
 0x167   : > { %6928 = vmatprep.subr.bf16.mxu0 %v8288_v0  ;;  %6922 = vmatprep.mubr.msk.bf16.mxu1 %vm8289_vm0, %v8288_v0 }
 0x168   : > { %6930 = vmatprep.mubr.msk.bf16.mxu0 %vm8289_vm0, %v8288_v0 }
 0x169   : > { %6921 = vmatpush3.bf16.msra.mxu1 %v8542_v17 }
 0x16a   : > { %6929 = vmatpush3.bf16.msra.mxu0 %v8568_v21  ;;  %6934 = vmatprep.subr.bf16.mxu1 %v8288_v0 }
 0x16b   : > { %6942 = vmatprep.subr.bf16.mxu0 %v8288_v0 }
 0x227   : > { %v580_v28 = vpop.f32.mrb[4].mxu1  ;;  %v628_v29 = vpop.f32.mrb[0].mxu0 }
 0x228   : > { %v6880_v32 = vpop.f32.mrb[5].mxu1  ;;  %v6886_v33 = vpop.f32.mrb[1].mxu0  ;;  %v8616_v41 = vadd.f32 %v580_v28, %v537_v30  ;;  %v8623_v54 = vadd.f32 %v628_v29, %v590_v31 }
 0x229   : > { %v583_v34 = vpop.f32.mrb[6].mxu1  ;;  %v631_v35 = vpop.f32.mrb[2].mxu0 }
 0x22a   : > { %v8611_v36 = vadd.f32 %v583_v34, %v537_v30  ;;  %v8613_v37 = vadd.f32 %v631_v35, %v590_v31  ;;  %v6881_v38 = vpop.f32.mrb[7].mxu1  ;;  %v6887_v39 = vpop.f32.mrb[3].mxu0 }
 0x22f   : > { %v676_v42 = vpop.f32.mrb[8].mxu1  ;;  %v733_v43 = vpop.f32.mrb[4].mxu0 }
 0x230   : > { %v846_v45 = vadd.f32 %v733_v43, %v8616_v41  ;;  %v6892_v46 = vpop.f32.mrb[9].mxu1  ;;  %v6900_v47 = vpop.f32.mrb[5].mxu0  ;;  %v8629_v9 = vadd.f32 %v676_v42, %v638_v44 }
 0x231   : > { %v679_v48 = vpop.f32.mrb[10].mxu1  ;;  %v736_v49 = vpop.f32.mrb[6].mxu0 }
 0x232   : > { %v6380_v50 = vmul.f32 -1.442695, %v846_v45  ;;  %v8621_v51 = vadd.f32 %v679_v48, %v638_v44  ;;  %v6893_v52 = vpop.f32.mrb[11].mxu1  ;;  %v6901_v53 = vpop.f32.mrb[7].mxu0 }
 0x234   : > { %7817 = vpow2.f32 %v6380_v50 }
 0x237   : > { %v785_v55 = vpop.f32.mrb[12].mxu1 }
 0x238   : > { %v853_v56 = vadd.f32 %v785_v55, %v8623_v54  ;;  %v6908_v57 = vpop.f32.mrb[13].mxu1  ;;  %v840_v58 = vpop.f32.mrb[8].mxu0 }
 0x239   : > { %v788_v59 = vpop.f32.mrb[14].mxu1  ;;  %v6916_v60 = vpop.f32.mrb[9].mxu0  ;;  %v841_v7 = vadd.f32 %v840_v58, %v8626_v4 }
 0x23a   : > { %v6381_v61 = vmul.f32 -1.442695, %v853_v56  ;;  %v6909_v62 = vpop.f32.mrb[15].mxu1  ;;  %v843_v63 = vpop.f32.mrb[10].mxu0 }
 0x23b   : > { %v6917_v1 = vpop.f32.mrb[11].mxu0 }
 0x23c   : > { %7819 = vpow2.f32 %v6381_v61 }
 0x23e   : > { %v7818_v2 = vpop.eup %7817 }
 0x23f   : > { %v850_v3 = vadd.f32 1.0, %v7818_v2 }
 0x241   : > { %7821 = vrcp.f32 %v850_v3 }
 0x246   : > { %v7820_v5 = vpop.eup %7819 }
 0x247   : > { %v857_v6 = vadd.f32 1.0, %v7820_v5 }
 0x249   : > { %7823 = vrcp.f32 %v857_v6 }
 0x24b   : > { %v7822_v8 = vpop.eup %7821 }
 0x24c   : > { %v860_v10 = vmul.f32 %v7822_v8, %v841_v7 }
 0x24e   : > { %v861_v11 = vadd.f32 %v860_v10, %v8629_v9 }
 0x250   : > { %7825 = vtanh.f32 %v861_v11 }
 0x253   : > { %v7824_v12 = vpop.eup %7823 }
 0x254   : > { %v863_v14 = vsub.f32 1.0, %v7824_v12  ;;  %v865_v16 = vmul.f32 0.0, %v7824_v12 }
 0x25a   : > { %v7826_v15 = vpop.eup %7825 }
 0x25b   : > { %v864_v23 = vmul.f32 %v7826_v15, %v863_v14 }
 0x25d   : > { %v8632_v28 = vadd.f32 %v865_v16, %v864_v23 }
 0x25f   : > { %v867_v27 = vpack.c.bf16 %v8632_v28, %v8632_v28  ;;  %v1020_v1 = vrot.slane %v8632_v28, 7 }
 0x261   : > { %6923 = vmatmul.mubr.msk.bf16.vlgmr.msra.gmra.mrb[16].mxu1 %vm695_vm4, %v867_v27  ;;  %6931 = vmatmul.mubr.msk.bf16.vlgmr.msra.gmra.mrb[12].mxu0 %vm695_vm4, %v867_v27 }
 0x262   : > { %6935 = vmatpush3.bf16.msra.mxu1 %v8560_v19  ;;  %6938 = vmatprep.mubr.msk.bf16.mxu1 %vm8289_vm0, %v8288_v0 }
 0x263   : > { %6936 = vmatprep.subr.bf16.mxu1 %v8288_v0  ;;  %6943 = vmatpush3.bf16.msra.mxu0 %v8533_v13 }
 0x264   : > { %6944 = vmatprep.subr.bf16.mxu0 %v8288_v0  ;;  %6946 = vmatprep.mubr.msk.bf16.mxu0 %vm8289_vm0, %v8288_v0 }
 0x266   : > { %6937 = vmatpush3.bf16.msra.mxu1 %v8577_v22 }
 0x267   : > { %6950 = vmatprep.subr.bf16.mxu1 %v8288_v0  ;;  %6945 = vmatpush3.bf16.msra.mxu0 %v8542_v17 }
 0x268   : > { %6958 = vmatprep.subr.bf16.mxu0 %v8288_v0 }
 0x269   : > { %6939 = vmatmul.mubr.msk.bf16.vlgmr.msra.gmra.mrb[20].mxu1 %vm695_vm4, %v867_v27 }
 0x26a   : > { %6951 = vmatpush3.bf16.msra.mxu1 %v8554_v18  ;;  %6954 = vmatprep.mubr.msk.bf16.mxu1 %vm8289_vm0, %v8288_v0 }
 0x26b   : > { %6952 = vmatprep.subr.bf16.mxu1 %v8288_v0 }
 0x26e   : > { %6953 = vmatpush3.bf16.msra.mxu1 %v8568_v21 }
 0x26f   : > { %6966 = vmatprep.subr.bf16.mxu1 %v8288_v0 }
 0x334   : > { %v905_v29 = vpop.f32.mrb[16].mxu1  ;;  %v945_v30 = vpop.f32.mrb[12].mxu0 }
 0x335   : > { %v992_v31 = vrot.slane %v905_v29, 7  ;;  %v6924_v32 = vpop.f32.mrb[17].mxu1  ;;  %v6932_v33 = vpop.f32.mrb[13].mxu0  ;;  %v1002_v34 = vrot.slane %v945_v30, 7 }
 0x336   : > { %v908_v35 = vpop.f32.mrb[18].mxu1  ;;  %v948_v38 = vpop.f32.mrb[14].mxu0 }
 0x337   : > { %v994_v39 = vadd.f32 %v992_v31, %v8616_v41  ;;  %v6925_v42 = vpop.f32.mrb[19].mxu1  ;;  %v6933_v43 = vpop.f32.mrb[15].mxu0  ;;  %v1004_v45 = vadd.f32 %v1002_v34, %v8623_v54 }
 0x339   : > { %v6385_v44 = vmul.f32 -1.442695, %v994_v39  ;;  %v6386_v48 = vmul.f32 -1.442695, %v1004_v45 }
 0x33b   : > { %7827 = vpow2.f32 %v6385_v44 }
 0x33c   : > { %v985_v46 = vpop.f32.mrb[20].mxu1  ;;  %7829 = vpow2.f32 %v6386_v48 }
 0x33d   : > { %v6940_v47 = vpop.f32.mrb[21].mxu1  ;;  %v986_v56 = vadd.f32 %v985_v46, %v8626_v4 }
 0x33e   : > { %v988_v49 = vpop.f32.mrb[22].mxu1 }
 0x33f   : > { %v6941_v50 = vpop.f32.mrb[23].mxu1  ;;  %v1012_v58 = vrot.slane %v986_v56, 7 }
 0x345   : > { %v7828_v52 = vpop.eup %7827 }
 0x346   : > { %v998_v53 = vadd.f32 1.0, %v7828_v52  ;;  %v7830_v55 = vpop.eup %7829 }
 0x347   : > { %v1008_v57 = vadd.f32 1.0, %v7830_v55 }
 0x348   : > { %7831 = vrcp.f32 %v998_v53 }
 0x349   : > { %7833 = vrcp.f32 %v1008_v57 }
 0x352   : > { %v7832_v59 = vpop.eup %7831 }
 0x353   : > { %v1014_v60 = vmul.f32 %v7832_v59, %v1012_v58  ;;  %v7834_v62 = vpop.eup %7833 }
 0x354   : > { %v1017_v63 = vsub.f32 1.0, %v7834_v62  ;;  %v1022_v3 = vmul.f32 %v7834_v62, %v1020_v1 }
 0x355   : > { %v1015_v61 = vadd.f32 %v1014_v60, %v8629_v9 }
 0x357   : > { %7835 = vtanh.f32 %v1015_v61 }
 0x361   : > { %v7836_v2 = vpop.eup %7835 }
 0x362   : > { %v1018_v5 = vmul.f32 %v7836_v2, %v1017_v63 }
 0x364   : > { %v8662_v6 = vadd.f32 %v1022_v3, %v1018_v5 }
 0x366   : > { %v1024_v7 = vpack.c.bf16 %v8662_v6, %v8662_v6  ;;  %v1180_v50 = vrot.slane %v8662_v6, 7  ;;  %v3252_v61 = vsel %vm3251_vm5, %v8632_v28, %v8662_v6 }
 0x368   : > { %v1026_v8 = vshrl.u32 %v1024_v7, 16 }
 0x36a   : > { %6947 = vmatmul.mubr.msk.bf16.vlgmr.msra.gmra.mrb[16].mxu0 %vm695_vm4, %v1026_v8  ;;  %6955 = vmatmul.mubr.msk.bf16.vlgmr.msra.gmra.mrb[24].mxu1 %vm695_vm4, %v1026_v8 }
 0x36b   : > { %6959 = vmatpush3.bf16.msra.mxu0 %v8560_v19  ;;  %6962 = vmatprep.mubr.msk.bf16.mxu0 %vm8289_vm0, %v8288_v0 }
 0x36c   : > { %6960 = vmatprep.subr.bf16.mxu0 %v8288_v0  ;;  %6967 = vmatpush3.bf16.msra.mxu1 %v8533_v13 }
 0x36d   : > { %6968 = vmatprep.subr.bf16.mxu1 %v8288_v0  ;;  %6970 = vmatprep.mubr.msk.bf16.mxu1 %vm8289_vm0, %v8288_v0 }
 0x36f   : > { %6961 = vmatpush3.bf16.msra.mxu0 %v8577_v22 }
 0x370   : > { %6974 = vmatprep.subr.bf16.mxu0 %v8288_v0  ;;  %6969 = vmatpush3.bf16.msra.mxu1 %v8542_v17 }
 0x371   : > { %6982 = vmatprep.subr.bf16.mxu1 %v8288_v0 }
 0x372   : > { %6963 = vmatmul.mubr.msk.bf16.vlgmr.msra.gmra.mrb[20].mxu0 %vm695_vm4, %v1026_v8 }
 0x373   : > { %6975 = vmatpush3.bf16.msra.mxu0 %v8554_v18  ;;  %6978 = vmatprep.mubr.msk.bf16.mxu0 %vm8289_vm0, %v8288_v0 }
 0x374   : > { %6976 = vmatprep.subr.bf16.mxu0 %v8288_v0 }
 0x377   : > { %6977 = vmatpush3.bf16.msra.mxu0 %v8568_v21 }
 0x378   : > { %6990 = vmatprep.subr.bf16.mxu0 %v8288_v0 }
 0x43d   : > { %v1065_v10 = vpop.f32.mrb[16].mxu0  ;;  %v1105_v11 = vpop.f32.mrb[24].mxu1 }
 0x43e   : > { %v1152_v12 = vrot.slane %v1065_v10, 6  ;;  %v1162_v14 = vrot.slane %v1105_v11, 6  ;;  %v6948_v15 = vpop.f32.mrb[17].mxu0  ;;  %v6956_v16 = vpop.f32.mrb[25].mxu1 }
 0x43f   : > { %v1068_v23 = vpop.f32.mrb[18].mxu0  ;;  %v1108_v27 = vpop.f32.mrb[26].mxu1 }
 0x440   : > { %v1154_v29 = vadd.f32 %v1152_v12, %v8616_v41  ;;  %v1164_v30 = vadd.f32 %v1162_v14, %v8623_v54  ;;  %v6949_v31 = vpop.f32.mrb[19].mxu0  ;;  %v6957_v32 = vpop.f32.mrb[27].mxu1 }
 0x442   : > { %v6390_v33 = vmul.f32 -1.442695, %v1154_v29  ;;  %v6391_v34 = vmul.f32 -1.442695, %v1164_v30 }
 0x444   : > { %7837 = vpow2.f32 %v6390_v33 }
 0x445   : > { %7839 = vpow2.f32 %v6391_v34  ;;  %v1145_v35 = vpop.f32.mrb[20].mxu0 }
 0x446   : > { %v6964_v38 = vpop.f32.mrb[21].mxu0  ;;  %v1146_v47 = vadd.f32 %v1145_v35, %v8626_v4 }
 0x447   : > { %v1148_v39 = vpop.f32.mrb[22].mxu0 }
 0x448   : > { %v6965_v42 = vpop.f32.mrb[23].mxu0  ;;  %v1172_v48 = vrot.slane %v1146_v47, 6 }
 0x44e   : > { %v7838_v43 = vpop.eup %7837 }
 0x44f   : > { %v7840_v44 = vpop.eup %7839  ;;  %v1158_v45 = vadd.f32 1.0, %v7838_v43 }
 0x450   : > { %v1168_v46 = vadd.f32 1.0, %v7840_v44 }
 0x451   : > { %7841 = vrcp.f32 %v1158_v45 }
 0x452   : > { %7843 = vrcp.f32 %v1168_v46 }
 0x45b   : > { %v7842_v49 = vpop.eup %7841 }
 0x45c   : > { %v7844_v52 = vpop.eup %7843  ;;  %v1174_v53 = vmul.f32 %v7842_v49, %v1172_v48 }
 0x45d   : > { %v1182_v55 = vmul.f32 %v7844_v52, %v1180_v50  ;;  %v1177_v57 = vsub.f32 1.0, %v7844_v52 }
 0x45e   : > { %v1175_v56 = vadd.f32 %v1174_v53, %v8629_v9 }
 0x460   : > { %7845 = vtanh.f32 %v1175_v56 }
 0x46a   : > { %v7846_v58 = vpop.eup %7845 }
 0x46b   : > { %v1178_v59 = vmul.f32 %v7846_v58, %v1177_v57 }
 0x46d   : > { %v1183_v60 = vadd.f32 %v1182_v55, %v1178_v59 }
 0x46f   : > { %v1184_v62 = vpack.c.bf16 %v1183_v60, %v1183_v60  ;;  %v3254_v63 = vsel %vm3253_vm6, %v3252_v61, %v1183_v60  ;;  %v1339_v43 = vrot.slane %v1183_v60, 7 }
 0x471   : > { %v1186_v1 = vrot.slane %v1184_v62, 1 }
 0x473   : > { %6971 = vmatmul.mubr.msk.bf16.vlgmr.msra.gmra.mrb[28].mxu1 %vm695_vm4, %v1186_v1  ;;  %6979 = vmatmul.mubr.msk.bf16.vlgmr.msra.gmra.mrb[24].mxu0 %vm695_vm4, %v1186_v1 }
 0x474   : > { %6983 = vmatpush3.bf16.msra.mxu1 %v8560_v19  ;;  %6986 = vmatprep.mubr.msk.bf16.mxu1 %vm8289_vm0, %v8288_v0 }
 0x475   : > { %6984 = vmatprep.subr.bf16.mxu1 %v8288_v0  ;;  %6991 = vmatpush3.bf16.msra.mxu0 %v8533_v13 }
 0x476   : > { %6992 = vmatprep.subr.bf16.mxu0 %v8288_v0  ;;  %6994 = vmatprep.mubr.msk.bf16.mxu0 %vm8289_vm0, %v8288_v0 }
 0x478   : > { %6985 = vmatpush3.bf16.msra.mxu1 %v8577_v22 }
 0x479   : > { %6998 = vmatprep.subr.bf16.mxu1 %v8288_v0  ;;  %6993 = vmatpush3.bf16.msra.mxu0 %v8542_v17 }
 0x47a   : > { %7006 = vmatprep.subr.bf16.mxu0 %v8288_v0 }
 0x47b   : > { %6987 = vmatmul.mubr.msk.bf16.vlgmr.msra.gmra.mrb[32].mxu1 %vm695_vm4, %v1186_v1 }
 0x47c   : > { %6999 = vmatpush3.bf16.msra.mxu1 %v8554_v18  ;;  %7002 = vmatprep.mubr.msk.bf16.mxu1 %vm8289_vm0, %v8288_v0 }
 0x47d   : > { %7000 = vmatprep.subr.bf16.mxu1 %v8288_v0 }
 0x480   : > { %7001 = vmatpush3.bf16.msra.mxu1 %v8568_v21 }
 0x481   : > { %7014 = vmatprep.subr.bf16.mxu1 %v8288_v0 }
 0x546   : > { %v1224_v28 = vpop.f32.mrb[28].mxu1  ;;  %v1264_v2 = vpop.f32.mrb[24].mxu0 }
 0x547   : > { %v1311_v3 = vrot.slane %v1224_v28, 5  ;;  %v1321_v5 = vrot.slane %v1264_v2, 5  ;;  %v6972_v6 = vpop.f32.mrb[29].mxu1  ;;  %v6980_v7 = vpop.f32.mrb[25].mxu0 }
 0x548   : > { %v1227_v8 = vpop.f32.mrb[30].mxu1  ;;  %v1267_v10 = vpop.f32.mrb[26].mxu0 }
 0x549   : > { %v1313_v11 = vadd.f32 %v1311_v3, %v8616_v41  ;;  %v1323_v12 = vadd.f32 %v1321_v5, %v8623_v54  ;;  %v6973_v14 = vpop.f32.mrb[31].mxu1  ;;  %v6981_v15 = vpop.f32.mrb[27].mxu0 }
 0x54b   : > { %v6395_v16 = vmul.f32 -1.442695, %v1313_v11  ;;  %v6396_v23 = vmul.f32 -1.442695, %v1323_v12 }
 0x54d   : > { %7847 = vpow2.f32 %v6395_v16 }
 0x54e   : > { %7849 = vpow2.f32 %v6396_v23  ;;  %v1304_v27 = vpop.f32.mrb[32].mxu1 }
 0x54f   : > { %v6988_v29 = vpop.f32.mrb[33].mxu1  ;;  %v1305_v38 = vadd.f32 %v1304_v27, %v8626_v4 }
 0x550   : > { %v1307_v30 = vpop.f32.mrb[34].mxu1 }
 0x551   : > { %v6989_v31 = vpop.f32.mrb[35].mxu1  ;;  %v1331_v39 = vrot.slane %v1305_v38, 5 }
 0x557   : > { %v7848_v32 = vpop.eup %7847 }
 0x558   : > { %v7850_v33 = vpop.eup %7849  ;;  %v1317_v34 = vadd.f32 1.0, %v7848_v32 }
 0x559   : > { %v1327_v35 = vadd.f32 1.0, %v7850_v33 }
 0x55a   : > { %7851 = vrcp.f32 %v1317_v34 }
 0x55b   : > { %7853 = vrcp.f32 %v1327_v35 }
 0x564   : > { %v7852_v42 = vpop.eup %7851 }
 0x565   : > { %v7854_v44 = vpop.eup %7853  ;;  %v1333_v45 = vmul.f32 %v7852_v42, %v1331_v39 }
 0x566   : > { %v1341_v46 = vmul.f32 %v7854_v44, %v1339_v43  ;;  %v1336_v48 = vsub.f32 1.0, %v7854_v44 }
 0x567   : > { %v1334_v47 = vadd.f32 %v1333_v45, %v8629_v9 }
 0x569   : > { %7855 = vtanh.f32 %v1334_v47 }
 0x573   : > { %v7856_v49 = vpop.eup %7855 }
 0x574   : > { %v1337_v50 = vmul.f32 %v7856_v49, %v1336_v48 }
 0x576   : > { %v1342_v52 = vadd.f32 %v1341_v46, %v1337_v50 }
 0x578   : > { %v1343_v53 = vpack.c.bf16 %v1342_v52, %v1342_v52  ;;  %v3256_v55 = vsel %vm3255_vm7, %v3254_v63, %v1342_v52  ;;  %v1500_v32 = vrot.slane %v1342_v52, 7 }
 0x57a   : > { %v1345_v56 = vshrl.u32 %v1343_v53, 16 }
 0x57c   : > { %v1347_v57 = vrot.slane %v1345_v56, 1 }
 0x57e   : > { %6995 = vmatmul.mubr.msk.bf16.vlgmr.msra.gmra.mrb[28].mxu0 %vm695_vm4, %v1347_v57  ;;  %7003 = vmatmul.mubr.msk.bf16.vlgmr.msra.gmra.mrb[36].mxu1 %vm695_vm4, %v1347_v57 }
 0x57f   : > { %7007 = vmatpush3.bf16.msra.mxu0 %v8560_v19  ;;  %7010 = vmatprep.mubr.msk.bf16.mxu0 %vm8289_vm0, %v8288_v0 }
 0x580   : > { %7008 = vmatprep.subr.bf16.mxu0 %v8288_v0  ;;  %7015 = vmatpush3.bf16.msra.mxu1 %v8533_v13 }
 0x581   : > { %7016 = vmatprep.subr.bf16.mxu1 %v8288_v0  ;;  %7018 = vmatprep.mubr.msk.bf16.mxu1 %vm8289_vm0, %v8288_v0 }
 0x583   : > { %7009 = vmatpush3.bf16.msra.mxu0 %v8577_v22 }
 0x584   : > { %7022 = vmatprep.subr.bf16.mxu0 %v8288_v0  ;;  %7017 = vmatpush3.bf16.msra.mxu1 %v8542_v17 }
 0x585   : > { %7030 = vmatprep.subr.bf16.mxu1 %v8288_v0 }
 0x586   : > { %7011 = vmatmul.mubr.msk.bf16.vlgmr.msra.gmra.mrb[32].mxu0 %vm695_vm4, %v1347_v57 }
 0x587   : > { %7023 = vmatpush3.bf16.msra.mxu0 %v8554_v18  ;;  %7026 = vmatprep.mubr.msk.bf16.mxu0 %vm8289_vm0, %v8288_v0 }
 0x588   : > { %7024 = vmatprep.subr.bf16.mxu0 %v8288_v0 }
 0x58b   : > { %7025 = vmatpush3.bf16.msra.mxu0 %v8568_v21 }
 0x58c   : > { %7038 = vmatprep.subr.bf16.mxu0 %v8288_v0 }
 0x651   : > { %v1385_v58 = vpop.f32.mrb[28].mxu0  ;;  %v1425_v59 = vpop.f32.mrb[36].mxu1 }
 0x652   : > { %v1472_v60 = vrot.slane %v1385_v58, 4  ;;  %v1482_v61 = vrot.slane %v1425_v59, 4  ;;  %v6996_v62 = vpop.f32.mrb[29].mxu0  ;;  %v7004_v63 = vpop.f32.mrb[37].mxu1 }
 0x653   : > { %v1388_v1 = vpop.f32.mrb[30].mxu0  ;;  %v1428_v28 = vpop.f32.mrb[38].mxu1 }
 0x654   : > { %v1474_v2 = vadd.f32 %v1472_v60, %v8616_v41  ;;  %v1484_v3 = vadd.f32 %v1482_v61, %v8623_v54  ;;  %v6997_v5 = vpop.f32.mrb[31].mxu0  ;;  %v7005_v6 = vpop.f32.mrb[39].mxu1 }
 0x656   : > { %v6400_v7 = vmul.f32 -1.442695, %v1474_v2  ;;  %v6401_v8 = vmul.f32 -1.442695, %v1484_v3 }
 0x658   : > { %7857 = vpow2.f32 %v6400_v7 }
 0x659   : > { %7859 = vpow2.f32 %v6401_v8  ;;  %v1465_v10 = vpop.f32.mrb[32].mxu0 }
 0x65a   : > { %v7012_v11 = vpop.f32.mrb[33].mxu0  ;;  %v1466_v29 = vadd.f32 %v1465_v10, %v8626_v4 }
 0x65b   : > { %v1468_v12 = vpop.f32.mrb[34].mxu0 }
 0x65c   : > { %v7013_v14 = vpop.f32.mrb[35].mxu0  ;;  %v1492_v30 = vrot.slane %v1466_v29, 4 }
 0x662   : > { %v7858_v15 = vpop.eup %7857 }
 0x663   : > { %v7860_v16 = vpop.eup %7859  ;;  %v1478_v23 = vadd.f32 1.0, %v7858_v15 }
 0x664   : > { %v1488_v27 = vadd.f32 1.0, %v7860_v16 }
 0x665   : > { %7861 = vrcp.f32 %v1478_v23 }
 0x666   : > { %7863 = vrcp.f32 %v1488_v27 }
 0x66f   : > { %v7862_v31 = vpop.eup %7861 }
 0x670   : > { %v7864_v33 = vpop.eup %7863  ;;  %v1494_v34 = vmul.f32 %v7862_v31, %v1492_v30 }
 0x671   : > { %v1502_v35 = vmul.f32 %v7864_v33, %v1500_v32  ;;  %v1497_v39 = vsub.f32 1.0, %v7864_v33 }
 0x672   : > { %v1495_v38 = vadd.f32 %v1494_v34, %v8629_v9 }
 0x674   : > { %7865 = vtanh.f32 %v1495_v38 }
 0x67e   : > { %v7866_v42 = vpop.eup %7865 }
 0x67f   : > { %v1498_v43 = vmul.f32 %v7866_v42, %v1497_v39 }
 0x681   : > { %v1503_v44 = vadd.f32 %v1502_v35, %v1498_v43 }
 0x683   : > { %v1504_v45 = vpack.c.bf16 %v1503_v44, %v1503_v44  ;;  %v3257_v46 = vsel %vm542_vm2, %v3256_v55, %v1503_v44  ;;  %v1659_v14 = vrot.slane %v1503_v44, 7 }
 0x685   : > { %v1506_v47 = vrot.slane %v1504_v45, 2 }
 0x687   : > { %7019 = vmatmul.mubr.msk.bf16.vlgmr.msra.gmra.mrb[40].mxu1 %vm695_vm4, %v1506_v47  ;;  %7027 = vmatmul.mubr.msk.bf16.vlgmr.msra.gmra.mrb[36].mxu0 %vm695_vm4, %v1506_v47 }
 0x688   : > { %7031 = vmatpush3.bf16.msra.mxu1 %v8560_v19  ;;  %7034 = vmatprep.mubr.msk.bf16.mxu1 %vm8289_vm0, %v8288_v0 }
 0x689   : > { %7032 = vmatprep.subr.bf16.mxu1 %v8288_v0  ;;  %7039 = vmatpush3.bf16.msra.mxu0 %v8533_v13 }
 0x68a   : > { %7040 = vmatprep.subr.bf16.mxu0 %v8288_v0  ;;  %7042 = vmatprep.mubr.msk.bf16.mxu0 %vm8289_vm0, %v8288_v0 }
 0x68c   : > { %7033 = vmatpush3.bf16.msra.mxu1 %v8577_v22 }
 0x68d   : > { %7046 = vmatprep.subr.bf16.mxu1 %v8288_v0  ;;  %7041 = vmatpush3.bf16.msra.mxu0 %v8542_v17 }
 0x68e   : > { %7054 = vmatprep.subr.bf16.mxu0 %v8288_v0 }
 0x68f   : > { %7035 = vmatmul.mubr.msk.bf16.vlgmr.msra.gmra.mrb[44].mxu1 %vm695_vm4, %v1506_v47 }
 0x690   : > { %7047 = vmatpush3.bf16.msra.mxu1 %v8554_v18  ;;  %7050 = vmatprep.mubr.msk.bf16.mxu1 %vm8289_vm0, %v8288_v0 }
 0x691   : > { %7048 = vmatprep.subr.bf16.mxu1 %v8288_v0 }
 0x694   : > { %7049 = vmatpush3.bf16.msra.mxu1 %v8568_v21 }
 0x695   : > { %7062 = vmatprep.subr.bf16.mxu1 %v8288_v0 }
 0x75a   : > { %v1544_v48 = vpop.f32.mrb[40].mxu1  ;;  %v1584_v49 = vpop.f32.mrb[36].mxu0 }
 0x75b   : > { %v1631_v50 = vrot.slane %v1544_v48, 3  ;;  %v1641_v52 = vrot.slane %v1584_v49, 3  ;;  %v7020_v53 = vpop.f32.mrb[41].mxu1  ;;  %v7028_v55 = vpop.f32.mrb[37].mxu0 }
 0x75c   : > { %v1547_v56 = vpop.f32.mrb[42].mxu1  ;;  %v1587_v57 = vpop.f32.mrb[38].mxu0 }
 0x75d   : > { %v1633_v58 = vadd.f32 %v1631_v50, %v8616_v41  ;;  %v1643_v59 = vadd.f32 %v1641_v52, %v8623_v54  ;;  %v7021_v60 = vpop.f32.mrb[43].mxu1  ;;  %v7029_v61 = vpop.f32.mrb[39].mxu0 }
 0x75f   : > { %v6405_v62 = vmul.f32 -1.442695, %v1633_v58  ;;  %v6406_v63 = vmul.f32 -1.442695, %v1643_v59 }
 0x761   : > { %7867 = vpow2.f32 %v6405_v62 }
 0x762   : > { %7869 = vpow2.f32 %v6406_v63  ;;  %v1624_v1 = vpop.f32.mrb[44].mxu1 }
 0x763   : > { %v7036_v28 = vpop.f32.mrb[45].mxu1  ;;  %v1625_v10 = vadd.f32 %v1624_v1, %v8626_v4 }
 0x764   : > { %v1627_v2 = vpop.f32.mrb[46].mxu1 }
 0x765   : > { %v7037_v3 = vpop.f32.mrb[47].mxu1  ;;  %v1651_v11 = vrot.slane %v1625_v10, 3 }
 0x76b   : > { %v7868_v5 = vpop.eup %7867 }
 0x76c   : > { %v7870_v6 = vpop.eup %7869  ;;  %v1637_v7 = vadd.f32 1.0, %v7868_v5 }
 0x76d   : > { %v1647_v8 = vadd.f32 1.0, %v7870_v6 }
 0x76e   : > { %7871 = vrcp.f32 %v1637_v7 }
 0x76f   : > { %7873 = vrcp.f32 %v1647_v8 }
 0x778   : > { %v7872_v12 = vpop.eup %7871 }
 0x779   : > { %v7874_v15 = vpop.eup %7873  ;;  %v1653_v16 = vmul.f32 %v7872_v12, %v1651_v11 }
 0x77a   : > { %v1661_v23 = vmul.f32 %v7874_v15, %v1659_v14  ;;  %v1656_v29 = vsub.f32 1.0, %v7874_v15 }
 0x77b   : > { %v1654_v27 = vadd.f32 %v1653_v16, %v8629_v9 }
 0x77d   : > { %7875 = vtanh.f32 %v1654_v27 }
 0x787   : > { %v7876_v30 = vpop.eup %7875 }
 0x788   : > { %v1657_v31 = vmul.f32 %v7876_v30, %v1656_v29 }
 0x78a   : > { %v1662_v32 = vadd.f32 %v1661_v23, %v1657_v31 }
 0x78c   : > { %v1663_v33 = vpack.c.bf16 %v1662_v32, %v1662_v32  ;;  %v8774_v34 = vsel %vm3258_vm8, %v3257_v46, %v1662_v32  ;;  %v1820_v5 = vrot.slane %v1662_v32, 7 }
 0x78e   : > { %v1665_v35 = vshrl.u32 %v1663_v33, 16 }
 0x790   : > { %v1667_v38 = vrot.slane %v1665_v35, 2 }
 0x792   : > { %7043 = vmatmul.mubr.msk.bf16.vlgmr.msra.gmra.mrb[40].mxu0 %vm695_vm4, %v1667_v38  ;;  %7051 = vmatmul.mubr.msk.bf16.vlgmr.msra.gmra.mrb[48].mxu1 %vm695_vm4, %v1667_v38 }
 0x793   : > { %7055 = vmatpush3.bf16.msra.mxu0 %v8560_v19  ;;  %7058 = vmatprep.mubr.msk.bf16.mxu0 %vm8289_vm0, %v8288_v0 }
 0x794   : > { %7056 = vmatprep.subr.bf16.mxu0 %v8288_v0  ;;  %7063 = vmatpush3.bf16.msra.mxu1 %v8533_v13 }
 0x795   : > { %7064 = vmatprep.subr.bf16.mxu1 %v8288_v0  ;;  %7066 = vmatprep.mubr.msk.bf16.mxu1 %vm8289_vm0, %v8288_v0 }
 0x797   : > { %7057 = vmatpush3.bf16.msra.mxu0 %v8577_v22 }
 0x798   : > { %7070 = vmatprep.subr.bf16.mxu0 %v8288_v0  ;;  %7065 = vmatpush3.bf16.msra.mxu1 %v8542_v17 }
 0x799   : > { %7078 = vmatprep.subr.bf16.mxu1 %v8288_v0 }
 0x79a   : > { %7059 = vmatmul.mubr.msk.bf16.vlgmr.msra.gmra.mrb[44].mxu0 %vm695_vm4, %v1667_v38 }
 0x79b   : > { %7071 = vmatpush3.bf16.msra.mxu0 %v8554_v18  ;;  %7074 = vmatprep.mubr.msk.bf16.mxu0 %vm8289_vm0, %v8288_v0 }
 0x79c   : > { %7072 = vmatprep.subr.bf16.mxu0 %v8288_v0 }
 0x79f   : > { %7073 = vmatpush3.bf16.msra.mxu0 %v8568_v21 }
 0x7a0   : > { %7086 = vmatprep.subr.bf16.mxu0 %v8288_v0 }
 0x865   : > { %v1705_v39 = vpop.f32.mrb[40].mxu0  ;;  %v1745_v42 = vpop.f32.mrb[48].mxu1 }
 0x866   : > { %v1792_v43 = vrot.slane %v1705_v39, 2  ;;  %v1802_v44 = vrot.slane %v1745_v42, 2  ;;  %v7044_v45 = vpop.f32.mrb[41].mxu0  ;;  %v7052_v46 = vpop.f32.mrb[49].mxu1 }
 0x867   : > { %v1708_v47 = vpop.f32.mrb[42].mxu0  ;;  %v1748_v48 = vpop.f32.mrb[50].mxu1 }
 0x868   : > { %v1794_v49 = vadd.f32 %v1792_v43, %v8616_v41  ;;  %v1804_v50 = vadd.f32 %v1802_v44, %v8623_v54  ;;  %v7045_v52 = vpop.f32.mrb[43].mxu0  ;;  %v7053_v53 = vpop.f32.mrb[51].mxu1 }
 0x86a   : > { %v6410_v55 = vmul.f32 -1.442695, %v1794_v49  ;;  %v6411_v56 = vmul.f32 -1.442695, %v1804_v50 }
 0x86c   : > { %7877 = vpow2.f32 %v6410_v55 }
 0x86d   : > { %7879 = vpow2.f32 %v6411_v56  ;;  %v1785_v57 = vpop.f32.mrb[44].mxu0 }
 0x86e   : > { %v7060_v58 = vpop.f32.mrb[45].mxu0  ;;  %v1786_v28 = vadd.f32 %v1785_v57, %v8626_v4 }
 0x86f   : > { %v1788_v59 = vpop.f32.mrb[46].mxu0 }
 0x870   : > { %v7061_v60 = vpop.f32.mrb[47].mxu0  ;;  %v1812_v2 = vrot.slane %v1786_v28, 2  ;;  %v8845_v28 = vld [vmem:[%s9643_s4] sm:$0xff]  }
 0x876   : > { %v7878_v61 = vpop.eup %7877 }
 0x877   : > { %v7880_v62 = vpop.eup %7879  ;;  %v1798_v63 = vadd.f32 1.0, %v7878_v61 }
 0x878   : > { %v1808_v1 = vadd.f32 1.0, %v7880_v62 }
 0x879   : > { %7881 = vrcp.f32 %v1798_v63 }
 0x87a   : > { %7883 = vrcp.f32 %v1808_v1 }
 0x883   : > { %v7882_v3 = vpop.eup %7881 }
 0x884   : > { %v7884_v6 = vpop.eup %7883  ;;  %v1814_v7 = vmul.f32 %v7882_v3, %v1812_v2  ;;  %v8854_v2 = vld [vmem:[%s9643_s4 + $0x28] sm:$0xff]  }
 0x885   : > { %v1822_v8 = vmul.f32 %v7884_v6, %v1820_v5  ;;  %v1817_v11 = vsub.f32 1.0, %v7884_v6  ;;  %v8861_v3 = vld [vmem:[%s9643_s4 + $0x8] sm:$0xff]   ;;  %v8869_v5 = vld [vmem:[%s9643_s4 + $0x10] sm:$0xff]   ;;  %v8878_v6 = vld [vmem:[%s9643_s4 + $0x18] sm:$0xff]  }
 0x886   : > { %v1815_v10 = vadd.f32 %v1814_v7, %v8629_v9 }
 0x888   : > { %7885 = vtanh.f32 %v1815_v10 }
 0x892   : > { %v7886_v12 = vpop.eup %7885 }
 0x893   : > { %v1818_v14 = vmul.f32 %v7886_v12, %v1817_v11 }
 0x895   : > { %v1823_v15 = vadd.f32 %v1822_v8, %v1818_v14 }
 0x897   : > { %v1824_v16 = vpack.c.bf16 %v1823_v15, %v1823_v15  ;;  %v3261_v23 = vsel %vm3260_vm9, %v8774_v34, %v1823_v15  ;;  %v1979_v50 = vrot.slane %v1823_v15, 7 }
 0x899   : > { %v1826_v27 = vrot.slane %v1824_v16, 3 }
 0x89b   : > { %7067 = vmatmul.mubr.msk.bf16.vlgmr.msra.gmra.mrb[52].mxu1 %vm695_vm4, %v1826_v27  ;;  %7075 = vmatmul.mubr.msk.bf16.vlgmr.msra.gmra.mrb[48].mxu0 %vm695_vm4, %v1826_v27 }
 0x89c   : > { %7079 = vmatpush3.bf16.msra.mxu1 %v8560_v19  ;;  %7082 = vmatprep.mubr.msk.bf16.mxu1 %vm8289_vm0, %v8288_v0 }
 0x89d   : > { %7080 = vmatprep.subr.bf16.mxu1 %v8288_v0  ;;  %7087 = vmatpush3.bf16.msra.mxu0 %v8533_v13 }
 0x89e   : > { %7088 = vmatprep.subr.bf16.mxu0 %v8288_v0  ;;  %7090 = vmatprep.mubr.msk.bf16.mxu0 %vm8289_vm0, %v8288_v0 }
 0x8a0   : > { %7081 = vmatpush3.bf16.msra.mxu1 %v8577_v22 }
 0x8a1   : > { %7094 = vmatprep.subr.bf16.mxu1 %v8288_v0  ;;  %7089 = vmatpush3.bf16.msra.mxu0 %v8542_v17 }
 0x8a2   : > { %7102 = vmatprep.subr.bf16.mxu0 %v8288_v0 }
 0x8a3   : > { %7083 = vmatmul.mubr.msk.bf16.vlgmr.msra.gmra.mrb[56].mxu1 %vm695_vm4, %v1826_v27 }
 0x8a4   : > { %7095 = vmatpush3.bf16.msra.mxu1 %v8554_v18  ;;  %7098 = vmatprep.mubr.msk.bf16.mxu1 %vm8289_vm0, %v8288_v0 }
 0x8a5   : > { %7096 = vmatprep.subr.bf16.mxu1 %v8288_v0 }
 0x8a8   : > { %7097 = vmatpush3.bf16.msra.mxu1 %v8568_v21 }
 0x8a9   : > { %7110 = vmatprep.subr.bf16.mxu1 %v8288_v0 }
 0x96e   : > { %v1864_v13 = vpop.f32.mrb[52].mxu1  ;;  %v1904_v19 = vpop.f32.mrb[48].mxu0 }
 0x96f   : > { %v1951_v22 = vrot.slane %v1864_v13, 1  ;;  %v1961_v29 = vrot.slane %v1904_v19, 1  ;;  %v7068_v17 = vpop.f32.mrb[53].mxu1  ;;  %v7076_v30 = vpop.f32.mrb[49].mxu0 }
 0x970   : > { %v1867_v31 = vpop.f32.mrb[54].mxu1  ;;  %v1907_v32 = vpop.f32.mrb[50].mxu0 }
 0x971   : > { %v1953_v33 = vadd.f32 %v1951_v22, %v8616_v41  ;;  %v1963_v18 = vadd.f32 %v1961_v29, %v8623_v54  ;;  %v7069_v34 = vpop.f32.mrb[55].mxu1  ;;  %v7077_v35 = vpop.f32.mrb[51].mxu0 }
 0x973   : > { %v6415_v38 = vmul.f32 -1.442695, %v1953_v33  ;;  %v6416_v39 = vmul.f32 -1.442695, %v1963_v18 }
 0x975   : > { %7887 = vpow2.f32 %v6415_v38 }
 0x976   : > { %7889 = vpow2.f32 %v6416_v39  ;;  %v1944_v21 = vpop.f32.mrb[56].mxu1 }
 0x977   : > { %v7084_v42 = vpop.f32.mrb[57].mxu1  ;;  %v1945_v41 = vadd.f32 %v1944_v21, %v8626_v4 }
 0x978   : > { %v1947_v43 = vpop.f32.mrb[58].mxu1 }
 0x979   : > { %v7085_v44 = vpop.f32.mrb[59].mxu1  ;;  %v1971_v49 = vrot.slane %v1945_v41, 1 }
 0x97f   : > { %v7888_v45 = vpop.eup %7887 }
 0x980   : > { %v7890_v46 = vpop.eup %7889  ;;  %v1957_v47 = vadd.f32 1.0, %v7888_v45 }
 0x981   : > { %v1967_v48 = vadd.f32 1.0, %v7890_v46 }
 0x982   : > { %7891 = vrcp.f32 %v1957_v47 }
 0x983   : > { %7893 = vrcp.f32 %v1967_v48 }
 0x98c   : > { %v7892_v54 = vpop.eup %7891 }
 0x98d   : > { %v7894_v52 = vpop.eup %7893  ;;  %v1973_v53 = vmul.f32 %v7892_v54, %v1971_v49 }
 0x98e   : > { %v1981_v55 = vmul.f32 %v7894_v52, %v1979_v50  ;;  %v1976_v57 = vsub.f32 1.0, %v7894_v52 }
 0x98f   : > { %v1974_v56 = vadd.f32 %v1973_v53, %v8629_v9  ;;  %v8836_v9 = vld [vmem:[%s9643_s4 + $0x20] sm:$0xff]  }
 0x991   : > { %7895 = vtanh.f32 %v1974_v56 }
 0x99b   : > { %v7896_v58 = vpop.eup %7895 }
 0x99c   : > { %v1977_v59 = vmul.f32 %v7896_v58, %v1976_v57 }
 0x99e   : > { %v1982_v60 = vadd.f32 %v1981_v55, %v1977_v59 }
 0x9a0   : > { %v1983_v61 = vpack.c.bf16 %v1982_v60, %v1982_v60  ;;  %v8829_v62 = vsel %vm3262_vm10, %v3261_v23, %v1982_v60  ;;  %v2131_v38 = vrot.slane %v1982_v60, 7 }
 0x9a2   : > { %v1985_v63 = vshrl.u32 %v1983_v61, 16 }
 0x9a4   : > { %v1987_v1 = vrot.slane %v1985_v63, 3 }
 0x9a6   : > { %7091 = vmatmul.mubr.msk.bf16.vlgmr.msra.gmra.mrb[52].mxu0 %vm695_vm4, %v1987_v1  ;;  %7099 = vmatmul.mubr.msk.bf16.vlgmr.msra.gmra.mrb[60].mxu1 %vm695_vm4, %v1987_v1 }
 0x9a7   : > { %7103 = vmatpush3.bf16.msra.mxu0 %v8836_v9  ;;  %7106 = vmatprep.mubr.msk.bf16.mxu0 %vm8289_vm0, %v8288_v0 }
 0x9a8   : > { %7104 = vmatprep.subr.bf16.mxu0 %v8288_v0  ;;  %7111 = vmatpush3.bf16.msra.mxu1 %v8845_v28 }
 0x9a9   : > { %7112 = vmatprep.subr.bf16.mxu1 %v8288_v0  ;;  %7114 = vmatprep.mubr.msk.bf16.mxu1 %vm8289_vm0, %v8288_v0 }
 0x9ab   : > { %7105 = vmatpush3.bf16.msra.mxu0 %v8854_v2 }
 0x9ac   : > { %7118 = vmatprep.subr.bf16.mxu0 %v8288_v0  ;;  %7113 = vmatpush3.bf16.msra.mxu1 %v8861_v3 }
 0x9ad   : > { %7126 = vmatprep.subr.bf16.mxu1 %v8288_v0 }
 0x9ae   : > { %7107 = vmatmul.mubr.msk.bf16.vlgmr.msra.gmra.mrb[56].mxu0 %vm695_vm4, %v1987_v1 }
 0x9af   : > { %7119 = vmatpush3.bf16.msra.mxu0 %v8869_v5  ;;  %7122 = vmatprep.mubr.msk.bf16.mxu0 %vm8289_vm0, %v8288_v0 }
 0x9b0   : > { %7120 = vmatprep.subr.bf16.mxu0 %v8288_v0 }
 0x9b3   : > { %7121 = vmatpush3.bf16.msra.mxu0 %v8878_v6 }
 0x9b4   : > { %7134 = vmatprep.subr.bf16.mxu0 %v8288_v0 }
 0xa79   : > { %v2025_v7 = vpop.f32.mrb[52].mxu0  ;;  %v2065_v8 = vpop.f32.mrb[60].mxu1 }
 0xa7a   : > { %v2111_v10 = vadd.f32 %v2025_v7, %v8611_v36  ;;  %v2118_v11 = vadd.f32 %v2065_v8, %v8613_v37  ;;  %v7092_v12 = vpop.f32.mrb[53].mxu0  ;;  %v7100_v14 = vpop.f32.mrb[61].mxu1 }
 0xa7b   : > { %v2028_v15 = vpop.f32.mrb[54].mxu0  ;;  %v2068_v16 = vpop.f32.mrb[62].mxu1 }
 0xa7c   : > { %v6420_v23 = vmul.f32 -1.442695, %v2111_v10  ;;  %v6421_v27 = vmul.f32 -1.442695, %v2118_v11  ;;  %v7093_v13 = vpop.f32.mrb[55].mxu0  ;;  %v7101_v19 = vpop.f32.mrb[63].mxu1 }
 0xa7e   : > { %7897 = vpow2.f32 %v6420_v23 }
 0xa7f   : > { %7899 = vpow2.f32 %v6421_v27 }
 0xa81   : > { %v2105_v22 = vpop.f32.mrb[56].mxu0 }
 0xa82   : > { %v7108_v29 = vpop.f32.mrb[57].mxu0  ;;  %v2106_v34 = vadd.f32 %v2105_v22, %v8626_v4 }
 0xa83   : > { %v2108_v17 = vpop.f32.mrb[58].mxu0 }
 0xa84   : > { %v7109_v30 = vpop.f32.mrb[59].mxu0 }
 0xa88   : > { %v7898_v31 = vpop.eup %7897 }
 0xa89   : > { %v7900_v32 = vpop.eup %7899  ;;  %v2115_v33 = vadd.f32 1.0, %v7898_v31 }
 0xa8a   : > { %v2122_v18 = vadd.f32 1.0, %v7900_v32 }
 0xa8b   : > { %7901 = vrcp.f32 %v2115_v33 }
 0xa8c   : > { %7903 = vrcp.f32 %v2122_v18 }
 0xa95   : > { %v7902_v35 = vpop.eup %7901 }
 0xa96   : > { %v7904_v39 = vpop.eup %7903  ;;  %v2125_v21 = vmul.f32 %v7902_v35, %v2106_v34 }
 0xa97   : > { %v2133_v42 = vmul.f32 %v7904_v39, %v2131_v38  ;;  %v2128_v44 = vsub.f32 1.0, %v7904_v39 }
 0xa98   : > { %v2126_v43 = vadd.f32 %v2125_v21, %v8621_v51 }
 0xa9a   : > { %7905 = vtanh.f32 %v2126_v43 }
 0xaa4   : > { %v7906_v45 = vpop.eup %7905 }
 0xaa5   : > { %v2129_v46 = vmul.f32 %v7906_v45, %v2128_v44 }
 0xaa7   : > { %v8886_v47 = vadd.f32 %v2133_v42, %v2129_v46 }
 0xaa9   : > { %v2135_v48 = vpack.c.bf16 %v8886_v47, %v8886_v47  ;;  %v2288_v17 = vrot.slane %v8886_v47, 7 }
 0xaab   : > { %7115 = vmatmul.mubr.msk.bf16.vlgmr.msra.gmra.mrb[64].mxu1 %vm695_vm4, %v2135_v48  ;;  %7123 = vmatmul.mubr.msk.bf16.vlgmr.msra.gmra.mrb[60].mxu0 %vm695_vm4, %v2135_v48 }
 0xaac   : > { %7127 = vmatpush3.bf16.msra.mxu1 %v8836_v9  ;;  %7130 = vmatprep.mubr.msk.bf16.mxu1 %vm8289_vm0, %v8288_v0 }
 0xaad   : > { %7128 = vmatprep.subr.bf16.mxu1 %v8288_v0  ;;  %7135 = vmatpush3.bf16.msra.mxu0 %v8845_v28 }
 0xaae   : > { %7136 = vmatprep.subr.bf16.mxu0 %v8288_v0  ;;  %7138 = vmatprep.mubr.msk.bf16.mxu0 %vm8289_vm0, %v8288_v0 }
 0xab0   : > { %7129 = vmatpush3.bf16.msra.mxu1 %v8854_v2 }
 0xab1   : > { %7142 = vmatprep.subr.bf16.mxu1 %v8288_v0  ;;  %7137 = vmatpush3.bf16.msra.mxu0 %v8861_v3 }
 0xab2   : > { %7150 = vmatprep.subr.bf16.mxu0 %v8288_v0 }
 0xab3   : > { %7131 = vmatmul.mubr.msk.bf16.vlgmr.msra.gmra.mrb[68].mxu1 %vm695_vm4, %v2135_v48 }
 0xab4   : > { %7143 = vmatpush3.bf16.msra.mxu1 %v8869_v5  ;;  %7146 = vmatprep.mubr.msk.bf16.mxu1 %vm8289_vm0, %v8288_v0 }
 0xab5   : > { %7144 = vmatprep.subr.bf16.mxu1 %v8288_v0 }
 0xab8   : > { %7145 = vmatpush3.bf16.msra.mxu1 %v8878_v6 }
 0xab9   : > { %7158 = vmatprep.subr.bf16.mxu1 %v8288_v0 }
 0xb7e   : > { %v2173_v41 = vpop.f32.mrb[64].mxu1  ;;  %v2213_v49 = vpop.f32.mrb[60].mxu0 }
 0xb7f   : > { %v2260_v54 = vrot.slane %v2173_v41, 7  ;;  %v7116_v50 = vpop.f32.mrb[65].mxu1  ;;  %v7124_v52 = vpop.f32.mrb[61].mxu0  ;;  %v2270_v53 = vrot.slane %v2213_v49, 7 }
 0xb80   : > { %v2176_v55 = vpop.f32.mrb[66].mxu1  ;;  %v2216_v56 = vpop.f32.mrb[62].mxu0 }
 0xb81   : > { %v2262_v57 = vadd.f32 %v2260_v54, %v8611_v36  ;;  %v7117_v58 = vpop.f32.mrb[67].mxu1  ;;  %v7125_v59 = vpop.f32.mrb[63].mxu0  ;;  %v2272_v61 = vadd.f32 %v2270_v53, %v8613_v37 }
 0xb83   : > { %v6425_v60 = vmul.f32 -1.442695, %v2262_v57  ;;  %v6426_v7 = vmul.f32 -1.442695, %v2272_v61 }
 0xb85   : > { %7907 = vpow2.f32 %v6425_v60 }
 0xb86   : > { %v2253_v63 = vpop.f32.mrb[68].mxu1  ;;  %7909 = vpow2.f32 %v6426_v7 }
 0xb87   : > { %v7132_v1 = vpop.f32.mrb[69].mxu1  ;;  %v2254_v15 = vadd.f32 %v2253_v63, %v8626_v4 }
 0xb88   : > { %v2256_v8 = vpop.f32.mrb[70].mxu1 }
 0xb89   : > { %v7133_v10 = vpop.f32.mrb[71].mxu1  ;;  %v2280_v23 = vrot.slane %v2254_v15, 7 }
 0xb8f   : > { %v7908_v11 = vpop.eup %7907 }
 0xb90   : > { %v2266_v12 = vadd.f32 1.0, %v7908_v11  ;;  %v7910_v14 = vpop.eup %7909 }
 0xb91   : > { %v2276_v16 = vadd.f32 1.0, %v7910_v14 }
 0xb92   : > { %7911 = vrcp.f32 %v2266_v12 }
 0xb93   : > { %7913 = vrcp.f32 %v2276_v16 }
 0xb9c   : > { %v7912_v27 = vpop.eup %7911 }
 0xb9d   : > { %v2282_v13 = vmul.f32 %v7912_v27, %v2280_v23  ;;  %v7914_v22 = vpop.eup %7913 }
 0xb9e   : > { %v2285_v29 = vsub.f32 1.0, %v7914_v22  ;;  %v2290_v31 = vmul.f32 %v7914_v22, %v2288_v17 }
 0xb9f   : > { %v2283_v19 = vadd.f32 %v2282_v13, %v8621_v51 }
 0xba1   : > { %7915 = vtanh.f32 %v2283_v19 }
 0xbab   : > { %v7916_v30 = vpop.eup %7915 }
 0xbac   : > { %v2286_v32 = vmul.f32 %v7916_v30, %v2285_v29 }
 0xbae   : > { %v2291_v33 = vadd.f32 %v2290_v31, %v2286_v32 }
 0xbb0   : > { %v2292_v18 = vpack.c.bf16 %v2291_v33, %v2291_v33  ;;  %v2448_v7 = vrot.slane %v2291_v33, 7  ;;  %v3264_v27 = vsel %vm3251_vm5, %v8886_v47, %v2291_v33 }
 0xbb2   : > { %v2294_v34 = vshrl.u32 %v2292_v18, 16 }
 0xbb4   : > { %7139 = vmatmul.mubr.msk.bf16.vlgmr.msra.gmra.mrb[64].mxu0 %vm695_vm4, %v2294_v34  ;;  %7147 = vmatmul.mubr.msk.bf16.vlgmr.msra.gmra.mrb[72].mxu1 %vm695_vm4, %v2294_v34 }
 0xbb5   : > { %7151 = vmatpush3.bf16.msra.mxu0 %v8836_v9  ;;  %7154 = vmatprep.mubr.msk.bf16.mxu0 %vm8289_vm0, %v8288_v0 }
 0xbb6   : > { %7152 = vmatprep.subr.bf16.mxu0 %v8288_v0  ;;  %7159 = vmatpush3.bf16.msra.mxu1 %v8845_v28 }
 0xbb7   : > { %7160 = vmatprep.subr.bf16.mxu1 %v8288_v0  ;;  %7162 = vmatprep.mubr.msk.bf16.mxu1 %vm8289_vm0, %v8288_v0 }
 0xbb9   : > { %7153 = vmatpush3.bf16.msra.mxu0 %v8854_v2 }
 0xbba   : > { %7166 = vmatprep.subr.bf16.mxu0 %v8288_v0  ;;  %7161 = vmatpush3.bf16.msra.mxu1 %v8861_v3 }
 0xbbb   : > { %7174 = vmatprep.subr.bf16.mxu1 %v8288_v0 }
 0xbbc   : > { %7155 = vmatmul.mubr.msk.bf16.vlgmr.msra.gmra.mrb[68].mxu0 %vm695_vm4, %v2294_v34 }
 0xbbd   : > { %7167 = vmatpush3.bf16.msra.mxu0 %v8869_v5  ;;  %7170 = vmatprep.mubr.msk.bf16.mxu0 %vm8289_vm0, %v8288_v0 }
 0xbbe   : > { %7168 = vmatprep.subr.bf16.mxu0 %v8288_v0 }
 0xbc1   : > { %7169 = vmatpush3.bf16.msra.mxu0 %v8878_v6 }
 0xbc2   : > { %7182 = vmatprep.subr.bf16.mxu0 %v8288_v0 }
 0xc87   : > { %v2333_v35 = vpop.f32.mrb[64].mxu0  ;;  %v2373_v38 = vpop.f32.mrb[72].mxu1 }
 0xc88   : > { %v2420_v39 = vrot.slane %v2333_v35, 6  ;;  %v2430_v21 = vrot.slane %v2373_v38, 6  ;;  %v7140_v42 = vpop.f32.mrb[65].mxu0  ;;  %v7148_v43 = vpop.f32.mrb[73].mxu1 }
 0xc89   : > { %v2336_v44 = vpop.f32.mrb[66].mxu0  ;;  %v2376_v45 = vpop.f32.mrb[74].mxu1 }
 0xc8a   : > { %v2422_v46 = vadd.f32 %v2420_v39, %v8611_v36  ;;  %v2432_v48 = vadd.f32 %v2430_v21, %v8613_v37  ;;  %v7141_v41 = vpop.f32.mrb[67].mxu0  ;;  %v7149_v49 = vpop.f32.mrb[75].mxu1 }
 0xc8c   : > { %v6430_v54 = vmul.f32 -1.442695, %v2422_v46  ;;  %v6431_v50 = vmul.f32 -1.442695, %v2432_v48 }
 0xc8e   : > { %7917 = vpow2.f32 %v6430_v54 }
 0xc8f   : > { %7919 = vpow2.f32 %v6431_v50  ;;  %v2413_v52 = vpop.f32.mrb[68].mxu0 }
 0xc90   : > { %v7156_v53 = vpop.f32.mrb[69].mxu0  ;;  %v2414_v61 = vadd.f32 %v2413_v52, %v8626_v4 }
 0xc91   : > { %v2416_v55 = vpop.f32.mrb[70].mxu0 }
 0xc92   : > { %v7157_v56 = vpop.f32.mrb[71].mxu0  ;;  %v2440_v63 = vrot.slane %v2414_v61, 6 }
 0xc98   : > { %v7918_v57 = vpop.eup %7917 }
 0xc99   : > { %v7920_v58 = vpop.eup %7919  ;;  %v2426_v59 = vadd.f32 1.0, %v7918_v57 }
 0xc9a   : > { %v2436_v60 = vadd.f32 1.0, %v7920_v58 }
 0xc9b   : > { %7921 = vrcp.f32 %v2426_v59 }
 0xc9c   : > { %7923 = vrcp.f32 %v2436_v60 }
 0xca5   : > { %v7922_v1 = vpop.eup %7921 }
 0xca6   : > { %v7924_v8 = vpop.eup %7923  ;;  %v2442_v10 = vmul.f32 %v7922_v1, %v2440_v63 }
 0xca7   : > { %v2450_v11 = vmul.f32 %v7924_v8, %v2448_v7  ;;  %v2445_v14 = vsub.f32 1.0, %v7924_v8 }
 0xca8   : > { %v2443_v12 = vadd.f32 %v2442_v10, %v8621_v51 }
 0xcaa   : > { %7925 = vtanh.f32 %v2443_v12 }
 0xcb4   : > { %v7926_v15 = vpop.eup %7925 }
 0xcb5   : > { %v2446_v16 = vmul.f32 %v7926_v15, %v2445_v14 }
 0xcb7   : > { %v2451_v23 = vadd.f32 %v2450_v11, %v2446_v16 }
 0xcb9   : > { %v2452_v13 = vpack.c.bf16 %v2451_v23, %v2451_v23  ;;  %v3265_v19 = vsel %vm3253_vm6, %v3264_v27, %v2451_v23  ;;  %v2607_v55 = vrot.slane %v2451_v23, 7 }
 0xcbb   : > { %v2454_v22 = vrot.slane %v2452_v13, 1 }
 0xcbd   : > { %7163 = vmatmul.mubr.msk.bf16.vlgmr.msra.gmra.mrb[76].mxu1 %vm695_vm4, %v2454_v22  ;;  %7171 = vmatmul.mubr.msk.bf16.vlgmr.msra.gmra.mrb[72].mxu0 %vm695_vm4, %v2454_v22 }
 0xcbe   : > { %7175 = vmatpush3.bf16.msra.mxu1 %v8836_v9  ;;  %7178 = vmatprep.mubr.msk.bf16.mxu1 %vm8289_vm0, %v8288_v0 }
 0xcbf   : > { %7176 = vmatprep.subr.bf16.mxu1 %v8288_v0  ;;  %7183 = vmatpush3.bf16.msra.mxu0 %v8845_v28 }
 0xcc0   : > { %7184 = vmatprep.subr.bf16.mxu0 %v8288_v0  ;;  %7186 = vmatprep.mubr.msk.bf16.mxu0 %vm8289_vm0, %v8288_v0 }
 0xcc2   : > { %7177 = vmatpush3.bf16.msra.mxu1 %v8854_v2 }
 0xcc3   : > { %7190 = vmatprep.subr.bf16.mxu1 %v8288_v0  ;;  %7185 = vmatpush3.bf16.msra.mxu0 %v8861_v3 }
 0xcc4   : > { %7198 = vmatprep.subr.bf16.mxu0 %v8288_v0 }
 0xcc5   : > { %7179 = vmatmul.mubr.msk.bf16.vlgmr.msra.gmra.mrb[80].mxu1 %vm695_vm4, %v2454_v22 }
 0xcc6   : > { %7191 = vmatpush3.bf16.msra.mxu1 %v8869_v5  ;;  %7194 = vmatprep.mubr.msk.bf16.mxu1 %vm8289_vm0, %v8288_v0 }
 0xcc7   : > { %7192 = vmatprep.subr.bf16.mxu1 %v8288_v0 }
 0xcca   : > { %7193 = vmatpush3.bf16.msra.mxu1 %v8878_v6 }
 0xccb   : > { %7206 = vmatprep.subr.bf16.mxu1 %v8288_v0 }
 0xd90   : > { %v2492_v47 = vpop.f32.mrb[76].mxu1  ;;  %v2532_v29 = vpop.f32.mrb[72].mxu0 }
 0xd91   : > { %v2579_v17 = vrot.slane %v2492_v47, 5  ;;  %v2589_v30 = vrot.slane %v2532_v29, 5  ;;  %v7164_v31 = vpop.f32.mrb[77].mxu1  ;;  %v7172_v32 = vpop.f32.mrb[73].mxu0 }
 0xd92   : > { %v2495_v33 = vpop.f32.mrb[78].mxu1  ;;  %v2535_v18 = vpop.f32.mrb[74].mxu0 }
 0xd93   : > { %v2581_v34 = vadd.f32 %v2579_v17, %v8611_v36  ;;  %v2591_v35 = vadd.f32 %v2589_v30, %v8613_v37  ;;  %v7165_v38 = vpop.f32.mrb[79].mxu1  ;;  %v7173_v39 = vpop.f32.mrb[75].mxu0 }
 0xd95   : > { %v6435_v21 = vmul.f32 -1.442695, %v2581_v34  ;;  %v6436_v42 = vmul.f32 -1.442695, %v2591_v35 }
 0xd97   : > { %7927 = vpow2.f32 %v6435_v21 }
 0xd98   : > { %7929 = vpow2.f32 %v6436_v42  ;;  %v2572_v43 = vpop.f32.mrb[80].mxu1 }
 0xd99   : > { %v7180_v44 = vpop.f32.mrb[81].mxu1  ;;  %v2573_v50 = vadd.f32 %v2572_v43, %v8626_v4 }
 0xd9a   : > { %v2575_v45 = vpop.f32.mrb[82].mxu1 }
 0xd9b   : > { %v7181_v46 = vpop.f32.mrb[83].mxu1  ;;  %v2599_v52 = vrot.slane %v2573_v50, 5 }
 0xda1   : > { %v7928_v48 = vpop.eup %7927 }
 0xda2   : > { %v7930_v41 = vpop.eup %7929  ;;  %v2585_v49 = vadd.f32 1.0, %v7928_v48 }
 0xda3   : > { %v2595_v54 = vadd.f32 1.0, %v7930_v41 }
 0xda4   : > { %7931 = vrcp.f32 %v2585_v49 }
 0xda5   : > { %7933 = vrcp.f32 %v2595_v54 }
 0xdae   : > { %v7932_v53 = vpop.eup %7931 }
 0xdaf   : > { %v7934_v56 = vpop.eup %7933  ;;  %v2601_v57 = vmul.f32 %v7932_v53, %v2599_v52 }
 0xdb0   : > { %v2609_v58 = vmul.f32 %v7934_v56, %v2607_v55  ;;  %v2604_v60 = vsub.f32 1.0, %v7934_v56 }
 0xdb1   : > { %v2602_v59 = vadd.f32 %v2601_v57, %v8621_v51 }
 0xdb3   : > { %7935 = vtanh.f32 %v2602_v59 }
 0xdbd   : > { %v7936_v61 = vpop.eup %7935 }
 0xdbe   : > { %v2605_v63 = vmul.f32 %v7936_v61, %v2604_v60 }
 0xdc0   : > { %v2610_v1 = vadd.f32 %v2609_v58, %v2605_v63 }
 0xdc2   : > { %v2611_v7 = vpack.c.bf16 %v2610_v1, %v2610_v1  ;;  %v3266_v8 = vsel %vm3255_vm7, %v3265_v19, %v2610_v1  ;;  %v2768_v45 = vrot.slane %v2610_v1, 7 }
 0xdc4   : > { %v2613_v10 = vshrl.u32 %v2611_v7, 16 }
 0xdc6   : > { %v2615_v11 = vrot.slane %v2613_v10, 1 }
 0xdc8   : > { %7187 = vmatmul.mubr.msk.bf16.vlgmr.msra.gmra.mrb[76].mxu0 %vm695_vm4, %v2615_v11  ;;  %7195 = vmatmul.mubr.msk.bf16.vlgmr.msra.gmra.mrb[84].mxu1 %vm695_vm4, %v2615_v11 }
 0xdc9   : > { %7199 = vmatpush3.bf16.msra.mxu0 %v8836_v9  ;;  %7202 = vmatprep.mubr.msk.bf16.mxu0 %vm8289_vm0, %v8288_v0 }
 0xdca   : > { %7200 = vmatprep.subr.bf16.mxu0 %v8288_v0  ;;  %7207 = vmatpush3.bf16.msra.mxu1 %v8845_v28 }
 0xdcb   : > { %7208 = vmatprep.subr.bf16.mxu1 %v8288_v0  ;;  %7210 = vmatprep.mubr.msk.bf16.mxu1 %vm8289_vm0, %v8288_v0 }
 0xdcd   : > { %7201 = vmatpush3.bf16.msra.mxu0 %v8854_v2 }
 0xdce   : > { %7214 = vmatprep.subr.bf16.mxu0 %v8288_v0  ;;  %7209 = vmatpush3.bf16.msra.mxu1 %v8861_v3 }
 0xdcf   : > { %7222 = vmatprep.subr.bf16.mxu1 %v8288_v0 }
 0xdd0   : > { %7203 = vmatmul.mubr.msk.bf16.vlgmr.msra.gmra.mrb[80].mxu0 %vm695_vm4, %v2615_v11 }
 0xdd1   : > { %7215 = vmatpush3.bf16.msra.mxu0 %v8869_v5  ;;  %7218 = vmatprep.mubr.msk.bf16.mxu0 %vm8289_vm0, %v8288_v0 }
 0xdd2   : > { %7216 = vmatprep.subr.bf16.mxu0 %v8288_v0 }
 0xdd5   : > { %7217 = vmatpush3.bf16.msra.mxu0 %v8878_v6 }
 0xdd6   : > { %7230 = vmatprep.subr.bf16.mxu0 %v8288_v0 }
 0xe9b   : > { %v2653_v12 = vpop.f32.mrb[76].mxu0  ;;  %v2693_v14 = vpop.f32.mrb[84].mxu1 }
 0xe9c   : > { %v2740_v15 = vrot.slane %v2653_v12, 4  ;;  %v2750_v16 = vrot.slane %v2693_v14, 4  ;;  %v7188_v23 = vpop.f32.mrb[77].mxu0  ;;  %v7196_v27 = vpop.f32.mrb[85].mxu1 }
 0xe9d   : > { %v2656_v13 = vpop.f32.mrb[78].mxu0  ;;  %v2696_v19 = vpop.f32.mrb[86].mxu1 }
 0xe9e   : > { %v2742_v22 = vadd.f32 %v2740_v15, %v8611_v36  ;;  %v2752_v47 = vadd.f32 %v2750_v16, %v8613_v37  ;;  %v7189_v29 = vpop.f32.mrb[79].mxu0  ;;  %v7197_v17 = vpop.f32.mrb[87].mxu1 }
 0xea0   : > { %v6440_v30 = vmul.f32 -1.442695, %v2742_v22  ;;  %v6441_v31 = vmul.f32 -1.442695, %v2752_v47 }
 0xea2   : > { %7937 = vpow2.f32 %v6440_v30 }
 0xea3   : > { %7939 = vpow2.f32 %v6441_v31  ;;  %v2733_v32 = vpop.f32.mrb[80].mxu0 }
 0xea4   : > { %v7204_v33 = vpop.f32.mrb[81].mxu0  ;;  %v2734_v42 = vadd.f32 %v2733_v32, %v8626_v4 }
 0xea5   : > { %v2736_v18 = vpop.f32.mrb[82].mxu0 }
 0xea6   : > { %v7205_v34 = vpop.f32.mrb[83].mxu0  ;;  %v2760_v43 = vrot.slane %v2734_v42, 4 }
 0xeac   : > { %v7938_v35 = vpop.eup %7937 }
 0xead   : > { %v7940_v38 = vpop.eup %7939  ;;  %v2746_v39 = vadd.f32 1.0, %v7938_v35 }
 0xeae   : > { %v2756_v21 = vadd.f32 1.0, %v7940_v38 }
 0xeaf   : > { %7941 = vrcp.f32 %v2746_v39 }
 0xeb0   : > { %7943 = vrcp.f32 %v2756_v21 }
 0xeb9   : > { %v7942_v44 = vpop.eup %7941 }
 0xeba   : > { %v7944_v46 = vpop.eup %7943  ;;  %v2762_v48 = vmul.f32 %v7942_v44, %v2760_v43 }
 0xebb   : > { %v2770_v41 = vmul.f32 %v7944_v46, %v2768_v45  ;;  %v2765_v54 = vsub.f32 1.0, %v7944_v46 }
 0xebc   : > { %v2763_v49 = vadd.f32 %v2762_v48, %v8621_v51 }
 0xebe   : > { %7945 = vtanh.f32 %v2763_v49 }
 0xec8   : > { %v7946_v50 = vpop.eup %7945 }
 0xec9   : > { %v2766_v52 = vmul.f32 %v7946_v50, %v2765_v54 }
 0xecb   : > { %v2771_v53 = vadd.f32 %v2770_v41, %v2766_v52 }
 0xecd   : > { %v2772_v55 = vpack.c.bf16 %v2771_v53, %v2771_v53  ;;  %v3267_v56 = vsel %vm542_vm2, %v3266_v8, %v2771_v53  ;;  %v2927_v33 = vrot.slane %v2771_v53, 7 }
 0xecf   : > { %v2774_v57 = vrot.slane %v2772_v55, 2 }
 0xed1   : > { %7211 = vmatmul.mubr.msk.bf16.vlgmr.msra.gmra.mrb[88].mxu1 %vm695_vm4, %v2774_v57  ;;  %7219 = vmatmul.mubr.msk.bf16.vlgmr.msra.gmra.mrb[84].mxu0 %vm695_vm4, %v2774_v57 }
 0xed2   : > { %7223 = vmatpush3.bf16.msra.mxu1 %v8836_v9  ;;  %7226 = vmatprep.mubr.msk.bf16.mxu1 %vm8289_vm0, %v8288_v0 }
 0xed3   : > { %7224 = vmatprep.subr.bf16.mxu1 %v8288_v0  ;;  %7231 = vmatpush3.bf16.msra.mxu0 %v8845_v28 }
 0xed4   : > { %7232 = vmatprep.subr.bf16.mxu0 %v8288_v0  ;;  %7234 = vmatprep.mubr.msk.bf16.mxu0 %vm8289_vm0, %v8288_v0 }
 0xed6   : > { %7225 = vmatpush3.bf16.msra.mxu1 %v8854_v2 }
 0xed7   : > { %7238 = vmatprep.subr.bf16.mxu1 %v8288_v0  ;;  %7233 = vmatpush3.bf16.msra.mxu0 %v8861_v3 }
 0xed8   : > { %7246 = vmatprep.subr.bf16.mxu0 %v8288_v0 }
 0xed9   : > { %7227 = vmatmul.mubr.msk.bf16.vlgmr.msra.gmra.mrb[92].mxu1 %vm695_vm4, %v2774_v57 }
 0xeda   : > { %7239 = vmatpush3.bf16.msra.mxu1 %v8869_v5  ;;  %7242 = vmatprep.mubr.msk.bf16.mxu1 %vm8289_vm0, %v8288_v0 }
 0xedb   : > { %7240 = vmatprep.subr.bf16.mxu1 %v8288_v0 }
 0xede   : > { %7241 = vmatpush3.bf16.msra.mxu1 %v8878_v6 }
 0xedf   : > { %7254 = vmatprep.subr.bf16.mxu1 %v8288_v0 }
 0xfa4   : > { %v2812_v58 = vpop.f32.mrb[88].mxu1  ;;  %v2852_v59 = vpop.f32.mrb[84].mxu0 }
 0xfa5   : > { %v2899_v60 = vrot.slane %v2812_v58, 3  ;;  %v2909_v61 = vrot.slane %v2852_v59, 3  ;;  %v7212_v63 = vpop.f32.mrb[89].mxu1  ;;  %v7220_v1 = vpop.f32.mrb[85].mxu0 }
 0xfa6   : > { %v2815_v7 = vpop.f32.mrb[90].mxu1  ;;  %v2855_v8 = vpop.f32.mrb[86].mxu0 }
 0xfa7   : > { %v2901_v10 = vadd.f32 %v2899_v60, %v8611_v36  ;;  %v2911_v11 = vadd.f32 %v2909_v61, %v8613_v37  ;;  %v7213_v12 = vpop.f32.mrb[91].mxu1  ;;  %v7221_v14 = vpop.f32.mrb[87].mxu0 }
 0xfa9   : > { %v6445_v15 = vmul.f32 -1.442695, %v2901_v10  ;;  %v6446_v16 = vmul.f32 -1.442695, %v2911_v11 }
 0xfab   : > { %7947 = vpow2.f32 %v6445_v15 }
 0xfac   : > { %7949 = vpow2.f32 %v6446_v16  ;;  %v2892_v23 = vpop.f32.mrb[92].mxu1 }
 0xfad   : > { %v7228_v27 = vpop.f32.mrb[93].mxu1  ;;  %v2893_v30 = vadd.f32 %v2892_v23, %v8626_v4 }
 0xfae   : > { %v2895_v13 = vpop.f32.mrb[94].mxu1 }
 0xfaf   : > { %v7229_v19 = vpop.f32.mrb[95].mxu1  ;;  %v2919_v31 = vrot.slane %v2893_v30, 3 }
 0xfb5   : > { %v7948_v22 = vpop.eup %7947 }
 0xfb6   : > { %v7950_v47 = vpop.eup %7949  ;;  %v2905_v29 = vadd.f32 1.0, %v7948_v22 }
 0xfb7   : > { %v2915_v17 = vadd.f32 1.0, %v7950_v47 }
 0xfb8   : > { %7951 = vrcp.f32 %v2905_v29 }
 0xfb9   : > { %7953 = vrcp.f32 %v2915_v17 }
 0xfc2   : > { %v7952_v32 = vpop.eup %7951 }
 0xfc3   : > { %v7954_v18 = vpop.eup %7953  ;;  %v2921_v34 = vmul.f32 %v7952_v32, %v2919_v31  ;;  %v7802_v32 = vld [vmem:[#allocation4 + $0x10] sm:$0xff]  }
 0xfc4   : > { %v2929_v35 = vmul.f32 %v7954_v18, %v2927_v33  ;;  %v2924_v39 = vsub.f32 1.0, %v7954_v18  ;;  %v7803_v33 = vld [vmem:[#allocation4] sm:$0xff]   ;;  %v7805_v18 = vld [vmem:[#allocation4 + $0x8] sm:$0xff]  }
 0xfc5   : > { %v2922_v38 = vadd.f32 %v2921_v34, %v8621_v51 }
 0xfc7   : > { %7955 = vtanh.f32 %v2922_v38 }
 0xfd1   : > { %v7956_v21 = vpop.eup %7955 }
 0xfd2   : > { %v2925_v42 = vmul.f32 %v7956_v21, %v2924_v39 }
 0xfd4   : > { %v2930_v43 = vadd.f32 %v2929_v35, %v2925_v42 }
 0xfd6   : > { %v2931_v44 = vpack.c.bf16 %v2930_v43, %v2930_v43  ;;  %v3268_v45 = vsel %vm3258_vm8, %v3267_v56, %v2930_v43  ;;  %v3088_v15 = vrot.slane %v2930_v43, 7 }
 0xfd8   : > { %v2933_v46 = vshrl.u32 %v2931_v44, 16 }
 0xfda   : > { %v2935_v48 = vrot.slane %v2933_v46, 2 }
 0xfdc   : > { %7235 = vmatmul.mubr.msk.bf16.vlgmr.msra.gmra.mrb[88].mxu0 %vm695_vm4, %v2935_v48  ;;  %7243 = vmatmul.mubr.msk.bf16.vlgmr.msra.gmra.mrb[96].mxu1 %vm695_vm4, %v2935_v48 }
 0xfdd   : > { %7247 = vmatpush3.bf16.msra.mxu0 %v8836_v9  ;;  %7250 = vmatprep.mubr.msk.bf16.mxu0 %vm8289_vm0, %v8288_v0 }
 0xfde   : > { %7248 = vmatprep.subr.bf16.mxu0 %v8288_v0  ;;  %7255 = vmatpush3.bf16.msra.mxu1 %v8845_v28 }
 0xfdf   : > { %7256 = vmatprep.subr.bf16.mxu1 %v8288_v0  ;;  %7258 = vmatprep.mubr.msk.bf16.mxu1 %vm8289_vm0, %v8288_v0 }
 0xfe1   : > { %7249 = vmatpush3.bf16.msra.mxu0 %v8854_v2 }
 0xfe2   : > { %7262 = vmatprep.subr.bf16.mxu0 %v8288_v0  ;;  %7257 = vmatpush3.bf16.msra.mxu1 %v8861_v3 }
 0xfe3   : > { %7270 = vmatprep.subr.bf16.mxu1 %v8288_v0 }
 0xfe4   : > { %7251 = vmatmul.mubr.msk.bf16.vlgmr.msra.gmra.mrb[92].mxu0 %vm695_vm4, %v2935_v48 }
 0xfe5   : > { %7263 = vmatpush3.bf16.msra.mxu0 %v8869_v5  ;;  %7266 = vmatprep.mubr.msk.bf16.mxu0 %vm8289_vm0, %v8288_v0 }
 0xfe6   : > { %7264 = vmatprep.subr.bf16.mxu0 %v8288_v0 }
 0xfe9   : > { %7265 = vmatpush3.bf16.msra.mxu0 %v8878_v6 }
 0xfea   : > { %7278 = vmatprep.subr.bf16.mxu0 %v8288_v0 }
0x10af   : > { %v2973_v28 = vpop.f32.mrb[88].mxu0  ;;  %v3013_v41 = vpop.f32.mrb[96].mxu1 }
0x10b0   : > { %v3060_v49 = vrot.slane %v2973_v28, 2  ;;  %v3070_v54 = vrot.slane %v3013_v41, 2  ;;  %v7236_v3 = vpop.f32.mrb[89].mxu0  ;;  %v7244_v50 = vpop.f32.mrb[97].mxu1 }
0x10b1   : > { %v2976_v52 = vpop.f32.mrb[90].mxu0  ;;  %v3016_v53 = vpop.f32.mrb[98].mxu1 }
0x10b2   : > { %v3062_v55 = vadd.f32 %v3060_v49, %v8611_v36  ;;  %v3072_v5 = vadd.f32 %v3070_v54, %v8613_v37  ;;  %v7237_v56 = vpop.f32.mrb[91].mxu0  ;;  %v7245_v57 = vpop.f32.mrb[99].mxu1 }
0x10b4   : > { %v6450_v58 = vmul.f32 -1.442695, %v3062_v55  ;;  %v6451_v59 = vmul.f32 -1.442695, %v3072_v5 }
0x10b6   : > { %7957 = vpow2.f32 %v6450_v58 }
0x10b7   : > { %7959 = vpow2.f32 %v6451_v59  ;;  %v3053_v6 = vpop.f32.mrb[92].mxu0 }
0x10b8   : > { %v7252_v60 = vpop.f32.mrb[93].mxu0  ;;  %v3054_v11 = vadd.f32 %v3053_v6, %v8626_v4 }
0x10b9   : > { %v3056_v61 = vpop.f32.mrb[94].mxu0 }
0x10ba   : > { %v7253_v63 = vpop.f32.mrb[95].mxu0  ;;  %v3080_v12 = vrot.slane %v3054_v11, 2  ;;  %v7807_v11 = vld [vmem:[#allocation4 + $0x20] sm:$0xff]  }
0x10c0   : > { %v7958_v1 = vpop.eup %7957 }
0x10c1   : > { %v7960_v7 = vpop.eup %7959  ;;  %v3066_v8 = vadd.f32 1.0, %v7958_v1 }
0x10c2   : > { %v3076_v10 = vadd.f32 1.0, %v7960_v7 }
0x10c3   : > { %7961 = vrcp.f32 %v3066_v8 }
0x10c4   : > { %7963 = vrcp.f32 %v3076_v10  ;;  %v9073_v10 = vld [vmem:[#allocation6] sm:$0xff]  }
0x10cd   : > { %v7962_v14 = vpop.eup %7961 }
0x10ce   : > { %v7964_v16 = vpop.eup %7963  ;;  %v3082_v23 = vmul.f32 %v7962_v14, %v3080_v12  ;;  %v7809_v12 = vld [vmem:[#allocation4 + $0x28] sm:$0xff]   ;;  %v9092_v14 = vld [vmem:[#allocation6 + $0x20] sm:$0xff]  }
0x10cf   : > { %v3090_v27 = vmul.f32 %v7964_v16, %v3088_v15  ;;  %v3085_v19 = vsub.f32 1.0, %v7964_v16  ;;  %v9097_v15 = vld [vmem:[#allocation6 + $0x18] sm:$0xff]   ;;  %v9103_v16 = vld [vmem:[#allocation6 + $0x28] sm:$0xff]  }
0x10d0   : > { %v3083_v13 = vadd.f32 %v3082_v23, %v8621_v51 }
0x10d2   : > { %7965 = vtanh.f32 %v3083_v13 }
0x10dc   : > { %v7966_v22 = vpop.eup %7965 }
0x10dd   : > { %v3086_v47 = vmul.f32 %v7966_v22, %v3085_v19 }
0x10df   : > { %v3091_v29 = vadd.f32 %v3090_v27, %v3086_v47 }
0x10e1   : > { %v3092_v17 = vpack.c.bf16 %v3091_v29, %v3091_v29  ;;  %v9048_v30 = vsel %vm3260_vm9, %v3268_v45, %v3091_v29  ;;  %v3247_v57 = vrot.slane %v3091_v29, 7 }
0x10e3   : > { %v3094_v31 = vrot.slane %v3092_v17, 3 }
0x10e5   : > { %7259 = vmatmul.mubr.msk.bf16.vlgmr.msra.gmra.mrb[100].mxu1 %vm695_vm4, %v3094_v31  ;;  %7267 = vmatmul.mubr.msk.bf16.vlgmr.msra.gmra.mrb[96].mxu0 %vm695_vm4, %v3094_v31 }
0x10e6   : > { %7271 = vmatpush3.bf16.msra.mxu1 %v8836_v9  ;;  %7274 = vmatprep.mubr.msk.bf16.mxu1 %vm8289_vm0, %v8288_v0  ;;  %v7804_v9 = vld [vmem:[#allocation4 + $0x18] sm:$0xff]  }
0x10e7   : > { %7272 = vmatprep.subr.bf16.mxu1 %v8288_v0  ;;  %7282 = vmatprep.mubr.msk.bf16.mxu0 %vm8289_vm0, %v8288_v0 }
0x10e8   : > { %7279 = vmatpush3.bf16.msra.mxu0 %v7803_v33 }
0x10e9   : > { %7280 = vmatprep.subr.bf16.mxu0 %v8288_v0 }
0x10ea   : > { %7273 = vmatpush3.bf16.msra.mxu1 %v8854_v2 }
0x10eb   : > { %7286 = vmatprep.subr.bf16.mxu1 %v8288_v0 }
0x10ec   : > { %7281 = vmatpush3.bf16.msra.mxu0 %v7805_v18 }
0x10ed   : > { %7275 = vmatmul.mubr.msk.bf16.vlgmr.msra.gmra.mrb[104].mxu1 %vm695_vm4, %v3094_v31  ;;  %7294 = vmatprep.subr.bf16.mxu0 %v8288_v0 }
0x10ee   : > { %7290 = vmatprep.mubr.msk.bf16.mxu1 %vm8289_vm0, %v8288_v0  ;;  %7287 = vmatpush3.bf16.msra.mxu1 %v7802_v32 }
0x10ef   : > { %7288 = vmatprep.subr.bf16.mxu1 %v8288_v0 }
0x10f2   : > { %7289 = vmatpush3.bf16.msra.mxu1 %v7804_v9 }
0x10f3   : > { %7302 = vmatprep.subr.bf16.mxu1 %v8288_v0 }
0x11b8   : > { %v3132_v2 = vpop.f32.mrb[100].mxu1  ;;  %v3172_v34 = vpop.f32.mrb[96].mxu0 }
0x11b9   : > { %v3219_v35 = vrot.slane %v3132_v2, 1  ;;  %v3229_v38 = vrot.slane %v3172_v34, 1  ;;  %v7260_v39 = vpop.f32.mrb[101].mxu1  ;;  %v7268_v21 = vpop.f32.mrb[97].mxu0 }
0x11ba   : > { %v3135_v42 = vpop.f32.mrb[102].mxu1  ;;  %v3175_v43 = vpop.f32.mrb[98].mxu0 }
0x11bb   : > { %v3221_v44 = vadd.f32 %v3219_v35, %v8611_v36  ;;  %v3231_v45 = vadd.f32 %v3229_v38, %v8613_v37  ;;  %v7261_v46 = vpop.f32.mrb[103].mxu1  ;;  %v7269_v48 = vpop.f32.mrb[99].mxu0 }
0x11bd   : > { %v6455_v28 = vmul.f32 -1.442695, %v3221_v44  ;;  %v6456_v41 = vmul.f32 -1.442695, %v3231_v45 }
0x11bf   : > { %7967 = vpow2.f32 %v6455_v28 }
0x11c0   : > { %7969 = vpow2.f32 %v6456_v41  ;;  %v3212_v49 = vpop.f32.mrb[104].mxu1 }
0x11c1   : > { %v7276_v54 = vpop.f32.mrb[105].mxu1  ;;  %v3213_v36 = vadd.f32 %v3212_v49, %v8626_v4 }
0x11c2   : > { %v3215_v3 = vpop.f32.mrb[106].mxu1 }
0x11c3   : > { %v7277_v50 = vpop.f32.mrb[107].mxu1  ;;  %v3239_v56 = vrot.slane %v3213_v36, 1 }
0x11c9   : > { %v7968_v52 = vpop.eup %7967 }
0x11ca   : > { %v7970_v53 = vpop.eup %7969  ;;  %v3225_v55 = vadd.f32 1.0, %v7968_v52 }
0x11cb   : > { %v3235_v5 = vadd.f32 1.0, %v7970_v53 }
0x11cc   : > { %7971 = vrcp.f32 %v3225_v55 }
0x11cd   : > { %7973 = vrcp.f32 %v3235_v5 }
0x11d6   : > { %v7972_v37 = vpop.eup %7971 }
0x11d7   : > { %v7974_v58 = vpop.eup %7973  ;;  %v3241_v59 = vmul.f32 %v7972_v37, %v3239_v56 }
0x11d8   : > { %v3249_v6 = vmul.f32 %v7974_v58, %v3247_v57  ;;  %v3244_v61 = vsub.f32 1.0, %v7974_v58 }
0x11d9   : > { %v3242_v60 = vadd.f32 %v3241_v59, %v8621_v51  ;;  %v9079_v51 = vld [vmem:[#allocation6 + $0x8] sm:$0xff]  }
0x11db   : > { %7975 = vtanh.f32 %v3242_v60 }
0x11e5   : > { %v7976_v63 = vpop.eup %7975 }
0x11e6   : > { %v3245_v1 = vmul.f32 %v7976_v63, %v3244_v61 }
0x11e8   : > { %v3250_v7 = vadd.f32 %v3249_v6, %v3245_v1 }
0x11ea   : > { %v3270_v8 = vsel %vm3262_vm10, %v9048_v30, %v3250_v7 }
0x11eb   : > { %v3296_v4 = vpack.c.bf16 %v3270_v8, %v8829_v62  ;;  %v9088_v62 = vld [vmem:[#allocation6 + $0x10] sm:$0xff]  }
0x11ed   : > { %7283 = vmatmul.mubr.msk.bf16.vlgmr.msra.gmra.mrb[100].mxu0 %vm695_vm4, %v3296_v4  ;;  %7291 = vmatmul.mubr.msk.bf16.vlgmr.msra.gmra.mrb[108].mxu1 %vm695_vm4, %v3296_v4 }
0x11ee   : > { %7303 = vmatpush3.bf16.msra.mxu1 %v9073_v10  ;;  %7295 = vmatpush3.bf16.msra.mxu0 %v7807_v11 }
0x11ef   : > { %7304 = vmatprep.subr.bf16.mxu1 %v8288_v0  ;;  %7296 = vmatprep.subr.bf16.mxu0 %v8288_v0 }
0x11f0   : > { %7298 = vmatprep.mubr.msk.bf16.mxu0 %vm8289_vm0, %v8288_v0  ;;  %7306 = vmatprep.mubr.msk.bf16.mxu1 %vm8289_vm0, %v8288_v0 }
0x11f2   : > { %7305 = vmatpush3.bf16.msra.mxu1 %v9079_v51  ;;  %7297 = vmatpush3.bf16.msra.mxu0 %v7809_v12 }
0x11f3   : > { %7310 = vmatprep.subr.bf16.mxu0 %v8288_v0  ;;  %7318 = vmatprep.subr.bf16.mxu1 %v8288_v0 }
0x11f5   : > { %7299 = vmatmul.mubr.msk.bf16.vlgmr.msra.gmra.mrb[104].mxu0 %vm695_vm4, %v3296_v4  ;;  %7307 = vmatmul.mubr.bf16.vlgmr.msra.gmra.mrb[112].mxu1 %v8290_v20 }
0x11f6   : > { %7311 = vmatpush3.bf16.msra.mxu0 %v9088_v62  ;;  %7314 = vmatprep.mubr.msk.bf16.mxu0 %vm8289_vm0, %v8288_v0 }
0x11f7   : > { %7312 = vmatprep.subr.bf16.mxu0 %v8288_v0  ;;  %7319 = vmatpush3.bf16.msra.mxu1 %v9092_v14 }
0x11f8   : > { %7320 = vmatprep.subr.bf16.mxu1 %v8288_v0  ;;  %7322 = vmatprep.mubr.msk.bf16.mxu1 %vm8289_vm0, %v8288_v0 }
0x11fa   : > { %7313 = vmatpush3.bf16.msra.mxu0 %v9097_v15 }
0x11fb   : > { %7321 = vmatpush3.bf16.msra.mxu1 %v9103_v16  ;;  %7326 = vmatprep.subr.bf16.mxu0 %v8288_v0 }
0x11fc   : > { %7334 = vmatprep.subr.bf16.mxu1 %v8288_v0 }
0x11fd   : > { %7315 = vmatmul.mubr.bf16.vlgmr.msra.gmra.mrb[108].mxu0 %v8290_v20 }
0x11fe   : > { %7323 = vmatmul.mubr.bf16.vlgmr.msra.gmra.mrb[116].mxu1 %v8290_v20  ;;  %7327 = vmatpush3.bf16.msra.mxu0 %v9073_v10  ;;  %v3295_v20 = vld [vmem:[#allocation7] sm:$0xf] }
0x11ff   : > { %7335 = vmatpush3.bf16.msra.mxu1 %v9088_v62  ;;  %7328 = vmatprep.subr.bf16.mxu0 %v8288_v0  ;;  %v3300_v13 = vrot.slane %v3295_v20, %v536_v25  ;;  %v3360_v19 = vrot.slane %v3295_v20, %v589_v26  ;;  %v3417_v25 = vrot.slane %v3295_v20, %v637_v40  ;;  %v9144_v55 = vrot.slane %v3295_v20, 3 }
0x1200   : > { %7336 = vmatprep.subr.bf16.mxu1 %v8288_v0  ;;  %7330 = vmatprep.mubr.msk.bf16.mxu0 %vm8289_vm0, %v8288_v0 }
0x1201   : > { %7338 = vmatprep.mubr.msk.bf16.mxu1 %vm8289_vm0, %v8288_v0 }
0x1202   : > { %7329 = vmatpush3.bf16.msra.mxu0 %v9079_v51 }
0x1203   : > { %7337 = vmatpush3.bf16.msra.mxu1 %v9097_v15  ;;  %7342 = vmatprep.subr.bf16.mxu0 %v8288_v0 }
0x1204   : > { %7350 = vmatprep.subr.bf16.mxu1 %v8288_v0 }
0x12c0   : > { %v3350_v23 = vpop.f32.mrb[100].mxu0  ;;  %v3407_v27 = vpop.f32.mrb[108].mxu1 }
0x12c1   : > { %v7284_v22 = vpop.f32.mrb[101].mxu0  ;;  %v7292_v47 = vpop.f32.mrb[109].mxu1  ;;  %v9134_v9 = vadd.f32 %v3350_v23, %v3300_v13  ;;  %v9141_v45 = vadd.f32 %v3407_v27, %v3360_v19 }
0x12c2   : > { %v3353_v29 = vpop.f32.mrb[102].mxu0  ;;  %v3410_v17 = vpop.f32.mrb[110].mxu1 }
0x12c3   : > { %v9130_v30 = vadd.f32 %v3353_v29, %v3300_v13  ;;  %v9132_v31 = vadd.f32 %v3410_v17, %v3360_v19  ;;  %v7285_v32 = vpop.f32.mrb[103].mxu0  ;;  %v7293_v33 = vpop.f32.mrb[111].mxu1 }
0x12c8   : > { %v3464_v18 = vpop.f32.mrb[104].mxu0  ;;  %v3517_v2 = vpop.f32.mrb[112].mxu1 }
0x12c9   : > { %v3630_v34 = vadd.f32 %v3517_v2, %v9134_v9  ;;  %v7300_v26 = vpop.f32.mrb[105].mxu0  ;;  %v7308_v35 = vpop.f32.mrb[113].mxu1  ;;  %v9147_v57 = vadd.f32 %v3464_v18, %v3417_v25 }
0x12ca   : > { %v3467_v38 = vpop.f32.mrb[106].mxu0  ;;  %v3520_v39 = vpop.f32.mrb[114].mxu1 }
0x12cb   : > { %v6472_v21 = vmul.f32 -1.442695, %v3630_v34  ;;  %v9139_v42 = vadd.f32 %v3467_v38, %v3417_v25  ;;  %v7301_v43 = vpop.f32.mrb[107].mxu0  ;;  %v7309_v44 = vpop.f32.mrb[115].mxu1 }
0x12cd   : > { %7977 = vpow2.f32 %v6472_v21 }
0x12d0   : > { %v3569_v46 = vpop.f32.mrb[108].mxu0 }
0x12d1   : > { %v3637_v48 = vadd.f32 %v3569_v46, %v9141_v45  ;;  %v7316_v28 = vpop.f32.mrb[109].mxu0  ;;  %v3624_v24 = vpop.f32.mrb[116].mxu1 }
0x12d2   : > { %v3572_v40 = vpop.f32.mrb[110].mxu0  ;;  %v7324_v41 = vpop.f32.mrb[117].mxu1  ;;  %v3625_v56 = vadd.f32 %v3624_v24, %v9144_v55 }
0x12d3   : > { %v6473_v49 = vmul.f32 -1.442695, %v3637_v48  ;;  %v7317_v54 = vpop.f32.mrb[111].mxu0  ;;  %v3627_v3 = vpop.f32.mrb[118].mxu1 }
0x12d4   : > { %v7325_v50 = vpop.f32.mrb[119].mxu1 }
0x12d5   : > { %7979 = vpow2.f32 %v6473_v49 }
0x12d7   : > { %v7978_v52 = vpop.eup %7977 }
0x12d8   : > { %v3634_v53 = vadd.f32 1.0, %v7978_v52 }
0x12da   : > { %7981 = vrcp.f32 %v3634_v53 }
0x12df   : > { %v7980_v5 = vpop.eup %7979 }
0x12e0   : > { %v3641_v36 = vadd.f32 1.0, %v7980_v5 }
0x12e2   : > { %7983 = vrcp.f32 %v3641_v36 }
0x12e4   : > { %v7982_v37 = vpop.eup %7981 }
0x12e5   : > { %v3644_v58 = vmul.f32 %v7982_v37, %v3625_v56 }
0x12e7   : > { %v3645_v59 = vadd.f32 %v3644_v58, %v9147_v57 }
0x12e9   : > { %7985 = vtanh.f32 %v3645_v59 }
0x12ec   : > { %v7984_v6 = vpop.eup %7983 }
0x12ed   : > { %v3647_v60 = vsub.f32 1.0, %v7984_v6  ;;  %v3649_v63 = vmul.f32 0.0, %v7984_v6 }
0x12f3   : > { %v7986_v61 = vpop.eup %7985 }
0x12f4   : > { %v3648_v1 = vmul.f32 %v7986_v61, %v3647_v60 }
0x12f6   : > { %v9150_v7 = vadd.f32 %v3649_v63, %v3648_v1 }
0x12f8   : > { %v3651_v8 = vpack.c.bf16 %v9150_v7, %v9150_v7  ;;  %v3804_v40 = vrot.slane %v9150_v7, 7 }
0x12fa   : > { %7331 = vmatmul.mubr.msk.bf16.vlgmr.msra.gmra.mrb[112].mxu0 %vm695_vm4, %v3651_v8  ;;  %7339 = vmatmul.mubr.msk.bf16.vlgmr.msra.gmra.mrb[120].mxu1 %vm695_vm4, %v3651_v8 }
0x12fb   : > { %7343 = vmatpush3.bf16.msra.mxu0 %v9092_v14  ;;  %7346 = vmatprep.mubr.msk.bf16.mxu0 %vm8289_vm0, %v8288_v0 }
0x12fc   : > { %7344 = vmatprep.subr.bf16.mxu0 %v8288_v0  ;;  %7351 = vmatpush3.bf16.msra.mxu1 %v9073_v10 }
0x12fd   : > { %7352 = vmatprep.subr.bf16.mxu1 %v8288_v0  ;;  %7354 = vmatprep.mubr.msk.bf16.mxu1 %vm8289_vm0, %v8288_v0 }
0x12ff   : > { %7345 = vmatpush3.bf16.msra.mxu0 %v9103_v16 }
0x1300   : > { %7358 = vmatprep.subr.bf16.mxu0 %v8288_v0  ;;  %7353 = vmatpush3.bf16.msra.mxu1 %v9079_v51 }
0x1301   : > { %7366 = vmatprep.subr.bf16.mxu1 %v8288_v0 }
0x1302   : > { %7347 = vmatmul.mubr.msk.bf16.vlgmr.msra.gmra.mrb[116].mxu0 %vm695_vm4, %v3651_v8 }
0x1303   : > { %7359 = vmatpush3.bf16.msra.mxu0 %v9088_v62  ;;  %7362 = vmatprep.mubr.msk.bf16.mxu0 %vm8289_vm0, %v8288_v0 }
0x1304   : > { %7360 = vmatprep.subr.bf16.mxu0 %v8288_v0 }
0x1307   : > { %7361 = vmatpush3.bf16.msra.mxu0 %v9097_v15 }
0x1308   : > { %7374 = vmatprep.subr.bf16.mxu0 %v8288_v0 }
0x13cd   : > { %v3689_v11 = vpop.f32.mrb[112].mxu0  ;;  %v3729_v4 = vpop.f32.mrb[120].mxu1 }
0x13ce   : > { %v3776_v12 = vrot.slane %v3689_v11, 7  ;;  %v7332_v20 = vpop.f32.mrb[113].mxu0  ;;  %v7340_v23 = vpop.f32.mrb[121].mxu1  ;;  %v3786_v27 = vrot.slane %v3729_v4, 7 }
0x13cf   : > { %v3692_v13 = vpop.f32.mrb[114].mxu0  ;;  %v3732_v19 = vpop.f32.mrb[122].mxu1 }
0x13d0   : > { %v3778_v22 = vadd.f32 %v3776_v12, %v9134_v9  ;;  %v7333_v47 = vpop.f32.mrb[115].mxu0  ;;  %v7341_v29 = vpop.f32.mrb[123].mxu1  ;;  %v3788_v32 = vadd.f32 %v3786_v27, %v9141_v45 }
0x13d2   : > { %v6477_v17 = vmul.f32 -1.442695, %v3778_v22  ;;  %v6478_v2 = vmul.f32 -1.442695, %v3788_v32 }
0x13d4   : > { %7987 = vpow2.f32 %v6477_v17 }
0x13d5   : > { %v3769_v33 = vpop.f32.mrb[116].mxu0  ;;  %7989 = vpow2.f32 %v6478_v2 }
0x13d6   : > { %v7348_v18 = vpop.f32.mrb[117].mxu0  ;;  %v3770_v39 = vadd.f32 %v3769_v33, %v9144_v55 }
0x13d7   : > { %v3772_v25 = vpop.f32.mrb[118].mxu0 }
0x13d8   : > { %v7349_v34 = vpop.f32.mrb[119].mxu0  ;;  %v3796_v43 = vrot.slane %v3770_v39, 7 }
0x13de   : > { %v7988_v26 = vpop.eup %7987 }
0x13df   : > { %v3782_v35 = vadd.f32 1.0, %v7988_v26  ;;  %v7990_v38 = vpop.eup %7989 }
0x13e0   : > { %v3792_v21 = vadd.f32 1.0, %v7990_v38 }
0x13e1   : > { %7991 = vrcp.f32 %v3782_v35 }
0x13e2   : > { %7993 = vrcp.f32 %v3792_v21 }
0x13eb   : > { %v7992_v44 = vpop.eup %7991 }
0x13ec   : > { %v3798_v46 = vmul.f32 %v7992_v44, %v3796_v43  ;;  %v7994_v28 = vpop.eup %7993 }
0x13ed   : > { %v3801_v24 = vsub.f32 1.0, %v7994_v28  ;;  %v3806_v49 = vmul.f32 %v7994_v28, %v3804_v40 }
0x13ee   : > { %v3799_v48 = vadd.f32 %v3798_v46, %v9147_v57 }
0x13f0   : > { %7995 = vtanh.f32 %v3799_v48 }
0x13fa   : > { %v7996_v41 = vpop.eup %7995 }
0x13fb   : > { %v3802_v54 = vmul.f32 %v7996_v41, %v3801_v24 }
0x13fd   : > { %v3807_v3 = vadd.f32 %v3806_v49, %v3802_v54 }
0x13ff   : > { %v3808_v50 = vpack.c.bf16 %v3807_v3, %v3807_v3  ;;  %v3964_v32 = vrot.slane %v3807_v3, 7  ;;  %v6035_v39 = vsel %vm3251_vm5, %v9150_v7, %v3807_v3 }
0x1401   : > { %v3810_v52 = vshrl.u32 %v3808_v50, 16 }
0x1403   : > { %7355 = vmatmul.mubr.msk.bf16.vlgmr.msra.gmra.mrb[124].mxu1 %vm695_vm4, %v3810_v52  ;;  %7363 = vmatmul.mubr.msk.bf16.vlgmr.msra.gmra.mrb[120].mxu0 %vm695_vm4, %v3810_v52 }
0x1404   : > { %7367 = vmatpush3.bf16.msra.mxu1 %v9092_v14  ;;  %7370 = vmatprep.mubr.msk.bf16.mxu1 %vm8289_vm0, %v8288_v0 }
0x1405   : > { %7368 = vmatprep.subr.bf16.mxu1 %v8288_v0  ;;  %7375 = vmatpush3.bf16.msra.mxu0 %v9073_v10 }
0x1406   : > { %7376 = vmatprep.subr.bf16.mxu0 %v8288_v0  ;;  %7378 = vmatprep.mubr.msk.bf16.mxu0 %vm8289_vm0, %v8288_v0 }
0x1408   : > { %7369 = vmatpush3.bf16.msra.mxu1 %v9103_v16 }
0x1409   : > { %7382 = vmatprep.subr.bf16.mxu1 %v8288_v0  ;;  %7377 = vmatpush3.bf16.msra.mxu0 %v9079_v51 }
0x140a   : > { %7390 = vmatprep.subr.bf16.mxu0 %v8288_v0 }
0x140b   : > { %7371 = vmatmul.mubr.msk.bf16.vlgmr.msra.gmra.mrb[128].mxu1 %vm695_vm4, %v3810_v52 }
0x140c   : > { %7383 = vmatpush3.bf16.msra.mxu1 %v9088_v62  ;;  %7386 = vmatprep.mubr.msk.bf16.mxu1 %vm8289_vm0, %v8288_v0 }
0x140d   : > { %7384 = vmatprep.subr.bf16.mxu1 %v8288_v0 }
0x1410   : > { %7385 = vmatpush3.bf16.msra.mxu1 %v9097_v15 }
0x1411   : > { %7398 = vmatprep.subr.bf16.mxu1 %v8288_v0 }
0x14d6   : > { %v3849_v53 = vpop.f32.mrb[124].mxu1  ;;  %v3889_v5 = vpop.f32.mrb[120].mxu0 }
0x14d7   : > { %v3936_v36 = vrot.slane %v3849_v53, 6  ;;  %v3946_v56 = vrot.slane %v3889_v5, 6  ;;  %v7356_v37 = vpop.f32.mrb[125].mxu1  ;;  %v7364_v58 = vpop.f32.mrb[121].mxu0 }
0x14d8   : > { %v3852_v59 = vpop.f32.mrb[126].mxu1  ;;  %v3892_v6 = vpop.f32.mrb[122].mxu0 }
0x14d9   : > { %v3938_v60 = vadd.f32 %v3936_v36, %v9134_v9  ;;  %v3948_v61 = vadd.f32 %v3946_v56, %v9141_v45  ;;  %v7357_v63 = vpop.f32.mrb[127].mxu1  ;;  %v7365_v1 = vpop.f32.mrb[123].mxu0 }
0x14db   : > { %v6482_v8 = vmul.f32 -1.442695, %v3938_v60  ;;  %v6483_v11 = vmul.f32 -1.442695, %v3948_v61 }
0x14dd   : > { %7997 = vpow2.f32 %v6482_v8 }
0x14de   : > { %7999 = vpow2.f32 %v6483_v11  ;;  %v3929_v4 = vpop.f32.mrb[128].mxu1 }
0x14df   : > { %v7372_v12 = vpop.f32.mrb[129].mxu1  ;;  %v3930_v47 = vadd.f32 %v3929_v4, %v9144_v55 }
0x14e0   : > { %v3932_v20 = vpop.f32.mrb[130].mxu1 }
0x14e1   : > { %v7373_v23 = vpop.f32.mrb[131].mxu1  ;;  %v3956_v29 = vrot.slane %v3930_v47, 6 }
0x14e7   : > { %v7998_v27 = vpop.eup %7997 }
0x14e8   : > { %v8000_v13 = vpop.eup %7999  ;;  %v3942_v19 = vadd.f32 1.0, %v7998_v27 }
0x14e9   : > { %v3952_v22 = vadd.f32 1.0, %v8000_v13 }
0x14ea   : > { %8001 = vrcp.f32 %v3942_v19 }
0x14eb   : > { %8003 = vrcp.f32 %v3952_v22 }
0x14f4   : > { %v8002_v17 = vpop.eup %8001 }
0x14f5   : > { %v8004_v33 = vpop.eup %8003  ;;  %v3958_v18 = vmul.f32 %v8002_v17, %v3956_v29 }
0x14f6   : > { %v3966_v2 = vmul.f32 %v8004_v33, %v3964_v32  ;;  %v3961_v34 = vsub.f32 1.0, %v8004_v33 }
0x14f7   : > { %v3959_v25 = vadd.f32 %v3958_v18, %v9147_v57 }
0x14f9   : > { %8005 = vtanh.f32 %v3959_v25 }
0x1503   : > { %v8006_v26 = vpop.eup %8005 }
0x1504   : > { %v3962_v35 = vmul.f32 %v8006_v26, %v3961_v34 }
0x1506   : > { %v3967_v38 = vadd.f32 %v3966_v2, %v3962_v35 }
0x1508   : > { %v3968_v21 = vpack.c.bf16 %v3967_v38, %v3967_v38  ;;  %v6036_v43 = vsel %vm3253_vm6, %v6035_v39, %v3967_v38  ;;  %v4123_v11 = vrot.slane %v3967_v38, 7 }
0x150a   : > { %v3970_v44 = vrot.slane %v3968_v21, 1 }
0x150c   : > { %7379 = vmatmul.mubr.msk.bf16.vlgmr.msra.gmra.mrb[124].mxu0 %vm695_vm4, %v3970_v44  ;;  %7387 = vmatmul.mubr.msk.bf16.vlgmr.msra.gmra.mrb[132].mxu1 %vm695_vm4, %v3970_v44 }
0x150d   : > { %7391 = vmatpush3.bf16.msra.mxu0 %v9092_v14  ;;  %7394 = vmatprep.mubr.msk.bf16.mxu0 %vm8289_vm0, %v8288_v0 }
0x150e   : > { %7392 = vmatprep.subr.bf16.mxu0 %v8288_v0  ;;  %7399 = vmatpush3.bf16.msra.mxu1 %v9073_v10 }
0x150f   : > { %7400 = vmatprep.subr.bf16.mxu1 %v8288_v0  ;;  %7402 = vmatprep.mubr.msk.bf16.mxu1 %vm8289_vm0, %v8288_v0 }
0x1511   : > { %7393 = vmatpush3.bf16.msra.mxu0 %v9103_v16 }
0x1512   : > { %7406 = vmatprep.subr.bf16.mxu0 %v8288_v0  ;;  %7401 = vmatpush3.bf16.msra.mxu1 %v9079_v51 }
0x1513   : > { %7414 = vmatprep.subr.bf16.mxu1 %v8288_v0 }
0x1514   : > { %7395 = vmatmul.mubr.msk.bf16.vlgmr.msra.gmra.mrb[128].mxu0 %vm695_vm4, %v3970_v44 }
0x1515   : > { %7407 = vmatpush3.bf16.msra.mxu0 %v9088_v62  ;;  %7410 = vmatprep.mubr.msk.bf16.mxu0 %vm8289_vm0, %v8288_v0 }
0x1516   : > { %7408 = vmatprep.subr.bf16.mxu0 %v8288_v0 }
0x1519   : > { %7409 = vmatpush3.bf16.msra.mxu0 %v9097_v15 }
0x151a   : > { %7422 = vmatprep.subr.bf16.mxu0 %v8288_v0 }
0x15df   : > { %v4008_v7 = vpop.f32.mrb[124].mxu0  ;;  %v4048_v46 = vpop.f32.mrb[132].mxu1 }
0x15e0   : > { %v4095_v48 = vrot.slane %v4008_v7, 5  ;;  %v4105_v28 = vrot.slane %v4048_v46, 5  ;;  %v7380_v24 = vpop.f32.mrb[125].mxu0  ;;  %v7388_v40 = vpop.f32.mrb[133].mxu1 }
0x15e1   : > { %v4011_v41 = vpop.f32.mrb[126].mxu0  ;;  %v4051_v49 = vpop.f32.mrb[134].mxu1 }
0x15e2   : > { %v4097_v54 = vadd.f32 %v4095_v48, %v9134_v9  ;;  %v4107_v3 = vadd.f32 %v4105_v28, %v9141_v45  ;;  %v7381_v50 = vpop.f32.mrb[127].mxu0  ;;  %v7389_v52 = vpop.f32.mrb[135].mxu1 }
0x15e4   : > { %v6487_v53 = vmul.f32 -1.442695, %v4097_v54  ;;  %v6488_v5 = vmul.f32 -1.442695, %v4107_v3 }
0x15e6   : > { %8007 = vpow2.f32 %v6487_v53 }
0x15e7   : > { %8009 = vpow2.f32 %v6488_v5  ;;  %v4088_v36 = vpop.f32.mrb[128].mxu0 }
0x15e8   : > { %v7396_v56 = vpop.f32.mrb[129].mxu0  ;;  %v4089_v63 = vadd.f32 %v4088_v36, %v9144_v55 }
0x15e9   : > { %v4091_v37 = vpop.f32.mrb[130].mxu0 }
0x15ea   : > { %v7397_v58 = vpop.f32.mrb[131].mxu0  ;;  %v4115_v1 = vrot.slane %v4089_v63, 5 }
0x15f0   : > { %v8008_v59 = vpop.eup %8007 }
0x15f1   : > { %v8010_v6 = vpop.eup %8009  ;;  %v4101_v60 = vadd.f32 1.0, %v8008_v59 }
0x15f2   : > { %v4111_v61 = vadd.f32 1.0, %v8010_v6 }
0x15f3   : > { %8011 = vrcp.f32 %v4101_v60 }
0x15f4   : > { %8013 = vrcp.f32 %v4111_v61 }
0x15fd   : > { %v8012_v8 = vpop.eup %8011 }
0x15fe   : > { %v8014_v4 = vpop.eup %8013  ;;  %v4117_v12 = vmul.f32 %v8012_v8, %v4115_v1 }
0x15ff   : > { %v4125_v20 = vmul.f32 %v8014_v4, %v4123_v11  ;;  %v4120_v27 = vsub.f32 1.0, %v8014_v4 }
0x1600   : > { %v4118_v23 = vadd.f32 %v4117_v12, %v9147_v57 }
0x1602   : > { %8015 = vtanh.f32 %v4118_v23 }
0x160c   : > { %v8016_v13 = vpop.eup %8015 }
0x160d   : > { %v4121_v19 = vmul.f32 %v8016_v13, %v4120_v27 }
0x160f   : > { %v4126_v22 = vadd.f32 %v4125_v20, %v4121_v19 }
0x1611   : > { %v4127_v47 = vpack.c.bf16 %v4126_v22, %v4126_v22  ;;  %v6037_v29 = vsel %vm3255_vm7, %v6036_v43, %v4126_v22  ;;  %v4284_v5 = vrot.slane %v4126_v22, 7 }
0x1613   : > { %v4129_v17 = vshrl.u32 %v4127_v47, 16 }
0x1615   : > { %v4131_v32 = vrot.slane %v4129_v17, 1 }
0x1617   : > { %7403 = vmatmul.mubr.msk.bf16.vlgmr.msra.gmra.mrb[136].mxu1 %vm695_vm4, %v4131_v32  ;;  %7411 = vmatmul.mubr.msk.bf16.vlgmr.msra.gmra.mrb[132].mxu0 %vm695_vm4, %v4131_v32 }
0x1618   : > { %7415 = vmatpush3.bf16.msra.mxu1 %v9092_v14  ;;  %7418 = vmatprep.mubr.msk.bf16.mxu1 %vm8289_vm0, %v8288_v0 }
0x1619   : > { %7416 = vmatprep.subr.bf16.mxu1 %v8288_v0  ;;  %7423 = vmatpush3.bf16.msra.mxu0 %v9073_v10 }
0x161a   : > { %7424 = vmatprep.subr.bf16.mxu0 %v8288_v0  ;;  %7426 = vmatprep.mubr.msk.bf16.mxu0 %vm8289_vm0, %v8288_v0 }
0x161c   : > { %7417 = vmatpush3.bf16.msra.mxu1 %v9103_v16 }
0x161d   : > { %7430 = vmatprep.subr.bf16.mxu1 %v8288_v0  ;;  %7425 = vmatpush3.bf16.msra.mxu0 %v9079_v51 }
0x161e   : > { %7438 = vmatprep.subr.bf16.mxu0 %v8288_v0 }
0x161f   : > { %7419 = vmatmul.mubr.msk.bf16.vlgmr.msra.gmra.mrb[140].mxu1 %vm695_vm4, %v4131_v32 }
0x1620   : > { %7431 = vmatpush3.bf16.msra.mxu1 %v9088_v62  ;;  %7434 = vmatprep.mubr.msk.bf16.mxu1 %vm8289_vm0, %v8288_v0 }
0x1621   : > { %7432 = vmatprep.subr.bf16.mxu1 %v8288_v0 }
0x1624   : > { %7433 = vmatpush3.bf16.msra.mxu1 %v9097_v15 }
0x1625   : > { %7446 = vmatprep.subr.bf16.mxu1 %v8288_v0 }
0x16ea   : > { %v4169_v33 = vpop.f32.mrb[136].mxu1  ;;  %v4209_v18 = vpop.f32.mrb[132].mxu0 }
0x16eb   : > { %v4256_v2 = vrot.slane %v4169_v33, 4  ;;  %v4266_v25 = vrot.slane %v4209_v18, 4  ;;  %v7404_v34 = vpop.f32.mrb[137].mxu1  ;;  %v7412_v26 = vpop.f32.mrb[133].mxu0 }
0x16ec   : > { %v4172_v35 = vpop.f32.mrb[138].mxu1  ;;  %v4212_v38 = vpop.f32.mrb[134].mxu0 }
0x16ed   : > { %v4258_v39 = vadd.f32 %v4256_v2, %v9134_v9  ;;  %v4268_v21 = vadd.f32 %v4266_v25, %v9141_v45  ;;  %v7405_v43 = vpop.f32.mrb[139].mxu1  ;;  %v7413_v44 = vpop.f32.mrb[135].mxu0 }
0x16ef   : > { %v6492_v7 = vmul.f32 -1.442695, %v4258_v39  ;;  %v6493_v46 = vmul.f32 -1.442695, %v4268_v21 }
0x16f1   : > { %8017 = vpow2.f32 %v6492_v7 }
0x16f2   : > { %8019 = vpow2.f32 %v6493_v46  ;;  %v4249_v48 = vpop.f32.mrb[140].mxu1 }
0x16f3   : > { %v7420_v28 = vpop.f32.mrb[141].mxu1  ;;  %v4250_v50 = vadd.f32 %v4249_v48, %v9144_v55 }
0x16f4   : > { %v4252_v24 = vpop.f32.mrb[142].mxu1 }
0x16f5   : > { %v7421_v40 = vpop.f32.mrb[143].mxu1  ;;  %v4276_v52 = vrot.slane %v4250_v50, 4 }
0x16fb   : > { %v8018_v41 = vpop.eup %8017 }
0x16fc   : > { %v8020_v49 = vpop.eup %8019  ;;  %v4262_v54 = vadd.f32 1.0, %v8018_v41 }
0x16fd   : > { %v4272_v3 = vadd.f32 1.0, %v8020_v49 }
0x16fe   : > { %8021 = vrcp.f32 %v4262_v54 }
0x16ff   : > { %8023 = vrcp.f32 %v4272_v3 }
0x1708   : > { %v8022_v53 = vpop.eup %8021 }
0x1709   : > { %v8024_v36 = vpop.eup %8023  ;;  %v4278_v56 = vmul.f32 %v8022_v53, %v4276_v52 }
0x170a   : > { %v4286_v37 = vmul.f32 %v8024_v36, %v4284_v5  ;;  %v4281_v59 = vsub.f32 1.0, %v8024_v36 }
0x170b   : > { %v4279_v58 = vadd.f32 %v4278_v56, %v9147_v57 }
0x170d   : > { %8025 = vtanh.f32 %v4279_v58 }
0x1717   : > { %v8026_v6 = vpop.eup %8025 }
0x1718   : > { %v4282_v60 = vmul.f32 %v8026_v6, %v4281_v59 }
0x171a   : > { %v4287_v61 = vadd.f32 %v4286_v37, %v4282_v60 }
0x171c   : > { %v4288_v63 = vpack.c.bf16 %v4287_v61, %v4287_v61  ;;  %v6038_v1 = vsel %vm542_vm2, %v6037_v29, %v4287_v61  ;;  %v4443_v7 = vrot.slane %v4287_v61, 7 }
0x171e   : > { %v4290_v8 = vrot.slane %v4288_v63, 2 }
0x1720   : > { %7427 = vmatmul.mubr.msk.bf16.vlgmr.msra.gmra.mrb[136].mxu0 %vm695_vm4, %v4290_v8  ;;  %7435 = vmatmul.mubr.msk.bf16.vlgmr.msra.gmra.mrb[144].mxu1 %vm695_vm4, %v4290_v8 }
0x1721   : > { %7439 = vmatpush3.bf16.msra.mxu0 %v9092_v14  ;;  %7442 = vmatprep.mubr.msk.bf16.mxu0 %vm8289_vm0, %v8288_v0 }
0x1722   : > { %7440 = vmatprep.subr.bf16.mxu0 %v8288_v0  ;;  %7447 = vmatpush3.bf16.msra.mxu1 %v9073_v10 }
0x1723   : > { %7448 = vmatprep.subr.bf16.mxu1 %v8288_v0  ;;  %7450 = vmatprep.mubr.msk.bf16.mxu1 %vm8289_vm0, %v8288_v0 }
0x1725   : > { %7441 = vmatpush3.bf16.msra.mxu0 %v9103_v16 }
0x1726   : > { %7454 = vmatprep.subr.bf16.mxu0 %v8288_v0  ;;  %7449 = vmatpush3.bf16.msra.mxu1 %v9079_v51 }
0x1727   : > { %7462 = vmatprep.subr.bf16.mxu1 %v8288_v0 }
0x1728   : > { %7443 = vmatmul.mubr.msk.bf16.vlgmr.msra.gmra.mrb[140].mxu0 %vm695_vm4, %v4290_v8 }
0x1729   : > { %7455 = vmatpush3.bf16.msra.mxu0 %v9088_v62  ;;  %7458 = vmatprep.mubr.msk.bf16.mxu0 %vm8289_vm0, %v8288_v0 }
0x172a   : > { %7456 = vmatprep.subr.bf16.mxu0 %v8288_v0 }
0x172d   : > { %7457 = vmatpush3.bf16.msra.mxu0 %v9097_v15 }
0x172e   : > { %7470 = vmatprep.subr.bf16.mxu0 %v8288_v0 }
0x17f3   : > { %v4328_v11 = vpop.f32.mrb[136].mxu0  ;;  %v4368_v4 = vpop.f32.mrb[144].mxu1 }
0x17f4   : > { %v4415_v12 = vrot.slane %v4328_v11, 3  ;;  %v4425_v20 = vrot.slane %v4368_v4, 3  ;;  %v7428_v23 = vpop.f32.mrb[137].mxu0  ;;  %v7436_v27 = vpop.f32.mrb[145].mxu1 }
0x17f5   : > { %v4331_v13 = vpop.f32.mrb[138].mxu0  ;;  %v4371_v19 = vpop.f32.mrb[146].mxu1 }
0x17f6   : > { %v4417_v22 = vadd.f32 %v4415_v12, %v9134_v9  ;;  %v4427_v47 = vadd.f32 %v4425_v20, %v9141_v45  ;;  %v7429_v29 = vpop.f32.mrb[139].mxu0  ;;  %v7437_v17 = vpop.f32.mrb[147].mxu1 }
0x17f8   : > { %v6497_v32 = vmul.f32 -1.442695, %v4417_v22  ;;  %v6498_v33 = vmul.f32 -1.442695, %v4427_v47 }
0x17fa   : > { %8027 = vpow2.f32 %v6497_v32 }
0x17fb   : > { %8029 = vpow2.f32 %v6498_v33  ;;  %v4408_v18 = vpop.f32.mrb[140].mxu0 }
0x17fc   : > { %v7444_v2 = vpop.f32.mrb[141].mxu0  ;;  %v4409_v21 = vadd.f32 %v4408_v18, %v9144_v55 }
0x17fd   : > { %v4411_v25 = vpop.f32.mrb[142].mxu0 }
0x17fe   : > { %v7445_v34 = vpop.f32.mrb[143].mxu0  ;;  %v4435_v43 = vrot.slane %v4409_v21, 3 }
0x1804   : > { %v8028_v26 = vpop.eup %8027 }
0x1805   : > { %v8030_v35 = vpop.eup %8029  ;;  %v4421_v38 = vadd.f32 1.0, %v8028_v26 }
0x1806   : > { %v4431_v39 = vadd.f32 1.0, %v8030_v35 }
0x1807   : > { %8031 = vrcp.f32 %v4421_v38 }
0x1808   : > { %8033 = vrcp.f32 %v4431_v39 }
0x1811   : > { %v8032_v44 = vpop.eup %8031 }
0x1812   : > { %v8034_v46 = vpop.eup %8033  ;;  %v4437_v48 = vmul.f32 %v8032_v44, %v4435_v43 }
0x1813   : > { %v4445_v28 = vmul.f32 %v8034_v46, %v4443_v7  ;;  %v4440_v40 = vsub.f32 1.0, %v8034_v46 }
0x1814   : > { %v4438_v24 = vadd.f32 %v4437_v48, %v9147_v57 }
0x1816   : > { %8035 = vtanh.f32 %v4438_v24 }
0x1820   : > { %v8036_v41 = vpop.eup %8035 }
0x1821   : > { %v4441_v49 = vmul.f32 %v8036_v41, %v4440_v40 }
0x1823   : > { %v4446_v54 = vadd.f32 %v4445_v28, %v4441_v49 }
0x1825   : > { %v4447_v3 = vpack.c.bf16 %v4446_v54, %v4446_v54  ;;  %v6039_v50 = vsel %vm3258_vm8, %v6038_v1, %v4446_v54  ;;  %v4604_v33 = vrot.slane %v4446_v54, 7 }
0x1827   : > { %v4449_v52 = vshrl.u32 %v4447_v3, 16 }
0x1829   : > { %v4451_v53 = vrot.slane %v4449_v52, 2 }
0x182b   : > { %7451 = vmatmul.mubr.msk.bf16.vlgmr.msra.gmra.mrb[148].mxu1 %vm695_vm4, %v4451_v53  ;;  %7459 = vmatmul.mubr.msk.bf16.vlgmr.msra.gmra.mrb[144].mxu0 %vm695_vm4, %v4451_v53 }
0x182c   : > { %7463 = vmatpush3.bf16.msra.mxu1 %v9092_v14  ;;  %7466 = vmatprep.mubr.msk.bf16.mxu1 %vm8289_vm0, %v8288_v0 }
0x182d   : > { %7464 = vmatprep.subr.bf16.mxu1 %v8288_v0  ;;  %7471 = vmatpush3.bf16.msra.mxu0 %v9073_v10 }
0x182e   : > { %7472 = vmatprep.subr.bf16.mxu0 %v8288_v0  ;;  %7474 = vmatprep.mubr.msk.bf16.mxu0 %vm8289_vm0, %v8288_v0 }
0x1830   : > { %7465 = vmatpush3.bf16.msra.mxu1 %v9103_v16 }
0x1831   : > { %7478 = vmatprep.subr.bf16.mxu1 %v8288_v0  ;;  %7473 = vmatpush3.bf16.msra.mxu0 %v9079_v51 }
0x1832   : > { %7486 = vmatprep.subr.bf16.mxu0 %v8288_v0 }
0x1833   : > { %7467 = vmatmul.mubr.msk.bf16.vlgmr.msra.gmra.mrb[152].mxu1 %vm695_vm4, %v4451_v53 }
0x1834   : > { %7479 = vmatpush3.bf16.msra.mxu1 %v9088_v62  ;;  %7482 = vmatprep.mubr.msk.bf16.mxu1 %vm8289_vm0, %v8288_v0 }
0x1835   : > { %7480 = vmatprep.subr.bf16.mxu1 %v8288_v0 }
0x1838   : > { %7481 = vmatpush3.bf16.msra.mxu1 %v9097_v15 }
0x1839   : > { %7494 = vmatprep.subr.bf16.mxu1 %v8288_v0 }
0x18fe   : > { %v4489_v5 = vpop.f32.mrb[148].mxu1  ;;  %v4529_v36 = vpop.f32.mrb[144].mxu0 }
0x18ff   : > { %v4576_v56 = vrot.slane %v4489_v5, 2  ;;  %v4586_v37 = vrot.slane %v4529_v36, 2  ;;  %v7452_v58 = vpop.f32.mrb[149].mxu1  ;;  %v7460_v59 = vpop.f32.mrb[145].mxu0 }
0x1900   : > { %v4492_v6 = vpop.f32.mrb[150].mxu1  ;;  %v4532_v60 = vpop.f32.mrb[146].mxu0 }
0x1901   : > { %v4578_v61 = vadd.f32 %v4576_v56, %v9134_v9  ;;  %v4588_v63 = vadd.f32 %v4586_v37, %v9141_v45  ;;  %v7453_v1 = vpop.f32.mrb[151].mxu1  ;;  %v7461_v8 = vpop.f32.mrb[147].mxu0 }
0x1903   : > { %v6502_v11 = vmul.f32 -1.442695, %v4578_v61  ;;  %v6503_v4 = vmul.f32 -1.442695, %v4588_v63 }
0x1905   : > { %8037 = vpow2.f32 %v6502_v11 }
0x1906   : > { %8039 = vpow2.f32 %v6503_v4  ;;  %v4569_v12 = vpop.f32.mrb[152].mxu1 }
0x1907   : > { %v7468_v20 = vpop.f32.mrb[153].mxu1  ;;  %v4570_v29 = vadd.f32 %v4569_v12, %v9144_v55 }
0x1908   : > { %v4572_v23 = vpop.f32.mrb[154].mxu1 }
0x1909   : > { %v7469_v27 = vpop.f32.mrb[155].mxu1  ;;  %v4596_v17 = vrot.slane %v4570_v29, 2 }
0x190f   : > { %v8038_v13 = vpop.eup %8037 }
0x1910   : > { %v8040_v19 = vpop.eup %8039  ;;  %v4582_v22 = vadd.f32 1.0, %v8038_v13 }
0x1911   : > { %v4592_v47 = vadd.f32 1.0, %v8040_v19  ;;  %v9354_v19 = vld [vmem:[#allocation6 + $0x8] sm:$0xff]  }
0x1912   : > { %8041 = vrcp.f32 %v4582_v22 }
0x1913   : > { %8043 = vrcp.f32 %v4592_v47 }
0x191c   : > { %v8042_v32 = vpop.eup %8041 }
0x191d   : > { %v8044_v18 = vpop.eup %8043  ;;  %v4598_v2 = vmul.f32 %v8042_v32, %v4596_v17 }
0x191e   : > { %v4606_v25 = vmul.f32 %v8044_v18, %v4604_v33  ;;  %v4601_v26 = vsub.f32 1.0, %v8044_v18 }
0x191f   : > { %v4599_v34 = vadd.f32 %v4598_v2, %v9147_v57 }
0x1921   : > { %8045 = vtanh.f32 %v4599_v34 }
0x192b   : > { %v8046_v35 = vpop.eup %8045 }
0x192c   : > { %v4602_v38 = vmul.f32 %v8046_v35, %v4601_v26 }
0x192e   : > { %v4607_v39 = vadd.f32 %v4606_v25, %v4602_v38 }
0x1930   : > { %v4608_v21 = vpack.c.bf16 %v4607_v39, %v4607_v39  ;;  %v6040_v43 = vsel %vm3260_vm9, %v6039_v50, %v4607_v39  ;;  %v4763_v6 = vrot.slane %v4607_v39, 7 }
0x1932   : > { %v4610_v44 = vrot.slane %v4608_v21, 3 }
0x1934   : > { %7475 = vmatmul.mubr.msk.bf16.vlgmr.msra.gmra.mrb[148].mxu0 %vm695_vm4, %v4610_v44  ;;  %7483 = vmatmul.mubr.msk.bf16.vlgmr.msra.gmra.mrb[156].mxu1 %vm695_vm4, %v4610_v44 }
0x1935   : > { %7487 = vmatpush3.bf16.msra.mxu0 %v9092_v14  ;;  %7490 = vmatprep.mubr.msk.bf16.mxu0 %vm8289_vm0, %v8288_v0 }
0x1936   : > { %7488 = vmatprep.subr.bf16.mxu0 %v8288_v0  ;;  %7495 = vmatpush3.bf16.msra.mxu1 %v9073_v10 }
0x1937   : > { %7496 = vmatprep.subr.bf16.mxu1 %v8288_v0  ;;  %7498 = vmatprep.mubr.msk.bf16.mxu1 %vm8289_vm0, %v8288_v0 }
0x1939   : > { %7489 = vmatpush3.bf16.msra.mxu0 %v9103_v16 }
0x193a   : > { %7502 = vmatprep.subr.bf16.mxu0 %v8288_v0  ;;  %7497 = vmatpush3.bf16.msra.mxu1 %v9079_v51 }
0x193b   : > { %7510 = vmatprep.subr.bf16.mxu1 %v8288_v0 }
0x193c   : > { %7491 = vmatmul.mubr.msk.bf16.vlgmr.msra.gmra.mrb[152].mxu0 %vm695_vm4, %v4610_v44 }
0x193d   : > { %7503 = vmatpush3.bf16.msra.mxu0 %v9088_v62  ;;  %7506 = vmatprep.mubr.msk.bf16.mxu0 %vm8289_vm0, %v8288_v0 }
0x193e   : > { %7504 = vmatprep.subr.bf16.mxu0 %v8288_v0 }
0x1941   : > { %7505 = vmatpush3.bf16.msra.mxu0 %v9097_v15 }
0x1942   : > { %7518 = vmatprep.subr.bf16.mxu0 %v8288_v0 }
0x1a07   : > { %v4648_v10 = vpop.f32.mrb[148].mxu0  ;;  %v4688_v7 = vpop.f32.mrb[156].mxu1 }
0x1a08   : > { %v4735_v46 = vrot.slane %v4648_v10, 1  ;;  %v4745_v48 = vrot.slane %v4688_v7, 1  ;;  %v7476_v51 = vpop.f32.mrb[149].mxu0  ;;  %v7484_v28 = vpop.f32.mrb[157].mxu1 }
0x1a09   : > { %v4651_v24 = vpop.f32.mrb[150].mxu0  ;;  %v4691_v40 = vpop.f32.mrb[158].mxu1 }
0x1a0a   : > { %v4737_v41 = vadd.f32 %v4735_v46, %v9134_v9  ;;  %v4747_v62 = vadd.f32 %v4745_v48, %v9141_v45  ;;  %v7477_v49 = vpop.f32.mrb[151].mxu0  ;;  %v7485_v54 = vpop.f32.mrb[159].mxu1 }
0x1a0c   : > { %v6507_v3 = vmul.f32 -1.442695, %v4737_v41  ;;  %v6508_v50 = vmul.f32 -1.442695, %v4747_v62 }
0x1a0e   : > { %8047 = vpow2.f32 %v6507_v3 }
0x1a0f   : > { %8049 = vpow2.f32 %v6508_v50  ;;  %v4728_v15 = vpop.f32.mrb[152].mxu0 }
0x1a10   : > { %v7492_v52 = vpop.f32.mrb[153].mxu0  ;;  %v4729_v9 = vadd.f32 %v4728_v15, %v9144_v55 }
0x1a11   : > { %v4731_v53 = vpop.f32.mrb[154].mxu0  ;;  %v9379_v52 = vld [vmem:[#allocation6 + $0x20] sm:$0xff]  }
0x1a12   : > { %v7493_v5 = vpop.f32.mrb[155].mxu0  ;;  %v4755_v59 = vrot.slane %v4729_v9, 1  ;;  %v9389_v53 = vld [vmem:[#allocation6 + $0x28] sm:$0xff]  }
0x1a18   : > { %v8048_v36 = vpop.eup %8047 }
0x1a19   : > { %v8050_v56 = vpop.eup %8049  ;;  %v4741_v37 = vadd.f32 1.0, %v8048_v36 }
0x1a1a   : > { %v4751_v58 = vadd.f32 1.0, %v8050_v56 }
0x1a1b   : > { %8051 = vrcp.f32 %v4741_v37 }
0x1a1c   : > { %8053 = vrcp.f32 %v4751_v58 }
0x1a25   : > { %v8052_v45 = vpop.eup %8051 }
0x1a26   : > { %v8054_v60 = vpop.eup %8053  ;;  %v4757_v61 = vmul.f32 %v8052_v45, %v4755_v59 }
0x1a27   : > { %v4765_v63 = vmul.f32 %v8054_v60, %v4763_v6  ;;  %v4760_v8 = vsub.f32 1.0, %v8054_v60 }
0x1a28   : > { %v4758_v1 = vadd.f32 %v4757_v61, %v9147_v57  ;;  %v9346_v57 = vld [vmem:[#allocation6] sm:$0xff]  }
0x1a2a   : > { %8055 = vtanh.f32 %v4758_v1 }
0x1a34   : > { %v8056_v11 = vpop.eup %8055 }
0x1a35   : > { %v4761_v4 = vmul.f32 %v8056_v11, %v4760_v8 }
0x1a37   : > { %v4766_v12 = vadd.f32 %v4765_v63, %v4761_v4 }
0x1a39   : > { %v4767_v20 = vpack.c.bf16 %v4766_v12, %v4766_v12  ;;  %v9338_v23 = vsel %vm3262_vm10, %v6040_v43, %v4766_v12  ;;  %v4915_v28 = vrot.slane %v4766_v12, 7 }
0x1a3b   : > { %v4769_v27 = vshrl.u32 %v4767_v20, 16 }
0x1a3d   : > { %v4771_v13 = vrot.slane %v4769_v27, 3 }
0x1a3f   : > { %7499 = vmatmul.mubr.msk.bf16.vlgmr.msra.gmra.mrb[160].mxu1 %vm695_vm4, %v4771_v13  ;;  %7507 = vmatmul.mubr.msk.bf16.vlgmr.msra.gmra.mrb[156].mxu0 %vm695_vm4, %v4771_v13 }
0x1a40   : > { %7511 = vmatpush3.bf16.msra.mxu1 %v9092_v14  ;;  %7514 = vmatprep.mubr.msk.bf16.mxu1 %vm8289_vm0, %v8288_v0  ;;  %v9359_v14 = vld [vmem:[#allocation6 + $0x10] sm:$0xff]  }
0x1a41   : > { %7512 = vmatprep.subr.bf16.mxu1 %v8288_v0  ;;  %7519 = vmatpush3.bf16.msra.mxu0 %v9346_v57 }
0x1a42   : > { %7520 = vmatprep.subr.bf16.mxu0 %v8288_v0  ;;  %7522 = vmatprep.mubr.msk.bf16.mxu0 %vm8289_vm0, %v8288_v0 }
0x1a44   : > { %7513 = vmatpush3.bf16.msra.mxu1 %v9103_v16  ;;  %v9365_v16 = vld [vmem:[#allocation6 + $0x18] sm:$0xff]  }
0x1a45   : > { %7526 = vmatprep.subr.bf16.mxu1 %v8288_v0  ;;  %7521 = vmatpush3.bf16.msra.mxu0 %v9354_v19 }
0x1a46   : > { %7534 = vmatprep.subr.bf16.mxu0 %v8288_v0 }
0x1a47   : > { %7515 = vmatmul.mubr.msk.bf16.vlgmr.msra.gmra.mrb[164].mxu1 %vm695_vm4, %v4771_v13 }
0x1a48   : > { %7527 = vmatpush3.bf16.msra.mxu1 %v9359_v14  ;;  %7530 = vmatprep.mubr.msk.bf16.mxu1 %vm8289_vm0, %v8288_v0 }
0x1a49   : > { %7528 = vmatprep.subr.bf16.mxu1 %v8288_v0 }
0x1a4c   : > { %7529 = vmatpush3.bf16.msra.mxu1 %v9365_v16 }
0x1a4d   : > { %7542 = vmatprep.subr.bf16.mxu1 %v8288_v0 }
0x1b12   : > { %v4809_v22 = vpop.f32.mrb[160].mxu1  ;;  %v4849_v47 = vpop.f32.mrb[156].mxu0 }
0x1b13   : > { %v4895_v29 = vadd.f32 %v4809_v22, %v9130_v30  ;;  %v4902_v17 = vadd.f32 %v4849_v47, %v9132_v31  ;;  %v7500_v32 = vpop.f32.mrb[161].mxu1  ;;  %v7508_v33 = vpop.f32.mrb[157].mxu0 }
0x1b14   : > { %v4812_v18 = vpop.f32.mrb[162].mxu1  ;;  %v4852_v2 = vpop.f32.mrb[158].mxu0 }
0x1b15   : > { %v6512_v25 = vmul.f32 -1.442695, %v4895_v29  ;;  %v6513_v34 = vmul.f32 -1.442695, %v4902_v17  ;;  %v7501_v26 = vpop.f32.mrb[163].mxu1  ;;  %v7509_v35 = vpop.f32.mrb[159].mxu0 }
0x1b17   : > { %8057 = vpow2.f32 %v6512_v25 }
0x1b18   : > { %8059 = vpow2.f32 %v6513_v34 }
0x1b1a   : > { %v4889_v38 = vpop.f32.mrb[164].mxu1 }
0x1b1b   : > { %v7516_v39 = vpop.f32.mrb[165].mxu1  ;;  %v4890_v48 = vadd.f32 %v4889_v38, %v9144_v55 }
0x1b1c   : > { %v4892_v21 = vpop.f32.mrb[166].mxu1 }
0x1b1d   : > { %v7517_v43 = vpop.f32.mrb[167].mxu1 }
0x1b21   : > { %v8058_v44 = vpop.eup %8057 }
0x1b22   : > { %v8060_v10 = vpop.eup %8059  ;;  %v4899_v7 = vadd.f32 1.0, %v8058_v44 }
0x1b23   : > { %v4906_v46 = vadd.f32 1.0, %v8060_v10 }
0x1b24   : > { %8061 = vrcp.f32 %v4899_v7 }
0x1b25   : > { %8063 = vrcp.f32 %v4906_v46 }
0x1b2e   : > { %v8062_v51 = vpop.eup %8061 }
0x1b2f   : > { %v8064_v24 = vpop.eup %8063  ;;  %v4909_v40 = vmul.f32 %v8062_v51, %v4890_v48 }
0x1b30   : > { %v4917_v41 = vmul.f32 %v8064_v24, %v4915_v28  ;;  %v4912_v49 = vsub.f32 1.0, %v8064_v24 }
0x1b31   : > { %v4910_v62 = vadd.f32 %v4909_v40, %v9139_v42 }
0x1b33   : > { %8065 = vtanh.f32 %v4910_v62 }
0x1b3d   : > { %v8066_v54 = vpop.eup %8065 }
0x1b3e   : > { %v4913_v3 = vmul.f32 %v8066_v54, %v4912_v49 }
0x1b40   : > { %v9373_v50 = vadd.f32 %v4917_v41, %v4913_v3 }
0x1b42   : > { %v4919_v15 = vpack.c.bf16 %v9373_v50, %v9373_v50  ;;  %v5072_v34 = vrot.slane %v9373_v50, 7 }
0x1b44   : > { %7523 = vmatmul.mubr.msk.bf16.vlgmr.msra.gmra.mrb[160].mxu0 %vm695_vm4, %v4919_v15  ;;  %7531 = vmatmul.mubr.msk.bf16.vlgmr.msra.gmra.mrb[168].mxu1 %vm695_vm4, %v4919_v15 }
0x1b45   : > { %7535 = vmatpush3.bf16.msra.mxu0 %v9379_v52  ;;  %7538 = vmatprep.mubr.msk.bf16.mxu0 %vm8289_vm0, %v8288_v0 }
0x1b46   : > { %7536 = vmatprep.subr.bf16.mxu0 %v8288_v0  ;;  %7543 = vmatpush3.bf16.msra.mxu1 %v9346_v57 }
0x1b47   : > { %7544 = vmatprep.subr.bf16.mxu1 %v8288_v0  ;;  %7546 = vmatprep.mubr.msk.bf16.mxu1 %vm8289_vm0, %v8288_v0 }
0x1b49   : > { %7537 = vmatpush3.bf16.msra.mxu0 %v9389_v53 }
0x1b4a   : > { %7550 = vmatprep.subr.bf16.mxu0 %v8288_v0  ;;  %7545 = vmatpush3.bf16.msra.mxu1 %v9354_v19 }
0x1b4b   : > { %7558 = vmatprep.subr.bf16.mxu1 %v8288_v0 }
0x1b4c   : > { %7539 = vmatmul.mubr.msk.bf16.vlgmr.msra.gmra.mrb[164].mxu0 %vm695_vm4, %v4919_v15 }
0x1b4d   : > { %7551 = vmatpush3.bf16.msra.mxu0 %v9359_v14  ;;  %7554 = vmatprep.mubr.msk.bf16.mxu0 %vm8289_vm0, %v8288_v0 }
0x1b4e   : > { %7552 = vmatprep.subr.bf16.mxu0 %v8288_v0 }
0x1b51   : > { %7553 = vmatpush3.bf16.msra.mxu0 %v9365_v16 }
0x1b52   : > { %7566 = vmatprep.subr.bf16.mxu0 %v8288_v0 }
0x1c17   : > { %v4957_v5 = vpop.f32.mrb[160].mxu0  ;;  %v4997_v36 = vpop.f32.mrb[168].mxu1 }
0x1c18   : > { %v5044_v56 = vrot.slane %v4957_v5, 7  ;;  %v7524_v37 = vpop.f32.mrb[161].mxu0  ;;  %v7532_v58 = vpop.f32.mrb[169].mxu1  ;;  %v5054_v9 = vrot.slane %v4997_v36, 7 }
0x1c19   : > { %v4960_v59 = vpop.f32.mrb[162].mxu0  ;;  %v5000_v45 = vpop.f32.mrb[170].mxu1 }
0x1c1a   : > { %v5046_v6 = vadd.f32 %v5044_v56, %v9130_v30  ;;  %v7525_v60 = vpop.f32.mrb[163].mxu0  ;;  %v7533_v61 = vpop.f32.mrb[171].mxu1  ;;  %v5056_v1 = vadd.f32 %v5054_v9, %v9132_v31 }
0x1c1c   : > { %v6517_v63 = vmul.f32 -1.442695, %v5046_v6  ;;  %v6518_v4 = vmul.f32 -1.442695, %v5056_v1 }
0x1c1e   : > { %8067 = vpow2.f32 %v6517_v63 }
0x1c1f   : > { %v5037_v8 = vpop.f32.mrb[164].mxu0  ;;  %8069 = vpow2.f32 %v6518_v4 }
0x1c20   : > { %v7540_v11 = vpop.f32.mrb[165].mxu0  ;;  %v5038_v47 = vadd.f32 %v5037_v8, %v9144_v55 }
0x1c21   : > { %v5040_v12 = vpop.f32.mrb[166].mxu0 }
0x1c22   : > { %v7541_v20 = vpop.f32.mrb[167].mxu0  ;;  %v5064_v17 = vrot.slane %v5038_v47, 7 }
0x1c28   : > { %v8068_v27 = vpop.eup %8067 }
0x1c29   : > { %v5050_v13 = vadd.f32 1.0, %v8068_v27  ;;  %v8070_v22 = vpop.eup %8069 }
0x1c2a   : > { %v5060_v29 = vadd.f32 1.0, %v8070_v22 }
0x1c2b   : > { %8071 = vrcp.f32 %v5050_v13 }
0x1c2c   : > { %8073 = vrcp.f32 %v5060_v29 }
0x1c35   : > { %v8072_v32 = vpop.eup %8071 }
0x1c36   : > { %v5066_v33 = vmul.f32 %v8072_v32, %v5064_v17  ;;  %v8074_v2 = vpop.eup %8073 }
0x1c37   : > { %v5069_v25 = vsub.f32 1.0, %v8074_v2  ;;  %v5074_v35 = vmul.f32 %v8074_v2, %v5072_v34 }
0x1c38   : > { %v5067_v18 = vadd.f32 %v5066_v33, %v9139_v42 }
0x1c3a   : > { %8075 = vtanh.f32 %v5067_v18 }
0x1c44   : > { %v8076_v26 = vpop.eup %8075 }
0x1c45   : > { %v5070_v38 = vmul.f32 %v8076_v26, %v5069_v25 }
0x1c47   : > { %v5075_v39 = vadd.f32 %v5074_v35, %v5070_v38 }
0x1c49   : > { %v5076_v21 = vpack.c.bf16 %v5075_v39, %v5075_v39  ;;  %v5232_v61 = vrot.slane %v5075_v39, 7  ;;  %v6042_v13 = vsel %vm3251_vm5, %v9373_v50, %v5075_v39 }
0x1c4b   : > { %v5078_v43 = vshrl.u32 %v5076_v21, 16 }
0x1c4d   : > { %7547 = vmatmul.mubr.msk.bf16.vlgmr.msra.gmra.mrb[172].mxu1 %vm695_vm4, %v5078_v43  ;;  %7555 = vmatmul.mubr.msk.bf16.vlgmr.msra.gmra.mrb[168].mxu0 %vm695_vm4, %v5078_v43 }
0x1c4e   : > { %7559 = vmatpush3.bf16.msra.mxu1 %v9379_v52  ;;  %7562 = vmatprep.mubr.msk.bf16.mxu1 %vm8289_vm0, %v8288_v0 }
0x1c4f   : > { %7560 = vmatprep.subr.bf16.mxu1 %v8288_v0  ;;  %7567 = vmatpush3.bf16.msra.mxu0 %v9346_v57 }
0x1c50   : > { %7568 = vmatprep.subr.bf16.mxu0 %v8288_v0  ;;  %7570 = vmatprep.mubr.msk.bf16.mxu0 %vm8289_vm0, %v8288_v0 }
0x1c52   : > { %7561 = vmatpush3.bf16.msra.mxu1 %v9389_v53 }
0x1c53   : > { %7574 = vmatprep.subr.bf16.mxu1 %v8288_v0  ;;  %7569 = vmatpush3.bf16.msra.mxu0 %v9354_v19 }
0x1c54   : > { %7582 = vmatprep.subr.bf16.mxu0 %v8288_v0 }
0x1c55   : > { %7563 = vmatmul.mubr.msk.bf16.vlgmr.msra.gmra.mrb[176].mxu1 %vm695_vm4, %v5078_v43 }
0x1c56   : > { %7575 = vmatpush3.bf16.msra.mxu1 %v9359_v14  ;;  %7578 = vmatprep.mubr.msk.bf16.mxu1 %vm8289_vm0, %v8288_v0 }
0x1c57   : > { %7576 = vmatprep.subr.bf16.mxu1 %v8288_v0 }
0x1c5a   : > { %7577 = vmatpush3.bf16.msra.mxu1 %v9365_v16 }
0x1c5b   : > { %7590 = vmatprep.subr.bf16.mxu1 %v8288_v0 }
0x1d20   : > { %v5117_v44 = vpop.f32.mrb[172].mxu1  ;;  %v5157_v10 = vpop.f32.mrb[168].mxu0 }
0x1d21   : > { %v5204_v7 = vrot.slane %v5117_v44, 6  ;;  %v5214_v46 = vrot.slane %v5157_v10, 6  ;;  %v7548_v48 = vpop.f32.mrb[173].mxu1  ;;  %v7556_v51 = vpop.f32.mrb[169].mxu0 }
0x1d22   : > { %v5120_v28 = vpop.f32.mrb[174].mxu1  ;;  %v5160_v24 = vpop.f32.mrb[170].mxu0 }
0x1d23   : > { %v5206_v40 = vadd.f32 %v5204_v7, %v9130_v30  ;;  %v5216_v41 = vadd.f32 %v5214_v46, %v9132_v31  ;;  %v7549_v62 = vpop.f32.mrb[175].mxu1  ;;  %v7557_v49 = vpop.f32.mrb[171].mxu0 }
0x1d25   : > { %v6522_v54 = vmul.f32 -1.442695, %v5206_v40  ;;  %v6523_v3 = vmul.f32 -1.442695, %v5216_v41 }
0x1d27   : > { %8077 = vpow2.f32 %v6522_v54 }
0x1d28   : > { %8079 = vpow2.f32 %v6523_v3  ;;  %v5197_v15 = vpop.f32.mrb[176].mxu1 }
0x1d29   : > { %v7564_v5 = vpop.f32.mrb[177].mxu1  ;;  %v5198_v45 = vadd.f32 %v5197_v15, %v9144_v55 }
0x1d2a   : > { %v5200_v36 = vpop.f32.mrb[178].mxu1 }
0x1d2b   : > { %v7565_v56 = vpop.f32.mrb[179].mxu1  ;;  %v5224_v6 = vrot.slane %v5198_v45, 6 }
0x1d31   : > { %v8078_v37 = vpop.eup %8077 }
0x1d32   : > { %v8080_v58 = vpop.eup %8079  ;;  %v5210_v9 = vadd.f32 1.0, %v8078_v37 }
0x1d33   : > { %v5220_v59 = vadd.f32 1.0, %v8080_v58 }
0x1d34   : > { %8081 = vrcp.f32 %v5210_v9 }
0x1d35   : > { %8083 = vrcp.f32 %v5220_v59 }
0x1d3e   : > { %v8082_v60 = vpop.eup %8081 }
0x1d3f   : > { %v8084_v63 = vpop.eup %8083  ;;  %v5226_v1 = vmul.f32 %v8082_v60, %v5224_v6 }
0x1d40   : > { %v5234_v8 = vmul.f32 %v8084_v63, %v5232_v61  ;;  %v5229_v4 = vsub.f32 1.0, %v8084_v63 }
0x1d41   : > { %v5227_v11 = vadd.f32 %v5226_v1, %v9139_v42 }
0x1d43   : > { %8085 = vtanh.f32 %v5227_v11 }
0x1d4d   : > { %v8086_v12 = vpop.eup %8085 }
0x1d4e   : > { %v5230_v20 = vmul.f32 %v8086_v12, %v5229_v4 }
0x1d50   : > { %v5235_v27 = vadd.f32 %v5234_v8, %v5230_v20 }
0x1d52   : > { %v5236_v22 = vpack.c.bf16 %v5235_v27, %v5235_v27  ;;  %v6043_v47 = vsel %vm3253_vm6, %v6042_v13, %v5235_v27  ;;  %v5391_v49 = vrot.slane %v5235_v27, 7 }
0x1d54   : > { %v5238_v29 = vrot.slane %v5236_v22, 1 }
0x1d56   : > { %7571 = vmatmul.mubr.msk.bf16.vlgmr.msra.gmra.mrb[172].mxu0 %vm695_vm4, %v5238_v29  ;;  %7579 = vmatmul.mubr.msk.bf16.vlgmr.msra.gmra.mrb[180].mxu1 %vm695_vm4, %v5238_v29 }
0x1d57   : > { %7583 = vmatpush3.bf16.msra.mxu0 %v9379_v52  ;;  %7586 = vmatprep.mubr.msk.bf16.mxu0 %vm8289_vm0, %v8288_v0 }
0x1d58   : > { %7584 = vmatprep.subr.bf16.mxu0 %v8288_v0  ;;  %7591 = vmatpush3.bf16.msra.mxu1 %v9346_v57 }
0x1d59   : > { %7592 = vmatprep.subr.bf16.mxu1 %v8288_v0  ;;  %7594 = vmatprep.mubr.msk.bf16.mxu1 %vm8289_vm0, %v8288_v0 }
0x1d5b   : > { %7585 = vmatpush3.bf16.msra.mxu0 %v9389_v53 }
0x1d5c   : > { %7598 = vmatprep.subr.bf16.mxu0 %v8288_v0  ;;  %7593 = vmatpush3.bf16.msra.mxu1 %v9354_v19 }
0x1d5d   : > { %7606 = vmatprep.subr.bf16.mxu1 %v8288_v0 }
0x1d5e   : > { %7587 = vmatmul.mubr.msk.bf16.vlgmr.msra.gmra.mrb[176].mxu0 %vm695_vm4, %v5238_v29 }
0x1d5f   : > { %7599 = vmatpush3.bf16.msra.mxu0 %v9359_v14  ;;  %7602 = vmatprep.mubr.msk.bf16.mxu0 %vm8289_vm0, %v8288_v0 }
0x1d60   : > { %7600 = vmatprep.subr.bf16.mxu0 %v8288_v0 }
0x1d63   : > { %7601 = vmatpush3.bf16.msra.mxu0 %v9365_v16 }
0x1d64   : > { %7614 = vmatprep.subr.bf16.mxu0 %v8288_v0 }
0x1e29   : > { %v5276_v50 = vpop.f32.mrb[172].mxu0  ;;  %v5316_v17 = vpop.f32.mrb[180].mxu1 }
0x1e2a   : > { %v5363_v32 = vrot.slane %v5276_v50, 5  ;;  %v5373_v33 = vrot.slane %v5316_v17, 5  ;;  %v7572_v18 = vpop.f32.mrb[173].mxu0  ;;  %v7580_v2 = vpop.f32.mrb[181].mxu1 }
0x1e2b   : > { %v5279_v25 = vpop.f32.mrb[174].mxu0  ;;  %v5319_v34 = vpop.f32.mrb[182].mxu1 }
0x1e2c   : > { %v5365_v26 = vadd.f32 %v5363_v32, %v9130_v30  ;;  %v5375_v35 = vadd.f32 %v5373_v33, %v9132_v31  ;;  %v7573_v38 = vpop.f32.mrb[175].mxu0  ;;  %v7581_v39 = vpop.f32.mrb[183].mxu1 }
0x1e2e   : > { %v6527_v21 = vmul.f32 -1.442695, %v5365_v26  ;;  %v6528_v43 = vmul.f32 -1.442695, %v5375_v35 }
0x1e30   : > { %8087 = vpow2.f32 %v6527_v21 }
0x1e31   : > { %8089 = vpow2.f32 %v6528_v43  ;;  %v5356_v44 = vpop.f32.mrb[176].mxu0 }
0x1e32   : > { %v7588_v10 = vpop.f32.mrb[177].mxu0  ;;  %v5357_v40 = vadd.f32 %v5356_v44, %v9144_v55 }
0x1e33   : > { %v5359_v7 = vpop.f32.mrb[178].mxu0 }
0x1e34   : > { %v7589_v46 = vpop.f32.mrb[179].mxu0  ;;  %v5383_v41 = vrot.slane %v5357_v40, 5 }
0x1e3a   : > { %v8088_v48 = vpop.eup %8087 }
0x1e3b   : > { %v8090_v51 = vpop.eup %8089  ;;  %v5369_v28 = vadd.f32 1.0, %v8088_v48 }
0x1e3c   : > { %v5379_v24 = vadd.f32 1.0, %v8090_v51 }
0x1e3d   : > { %8091 = vrcp.f32 %v5369_v28 }
0x1e3e   : > { %8093 = vrcp.f32 %v5379_v24 }
0x1e47   : > { %v8092_v62 = vpop.eup %8091 }
0x1e48   : > { %v8094_v54 = vpop.eup %8093  ;;  %v5385_v3 = vmul.f32 %v8092_v62, %v5383_v41 }
0x1e49   : > { %v5393_v15 = vmul.f32 %v8094_v54, %v5391_v49  ;;  %v5388_v36 = vsub.f32 1.0, %v8094_v54 }
0x1e4a   : > { %v5386_v5 = vadd.f32 %v5385_v3, %v9139_v42 }
0x1e4c   : > { %8095 = vtanh.f32 %v5386_v5 }
0x1e56   : > { %v8096_v56 = vpop.eup %8095 }
0x1e57   : > { %v5389_v37 = vmul.f32 %v8096_v56, %v5388_v36 }
0x1e59   : > { %v5394_v58 = vadd.f32 %v5393_v15, %v5389_v37 }
0x1e5b   : > { %v5395_v9 = vpack.c.bf16 %v5394_v58, %v5394_v58  ;;  %v6044_v59 = vsel %vm3255_vm7, %v6043_v47, %v5394_v58  ;;  %v5552_v39 = vrot.slane %v5394_v58, 7 }
0x1e5d   : > { %v5397_v45 = vshrl.u32 %v5395_v9, 16 }
0x1e5f   : > { %v5399_v6 = vrot.slane %v5397_v45, 1 }
0x1e61   : > { %7595 = vmatmul.mubr.msk.bf16.vlgmr.msra.gmra.mrb[184].mxu1 %vm695_vm4, %v5399_v6  ;;  %7603 = vmatmul.mubr.msk.bf16.vlgmr.msra.gmra.mrb[180].mxu0 %vm695_vm4, %v5399_v6 }
0x1e62   : > { %7607 = vmatpush3.bf16.msra.mxu1 %v9379_v52  ;;  %7610 = vmatprep.mubr.msk.bf16.mxu1 %vm8289_vm0, %v8288_v0 }
0x1e63   : > { %7608 = vmatprep.subr.bf16.mxu1 %v8288_v0  ;;  %7615 = vmatpush3.bf16.msra.mxu0 %v9346_v57 }
0x1e64   : > { %7616 = vmatprep.subr.bf16.mxu0 %v8288_v0  ;;  %7618 = vmatprep.mubr.msk.bf16.mxu0 %vm8289_vm0, %v8288_v0 }
0x1e66   : > { %7609 = vmatpush3.bf16.msra.mxu1 %v9389_v53 }
0x1e67   : > { %7622 = vmatprep.subr.bf16.mxu1 %v8288_v0  ;;  %7617 = vmatpush3.bf16.msra.mxu0 %v9354_v19 }
0x1e68   : > { %7630 = vmatprep.subr.bf16.mxu0 %v8288_v0 }
0x1e69   : > { %7611 = vmatmul.mubr.msk.bf16.vlgmr.msra.gmra.mrb[188].mxu1 %vm695_vm4, %v5399_v6 }
0x1e6a   : > { %7623 = vmatpush3.bf16.msra.mxu1 %v9359_v14  ;;  %7626 = vmatprep.mubr.msk.bf16.mxu1 %vm8289_vm0, %v8288_v0 }
0x1e6b   : > { %7624 = vmatprep.subr.bf16.mxu1 %v8288_v0 }
0x1e6e   : > { %7625 = vmatpush3.bf16.msra.mxu1 %v9365_v16 }
0x1e6f   : > { %7638 = vmatprep.subr.bf16.mxu1 %v8288_v0 }
0x1f34   : > { %v5437_v60 = vpop.f32.mrb[184].mxu1  ;;  %v5477_v61 = vpop.f32.mrb[180].mxu0 }
0x1f35   : > { %v5524_v63 = vrot.slane %v5437_v60, 4  ;;  %v5534_v1 = vrot.slane %v5477_v61, 4  ;;  %v7596_v8 = vpop.f32.mrb[185].mxu1  ;;  %v7604_v11 = vpop.f32.mrb[181].mxu0 }
0x1f36   : > { %v5440_v4 = vpop.f32.mrb[186].mxu1  ;;  %v5480_v12 = vpop.f32.mrb[182].mxu0 }
0x1f37   : > { %v5526_v20 = vadd.f32 %v5524_v63, %v9130_v30  ;;  %v5536_v27 = vadd.f32 %v5534_v1, %v9132_v31  ;;  %v7597_v13 = vpop.f32.mrb[187].mxu1  ;;  %v7605_v22 = vpop.f32.mrb[183].mxu0 }
0x1f39   : > { %v6532_v47 = vmul.f32 -1.442695, %v5526_v20  ;;  %v6533_v29 = vmul.f32 -1.442695, %v5536_v27 }
0x1f3b   : > { %8097 = vpow2.f32 %v6532_v47 }
0x1f3c   : > { %8099 = vpow2.f32 %v6533_v29  ;;  %v5517_v50 = vpop.f32.mrb[188].mxu1 }
0x1f3d   : > { %v7612_v17 = vpop.f32.mrb[189].mxu1  ;;  %v5518_v26 = vadd.f32 %v5517_v50, %v9144_v55 }
0x1f3e   : > { %v5520_v32 = vpop.f32.mrb[190].mxu1 }
0x1f3f   : > { %v7613_v33 = vpop.f32.mrb[191].mxu1  ;;  %v5544_v35 = vrot.slane %v5518_v26, 4 }
0x1f45   : > { %v8098_v18 = vpop.eup %8097 }
0x1f46   : > { %v8100_v2 = vpop.eup %8099  ;;  %v5530_v25 = vadd.f32 1.0, %v8098_v18 }
0x1f47   : > { %v5540_v34 = vadd.f32 1.0, %v8100_v2 }
0x1f48   : > { %8101 = vrcp.f32 %v5530_v25 }
0x1f49   : > { %8103 = vrcp.f32 %v5540_v34 }
0x1f52   : > { %v8102_v38 = vpop.eup %8101 }
0x1f53   : > { %v8104_v21 = vpop.eup %8103  ;;  %v5546_v43 = vmul.f32 %v8102_v38, %v5544_v35 }
0x1f54   : > { %v5554_v44 = vmul.f32 %v8104_v21, %v5552_v39  ;;  %v5549_v7 = vsub.f32 1.0, %v8104_v21 }
0x1f55   : > { %v5547_v10 = vadd.f32 %v5546_v43, %v9139_v42 }
0x1f57   : > { %8105 = vtanh.f32 %v5547_v10 }
0x1f61   : > { %v8106_v46 = vpop.eup %8105 }
0x1f62   : > { %v5550_v48 = vmul.f32 %v8106_v46, %v5549_v7 }
0x1f64   : > { %v5555_v51 = vadd.f32 %v5554_v44, %v5550_v48 }
0x1f66   : > { %v5556_v28 = vpack.c.bf16 %v5555_v51, %v5555_v51  ;;  %v6045_v24 = vsel %vm542_vm2, %v6044_v59, %v5555_v51  ;;  %v5711_v13 = vrot.slane %v5555_v51, 7 }
0x1f68   : > { %v5558_v40 = vrot.slane %v5556_v28, 2 }
0x1f6a   : > { %7619 = vmatmul.mubr.msk.bf16.vlgmr.msra.gmra.mrb[184].mxu0 %vm695_vm4, %v5558_v40  ;;  %7627 = vmatmul.mubr.msk.bf16.vlgmr.msra.gmra.mrb[192].mxu1 %vm695_vm4, %v5558_v40 }
0x1f6b   : > { %7631 = vmatpush3.bf16.msra.mxu0 %v9379_v52  ;;  %7634 = vmatprep.mubr.msk.bf16.mxu0 %vm8289_vm0, %v8288_v0 }
0x1f6c   : > { %7632 = vmatprep.subr.bf16.mxu0 %v8288_v0  ;;  %7639 = vmatpush3.bf16.msra.mxu1 %v9346_v57 }
0x1f6d   : > { %7640 = vmatprep.subr.bf16.mxu1 %v8288_v0  ;;  %7642 = vmatprep.mubr.msk.bf16.mxu1 %vm8289_vm0, %v8288_v0 }
0x1f6f   : > { %7633 = vmatpush3.bf16.msra.mxu0 %v9389_v53 }
0x1f70   : > { %7646 = vmatprep.subr.bf16.mxu0 %v8288_v0  ;;  %7641 = vmatpush3.bf16.msra.mxu1 %v9354_v19 }
0x1f71   : > { %7654 = vmatprep.subr.bf16.mxu1 %v8288_v0 }
0x1f72   : > { %7635 = vmatmul.mubr.msk.bf16.vlgmr.msra.gmra.mrb[188].mxu0 %vm695_vm4, %v5558_v40 }
0x1f73   : > { %7647 = vmatpush3.bf16.msra.mxu0 %v9359_v14  ;;  %7650 = vmatprep.mubr.msk.bf16.mxu0 %vm8289_vm0, %v8288_v0 }
0x1f74   : > { %7648 = vmatprep.subr.bf16.mxu0 %v8288_v0 }
0x1f77   : > { %7649 = vmatpush3.bf16.msra.mxu0 %v9365_v16 }
0x1f78   : > { %7662 = vmatprep.subr.bf16.mxu0 %v8288_v0 }
0x203d   : > { %v5596_v41 = vpop.f32.mrb[184].mxu0  ;;  %v5636_v62 = vpop.f32.mrb[192].mxu1 }
0x203e   : > { %v5683_v49 = vrot.slane %v5596_v41, 3  ;;  %v5693_v54 = vrot.slane %v5636_v62, 3  ;;  %v7620_v3 = vpop.f32.mrb[185].mxu0  ;;  %v7628_v15 = vpop.f32.mrb[193].mxu1 }
0x203f   : > { %v5599_v5 = vpop.f32.mrb[186].mxu0  ;;  %v5639_v36 = vpop.f32.mrb[194].mxu1 }
0x2040   : > { %v5685_v56 = vadd.f32 %v5683_v49, %v9130_v30  ;;  %v5695_v37 = vadd.f32 %v5693_v54, %v9132_v31  ;;  %v7621_v58 = vpop.f32.mrb[187].mxu0  ;;  %v7629_v9 = vpop.f32.mrb[195].mxu1 }
0x2042   : > { %v6537_v59 = vmul.f32 -1.442695, %v5685_v56  ;;  %v6538_v45 = vmul.f32 -1.442695, %v5695_v37 }
0x2044   : > { %8107 = vpow2.f32 %v6537_v59 }
0x2045   : > { %8109 = vpow2.f32 %v6538_v45  ;;  %v5676_v6 = vpop.f32.mrb[188].mxu0 }
0x2046   : > { %v7636_v60 = vpop.f32.mrb[189].mxu0  ;;  %v5677_v12 = vadd.f32 %v5676_v6, %v9144_v55 }
0x2047   : > { %v5679_v61 = vpop.f32.mrb[190].mxu0 }
0x2048   : > { %v7637_v63 = vpop.f32.mrb[191].mxu0  ;;  %v5703_v20 = vrot.slane %v5677_v12, 3 }
0x204e   : > { %v8108_v1 = vpop.eup %8107 }
0x204f   : > { %v8110_v8 = vpop.eup %8109  ;;  %v5689_v11 = vadd.f32 1.0, %v8108_v1 }
0x2050   : > { %v5699_v4 = vadd.f32 1.0, %v8110_v8  ;;  %v8149_v8 = vld [vmem:[%s9641_s2] sm:$0xff]  }
0x2051   : > { %8111 = vrcp.f32 %v5689_v11  ;;  %v474_v11 = vsel %vm472_vm1, %v8149_v8, 0 }
0x2052   : > { %8113 = vrcp.f32 %v5699_v4  ;;  %v6049_v4 = vld [vmem:[%s455_s24] sm:$0xf]  ;;  %s460_s24 = scalar_lea.vmem %s9650_s11, %s6557_s19 }
0x2053   : > { %v6050_v12 = vpack.c.bf16 %v6049_v4, %v6049_v4 }
0x205b   : > { %v8112_v27 = vpop.eup %8111 }
0x205c   : > { %v8114_v22 = vpop.eup %8113  ;;  %v5705_v47 = vmul.f32 %v8112_v27, %v5703_v20 }
0x205d   : > { %v5713_v29 = vmul.f32 %v8114_v22, %v5711_v13  ;;  %v5708_v17 = vsub.f32 1.0, %v8114_v22 }
0x205e   : > { %v5706_v50 = vadd.f32 %v5705_v47, %v9139_v42 }
0x2060   : > { %8115 = vtanh.f32 %v5706_v50 }
0x206a   : > { %v8116_v32 = vpop.eup %8115 }
0x206b   : > { %v5709_v33 = vmul.f32 %v8116_v32, %v5708_v17 }
0x206d   : > { %v5714_v18 = vadd.f32 %v5713_v29, %v5709_v33 }
0x206f   : > { %v5715_v2 = vpack.c.bf16 %v5714_v18, %v5714_v18  ;;  %v9513_v25 = vsel %vm3258_vm8, %v6045_v24, %v5714_v18  ;;  %v5872_v36 = vrot.slane %v5714_v18, 7 }
0x2071   : > { %v5717_v34 = vshrl.u32 %v5715_v2, 16 }
0x2073   : > { %v5719_v26 = vrot.slane %v5717_v34, 2 }
0x2075   : > { %7643 = vmatmul.mubr.msk.bf16.vlgmr.msra.gmra.mrb[196].mxu1 %vm695_vm4, %v5719_v26  ;;  %7651 = vmatmul.mubr.msk.bf16.vlgmr.msra.gmra.mrb[192].mxu0 %vm695_vm4, %v5719_v26 }
0x2076   : > { %7655 = vmatpush3.bf16.msra.mxu1 %v9379_v52  ;;  %7658 = vmatprep.mubr.msk.bf16.mxu1 %vm8289_vm0, %v8288_v0 }
0x2077   : > { %7656 = vmatprep.subr.bf16.mxu1 %v8288_v0  ;;  %7663 = vmatpush3.bf16.msra.mxu0 %v9346_v57 }
0x2078   : > { %7664 = vmatprep.subr.bf16.mxu0 %v8288_v0  ;;  %7666 = vmatprep.mubr.msk.bf16.mxu0 %vm8289_vm0, %v8288_v0 }
0x207a   : > { %7657 = vmatpush3.bf16.msra.mxu1 %v9389_v53 }
0x207b   : > { %7670 = vmatprep.subr.bf16.mxu1 %v8288_v0  ;;  %7665 = vmatpush3.bf16.msra.mxu0 %v9354_v19 }
0x207c   : > { %7678 = vmatprep.subr.bf16.mxu0 %v8288_v0 }
0x207d   : > { %7659 = vmatmul.mubr.msk.bf16.vlgmr.msra.gmra.mrb[200].mxu1 %vm695_vm4, %v5719_v26 }
0x207e   : > { %7671 = vmatpush3.bf16.msra.mxu1 %v9359_v14  ;;  %7674 = vmatprep.mubr.msk.bf16.mxu1 %vm8289_vm0, %v8288_v0 }
0x207f   : > { %7672 = vmatprep.subr.bf16.mxu1 %v8288_v0 }
0x2082   : > { %7673 = vmatpush3.bf16.msra.mxu1 %v9365_v16 }
0x2083   : > { %7686 = vmatprep.subr.bf16.mxu1 %v8288_v0 }
0x2148   : > { %v5757_v57 = vpop.f32.mrb[196].mxu1  ;;  %v5797_v35 = vpop.f32.mrb[192].mxu0 }
0x2149   : > { %v5844_v38 = vrot.slane %v5757_v57, 2  ;;  %v5854_v39 = vrot.slane %v5797_v35, 2  ;;  %v7644_v19 = vpop.f32.mrb[197].mxu1  ;;  %v7652_v21 = vpop.f32.mrb[193].mxu0 }
0x214a   : > { %v5760_v43 = vpop.f32.mrb[198].mxu1  ;;  %v5800_v44 = vpop.f32.mrb[194].mxu0 }
0x214b   : > { %v5846_v10 = vadd.f32 %v5844_v38, %v9130_v30  ;;  %v5856_v14 = vadd.f32 %v5854_v39, %v9132_v31  ;;  %v7645_v7 = vpop.f32.mrb[199].mxu1  ;;  %v7653_v46 = vpop.f32.mrb[195].mxu0 }
0x214d   : > { %v6542_v48 = vmul.f32 -1.442695, %v5846_v10  ;;  %v6543_v51 = vmul.f32 -1.442695, %v5856_v14 }
0x214f   : > { %8117 = vpow2.f32 %v6542_v48 }
0x2150   : > { %8119 = vpow2.f32 %v6543_v51  ;;  %v5837_v16 = vpop.f32.mrb[200].mxu1 }
0x2151   : > { %v7660_v28 = vpop.f32.mrb[201].mxu1  ;;  %v5838_v3 = vadd.f32 %v5837_v16, %v9144_v55  ;;  %v7814_v16 = vld [vmem:[%s9648_s9] sm:$0xff]  }
0x2152   : > { %v5840_v24 = vpop.f32.mrb[202].mxu1 }
0x2153   : > { %v7661_v40 = vpop.f32.mrb[203].mxu1  ;;  %v5864_v15 = vrot.slane %v5838_v3, 2 }
0x2159   : > { %v8118_v41 = vpop.eup %8117 }
0x215a   : > { %v8120_v62 = vpop.eup %8119  ;;  %v5850_v49 = vadd.f32 1.0, %v8118_v41  ;;  %v7815_v41 = vld [vmem:[%s9648_s9 + $0x8] sm:$0xff]  }
0x215b   : > { %v5860_v54 = vadd.f32 1.0, %v8120_v62 }
0x215c   : > { %8121 = vrcp.f32 %v5850_v49 }
0x215d   : > { %8123 = vrcp.f32 %v5860_v54 }
0x2166   : > { %v8122_v5 = vpop.eup %8121 }
0x2167   : > { %v8124_v56 = vpop.eup %8123  ;;  %v5866_v37 = vmul.f32 %v8122_v5, %v5864_v15 }
0x2168   : > { %v5874_v58 = vmul.f32 %v8124_v56, %v5872_v36  ;;  %v5869_v59 = vsub.f32 1.0, %v8124_v56 }
0x2169   : > { %v5867_v9 = vadd.f32 %v5866_v37, %v9139_v42 }
0x216b   : > { %8125 = vtanh.f32 %v5867_v9 }
0x2175   : > { %v8126_v45 = vpop.eup %8125 }
0x2176   : > { %v5870_v6 = vmul.f32 %v8126_v45, %v5869_v59 }
0x2178   : > { %v9540_v60 = vadd.f32 %v5874_v58, %v5870_v6 }
0x217a   : > { %v5876_v61 = vpack.c.bf16 %v9540_v60, %v9540_v60  ;;  %v9548_v63 = vsel %vm3260_vm9, %v9513_v25, %v9540_v60  ;;  %v6031_v36 = vrot.slane %v9540_v60, 7  ;;  %v7816_v60 = vld [vmem:[%s9648_s9 + $0x10] ss:$0 sps:$4 sm:$0x33]  }
0x217c   : > { %v5878_v1 = vrot.slane %v5876_v61, 3 }
0x217e   : > { %7667 = vmatmul.mubr.msk.bf16.vlgmr.msra.gmra.mrb[196].mxu0 %vm695_vm4, %v5878_v1  ;;  %7675 = vmatmul.mubr.msk.bf16.vlgmr.msra.gmra.mrb[204].mxu1 %vm695_vm4, %v5878_v1 }
0x217f   : > { %7687 = vmatpush3.bf16.xpose.msra.mxu1 %v474_v11  ;;  %7679 = vmatpush3.bf16.msra.mxu0 %v9379_v52 }
0x2180   : > { %7680 = vmatprep.subr.bf16.mxu0 %v8288_v0  ;;  %7682 = vmatprep.mubr.msk.bf16.mxu0 %vm8289_vm0, %v8288_v0 }
0x2181   : > { %7688 = vmatprep.mubr.msk.bf16.mxu1 %vm8289_vm0, %v8288_v0 }
0x2183   : > { %7681 = vmatpush3.bf16.msra.mxu0 %v9389_v53 }
0x2184   : > { %7692 = vmatprep.subr.bf16.mxu0 %v8288_v0 }
0x2186   : > { %7683 = vmatmul.mubr.msk.bf16.vlgmr.msra.gmra.mrb[200].mxu0 %vm695_vm4, %v5878_v1  ;;  %7689 = vmatmul.mubr.msk.bf16.vlgmr.msra.gmra.mrb[208].mxu1 %vm472_vm1, %v6050_v12 }
0x2187   : > { %7698 = vmatprep.mubr.msk.bf16.mxu0 %vm8289_vm0, %v8288_v0  ;;  %7693 = vmatpush3.bf16.msra.mxu0 %v7814_v16 }
0x2188   : > { %7694 = vmatprep.subr.bf16.mxu0 %v8288_v0 }
0x218b   : > { %7695 = vmatpush3.bf16.msra.mxu0 %v7815_v41 }
0x218c   : > { %7696 = vmatprep.subr.bf16.mxu0 %v8288_v0 }
0x2251   : > { %v5916_v52 = vpop.f32.mrb[196].mxu0  ;;  %v5956_v20 = vpop.f32.mrb[204].mxu1 }
0x2252   : > { %v6003_v27 = vrot.slane %v5916_v52, 1  ;;  %v6013_v13 = vrot.slane %v5956_v20, 1  ;;  %v7668_v22 = vpop.f32.mrb[197].mxu0  ;;  %v7676_v47 = vpop.f32.mrb[205].mxu1 }
0x2253   : > { %v5919_v29 = vpop.f32.mrb[198].mxu0  ;;  %v5959_v50 = vpop.f32.mrb[206].mxu1 }
0x2254   : > { %v6005_v17 = vadd.f32 %v6003_v27, %v9130_v30  ;;  %v6015_v53 = vadd.f32 %v6013_v13, %v9132_v31  ;;  %v7669_v32 = vpop.f32.mrb[199].mxu0  ;;  %v7677_v33 = vpop.f32.mrb[207].mxu1 }
0x2256   : > { %v6547_v18 = vmul.f32 -1.442695, %v6005_v17  ;;  %v6548_v2 = vmul.f32 -1.442695, %v6015_v53 }
0x2258   : > { %8127 = vpow2.f32 %v6547_v18 }
0x2259   : > { %8129 = vpow2.f32 %v6548_v2  ;;  %v5996_v25 = vpop.f32.mrb[200].mxu0  ;;  %v9573_v34 = vpop.f32.mrb[208].mxu1 }
0x225a   : > { %v7684_v26 = vpop.f32.mrb[201].mxu0  ;;  %v7690_v57 = vpop.f32.mrb[209].mxu1  ;;  %v9576_v35 = vrot.slane %v9573_v34, 7  ;;  %v9579_v38 = vrot.slane %v9573_v34, 5  ;;  %v6121_v30 = vrot.slane %v9573_v34, 1  ;;  %v6099_v10 = vrot.slane %v9573_v34, 6 }
0x225b   : > { %v5999_v31 = vpop.f32.mrb[202].mxu0  ;;  %v6091_v39 = vpop.f32.mrb[210].mxu1  ;;  %v6108_v14 = vrot.slane %v9573_v34, 4  ;;  %v6116_v48 = vrot.slane %v9573_v34, 2  ;;  %v6112_v51 = vrot.slane %v9573_v34, 3  ;;  %v5997_v3 = vadd.f32 %v5996_v25, %v9144_v55 }
0x225c   : > { %v7685_v19 = vpop.f32.mrb[203].mxu0  ;;  %v7691_v21 = vpop.f32.mrb[211].mxu1  ;;  %v7770_v43 = vpack.i.bf16 %v9576_v35, %v9579_v38  ;;  %v7760_v44 = vpack.i.bf16 %v6121_v30, %v9576_v35  ;;  %v7765_v46 = vpack.i.bf16 %v9573_v34, %v6099_v10 }
0x225d   : > { %v7775_v7 = vpack.i.bf16 %v6099_v10, %v6108_v14  ;;  %v7785_v49 = vpack.i.bf16 %v6108_v14, %v6116_v48  ;;  %v7780_v54 = vpack.i.bf16 %v9579_v38, %v6112_v51  ;;  %v6023_v15 = vrot.slane %v5997_v3, 1  ;;  %v6550_v51 = vld [vmem:[%s9649_s10] ss:$0 sm:$0xff] }
0x225e   : > { %7771 = vrot.lane.b32.xlu1 %v7770_v43, %s8291_s27  ;;  %7761 = vrot.lane.b32.xlu0 %v7760_v44, %s8292_s23 }
0x2262   : > { %v8128_v28 = vpop.eup %8127  ;;  %7776 = vrot.lane.b32.xlu1 %v7775_v7, %s8292_s23  ;;  %7766 = vrot.lane.b32.xlu0 %v7765_v46, %s8293_s29 }
0x2263   : > { %v8130_v24 = vpop.eup %8129  ;;  %v6009_v40 = vadd.f32 1.0, %v8128_v28 }
0x2264   : > { %v6019_v62 = vadd.f32 1.0, %v8130_v24 }
0x2265   : > { %8131 = vrcp.f32 %v6009_v40 }
0x2266   : > { %8133 = vrcp.f32 %v6019_v62  ;;  %7786 = vrot.lane.b32.xlu1 %v7785_v49, %s8291_s27  ;;  %7781 = vrot.lane.b32.xlu0 %v7780_v54, %s8293_s29 }
0x226f   : > { %v8132_v5 = vpop.eup %8131 }
0x2270   : > { %v8134_v56 = vpop.eup %8133  ;;  %v6025_v37 = vmul.f32 %v8132_v5, %v6023_v15 }
0x2271   : > { %v6033_v58 = vmul.f32 %v8134_v56, %v6031_v36  ;;  %v6028_v59 = vsub.f32 1.0, %v8134_v56 }
0x2272   : > { %v6026_v9 = vadd.f32 %v6025_v37, %v9139_v42  ;;  %v6198_v42 = vsel %vm3253_vm6, %v7816_v60, 0 }
0x2273   : > { %7697 = vmatpush3.bf16.msra.mxu0 %v6198_v42 }
0x2274   : > { %8135 = vtanh.f32 %v6026_v9 }
0x227e   : > { %v8136_v45 = vpop.eup %8135 }
0x227f   : > { %v6029_v6 = vmul.f32 %v8136_v45, %v6028_v59 }
0x2281   : > { %v6034_v61 = vadd.f32 %v6033_v58, %v6029_v6 }
0x2283   : > { %v6048_v1 = vsel %vm3262_vm10, %v9548_v63, %v6034_v61 }
0x22d0   : > { %v7772_v0 = vpop.permute.xlu1 %7771  ;;  %v7762_v8 = vpop.permute.xlu0 %7761 }
0x22d1   : > { %v7764_v55 = vunpack.i.h.bf16 %v7762_v8  ;;  %v7763_v11 = vunpack.i.l.bf16 %v7762_v8  ;;  %v7774_v27 = vunpack.i.h.bf16 %v7772_v0  ;;  %v7773_v13 = vunpack.i.l.bf16 %v7772_v0 }
0x22d3   : > { %v6148_v22 = vsel %vm3251_vm5, %v6116_v48, %v7764_v55  ;;  %v6141_v63 = vsel %vm3251_vm5, %v9573_v34, %v7763_v11 }
0x22d4   : > { %v7777_v4 = vpop.permute.xlu1 %7776  ;;  %v7767_v12 = vpop.permute.xlu0 %7766 }
0x22d5   : > { %v7769_v52 = vunpack.i.h.bf16 %v7767_v12  ;;  %v7768_v20 = vunpack.i.l.bf16 %v7767_v12  ;;  %v7779_v50 = vunpack.i.h.bf16 %v7777_v4  ;;  %v7778_v17 = vunpack.i.l.bf16 %v7777_v4 }
0x22d7   : > { %v6142_v47 = vsel %vm3253_vm6, %v6141_v63, %v7768_v20  ;;  %v6149_v29 = vsel %vm3253_vm6, %v6148_v22, %v7769_v52 }
0x22d8   : > { %v6143_v53 = vsel %vm3255_vm7, %v6142_v47, %v7773_v13  ;;  %v6150_v32 = vsel %vm3255_vm7, %v6149_v29, %v7774_v27  ;;  %v7787_v33 = vpop.permute.xlu1 %7786  ;;  %v7782_v18 = vpop.permute.xlu0 %7781 }
0x22d9   : > { %v7789_v2 = vunpack.i.h.bf16 %v7787_v33  ;;  %v7788_v25 = vunpack.i.l.bf16 %v7787_v33  ;;  %v7784_v26 = vunpack.i.h.bf16 %v7782_v18  ;;  %v7783_v57 = vunpack.i.l.bf16 %v7782_v18 }
0x22da   : > { %v6144_v30 = vsel %vm542_vm2, %v6143_v53, %v9579_v38  ;;  %v6151_v34 = vsel %vm542_vm2, %v6150_v32, %v9576_v35 }
0x22db   : > { %v6145_v31 = vsel %vm3258_vm8, %v6144_v30, %v7778_v17  ;;  %v6152_v39 = vsel %vm3258_vm8, %v6151_v34, %v7779_v50 }
0x22dc   : > { %v6146_v19 = vsel %vm3260_vm9, %v6145_v31, %v7783_v57  ;;  %v6153_v21 = vsel %vm3260_vm9, %v6152_v39, %v7784_v26 }
0x22dd   : > { %v6147_v43 = vsel %vm3262_vm10, %v6146_v19, %v7788_v25  ;;  %v6154_v44 = vsel %vm3262_vm10, %v6153_v21, %v7789_v2 }
0x22de   : > { %v7790_v10 = vpack.i.bf16 %v6154_v44, %v6147_v43 }
0x22e0   : > { %7791 = vrot.lane.b32.xlu0 %v7790_v10, %s8294_s16 }
0x2352   : > { %v7792_v38 = vpop.permute.xlu0 %7791 }
0x2353   : > { %v7794_v14 = vunpack.i.h.bf16 %v7792_v38  ;;  %v7793_v7 = vunpack.i.l.bf16 %v7792_v38 }
0x2355   : > { %v6164_v35 = vsel %vm695_vm4, %v6048_v1, %v7794_v14  ;;  %v6163_v46 = vsel %vm695_vm4, %v9338_v23, %v7793_v7 }
0x2356   : > { %v6165_v48 = vpack.c.bf16 %v6164_v35, %v6163_v46 }
0x2358   : > { %7699 = vmatmul.mubr.msk.bf16.vlgmr.msra.gmra.mrb[204].mxu0 %vm6193_vm11, %v6165_v48 }
0x242b   : > { %v6234_v16 = vpop.f32.mrb[204].mxu0 }
0x242c   : > { %v6235_v28 = vadd.f32 %v6550_v51, %v6234_v16  ;;  %v7700_v24 = vpop.f32.mrb[205].mxu0 }
0x242d   : > { %v6237_v40 = vpop.f32.mrb[206].mxu0 }
0x242e   : > { %6241 = vst [vmem:[%s460_s24] sm:$0xff] %v6235_v28  ;;  %v6238_v41 = vadd.f32 %v6550_v51, %v6237_v40  ;;  %v7701_v62 = vpop.f32.mrb[207].mxu0 }
0x2430   : > { %6242 = vst [vmem:[%s460_s24 + $0x8] sm:$0xff] %v6238_v41 }
0x2431 PF: > { %s9665_s28 = sld [smem:[#allocation12_spill]] }
0x2437   : > { %s24_s17 = sadd.s32 1, %s9665_s28  }
0x2438   : > { %p21_p6 = scmp.ge.s32.totalorder %s24_s17, 4  }
0x243a   :  { %23 = sbr.rel (!%p21_p6) target bundleno = 3 (0x3), region = 114 }
0x2441   :  { %6264 = vsyncpa [#allocation3], 1 }
0x2442   :  { %6266 = vsyncpa [#allocation3 + $0x1], 1 }
0x2443   :  { %6267 = vsyncpa [#allocation5], 1 }
0x2444   :  { %6268 = vsyncpa [#allocation8], 1 }

</bundles_post_ra>
